<compile_context>
chip_gen: v7x
topology: tpu7x:2x2x1
jax: 0.10.0
libtpu: 0.0.40
codegen_flags: <defaults>
</compile_context>

<pallas_src>
import functools

import jax
import jax.numpy as jnp
from jax.experimental import pallas as pl
from jax.experimental.pallas import tpu as pltpu


# --------------------------------------------------------------- Pallas kernel
def _posemb_kernel(x_ref, coef_ref, kind_ref, o_ref, *, reps):
    """One row-tile of the positional embedding.

    x_ref    : (TB, F)       input features
    coef_ref : (1, F*reps)   per-output-column multiplier (1.0 on identity cols,
                             freq_k on the sin/cos cols)
    kind_ref : (1, F*reps)   int32 op selector per column: 0=identity, 1=sin, 2=cos
    o_ref    : (TB, F*reps)  output block
    """
    x = x_ref[...]                                        # (TB, F)
    # Lane-dense replication: x_rep[:, j] = x[:, j % F].  One concatenate (XLU),
    # after which all math runs on dense (TB, Dout) vregs.
    x_rep = jnp.concatenate([x] * reps, axis=-1)          # (TB, F*reps)
    z = x_rep * coef_ref[...]                             # VPU, dense
    s = jnp.sin(z)                                        # EUP, dense
    c = jnp.cos(z)                                        # EUP, dense
    kind = kind_ref[...]                                  # (1, F*reps), broadcasts
    o_ref[...] = jnp.where(kind == 0, x_rep, jnp.where(kind == 1, s, c))


# ------------------------------------------------------------------- wrapper
def positional_embedding(x, n_freqs, logscale=True, row_tile=128):
    """x: (B, F) float -> (B, F*(2*n_freqs+1)) float32, PyTorch PositionalEmbedding order."""
    B, F = x.shape
    x = x.astype(jnp.float32)

    if logscale:
        freqs = 2.0 ** jnp.arange(n_freqs, dtype=jnp.float32)
    else:
        freqs = jnp.linspace(1.0, 2.0 ** (n_freqs - 1), n_freqs, dtype=jnp.float32)

    reps = 2 * n_freqs + 1
    d_out = F * reps

    # Per-output-column constants (tiny): column blocks are [x | sin(f0 x) | cos(f0 x) | ...].
    coef_blocks = [jnp.ones((F,), jnp.float32)]
    kind_blocks = [jnp.zeros((F,), jnp.int32)]
    for k in range(n_freqs):
        fk = jnp.full((F,), freqs[k], jnp.float32)
        coef_blocks += [fk, fk]
        kind_blocks += [jnp.full((F,), 1, jnp.int32), jnp.full((F,), 2, jnp.int32)]
    coef = jnp.concatenate(coef_blocks)[None, :]          # (1, d_out) float32
    kind = jnp.concatenate(kind_blocks)[None, :]          # (1, d_out) int32

    # Row tiling: pad B to a multiple of the tile (tile itself a multiple of 8).
    tb = min(row_tile, max(8, ((B + 7) // 8) * 8))
    b_pad = pl.cdiv(B, tb) * tb
    if b_pad != B:
        x = jnp.pad(x, ((0, b_pad - B), (0, 0)))
    grid = (b_pad // tb,)

    out = pl.pallas_call(
        functools.partial(_posemb_kernel, reps=reps),
        out_shape=jax.ShapeDtypeStruct((b_pad, d_out), jnp.float32),
        grid=grid,
        in_specs=[
            pl.BlockSpec((tb, F), lambda i: (i, 0)),
            pl.BlockSpec((1, d_out), lambda i: (0, 0)),
            pl.BlockSpec((1, d_out), lambda i: (0, 0)),
        ],
        out_specs=pl.BlockSpec((tb, d_out), lambda i: (i, 0)),
        compiler_params=pltpu.CompilerParams(dimension_semantics=("parallel",)),
    )(x, coef, kind)

    return out[:B] if b_pad != B else out


# --------------------------------------------------------- pure-JAX reference
def positional_embedding_ref(x, n_freqs, logscale=True):
    x = x.astype(jnp.float32)
    if logscale:
        freqs = 2.0 ** jnp.arange(n_freqs, dtype=jnp.float32)
    else:
        freqs = jnp.linspace(1.0, 2.0 ** (n_freqs - 1), n_freqs, dtype=jnp.float32)
    pieces = [x]
    for k in range(n_freqs):
        pieces.append(jnp.sin(freqs[k] * x))
        pieces.append(jnp.cos(freqs[k] * x))
    return jnp.concatenate(pieces, axis=-1)


# ----------------------------------------------------------------------- main
if __name__ == "__main__":
    key = jax.random.PRNGKey(0)
    k1, k2 = jax.random.split(key)

    # Main config: typical NeRF-style usage (xyz coords, 10 frequency bands).
    B, F, N_freqs = 256, 3, 10
    x = jax.random.normal(k1, (B, F), jnp.float32)
    out = positional_embedding(x, N_freqs, logscale=True)
    jax.block_until_ready(out)
    ref = positional_embedding_ref(x, N_freqs, logscale=True)
    assert out.shape == (B, 2 * F * N_freqs + F)
    assert jnp.allclose(out, ref, atol=1e-5, rtol=1e-5)

    # Second config: irregular row count + linear frequency spacing (padding path).
    B2, F2, N2 = 50, 2, 4
    x2 = jax.random.normal(k2, (B2, F2), jnp.float32)
    out2 = positional_embedding(x2, N2, logscale=False)
    jax.block_until_ready(out2)
    ref2 = positional_embedding_ref(x2, N2, logscale=False)
    assert out2.shape == (B2, 2 * F2 * N2 + F2)
    assert jnp.allclose(out2, ref2, atol=1e-5, rtol=1e-5)

    print("KERNEL_OK")
</pallas_src>

<mosaic_0001>
module attributes {stable_mosaic.version = 11 : i64} {
  func.func @_posemb_kernel(%arg0: i32, %arg1: memref<128x3xf32, #tpu.memory_space<vmem>>, %arg2: memref<1x63xf32, #tpu.memory_space<vmem>>, %arg3: memref<1x63xi32, #tpu.memory_space<vmem>>, %arg4: memref<128x63xf32, #tpu.memory_space<vmem>>) attributes {dimension_semantics = [#tpu.dimension_semantics<parallel>], iteration_bounds = array<i64: 2>, scalar_prefetch = 0 : i64, scratch_operands = 0 : i64, tpu.core_type = #tpu.core_type<tc>, window_params = [{transform_indices = @transform_0, window_bounds = array<i64: 128, 3>}, {pipeline_mode = #tpu.pipeline_mode<synchronous>, transform_indices = @transform_1, window_bounds = array<i64: 1, 63>}, {pipeline_mode = #tpu.pipeline_mode<synchronous>, transform_indices = @transform_2, window_bounds = array<i64: 1, 63>}, {transform_indices = @transform_3, window_bounds = array<i64: 128, 63>}]} {
    %c0 = arith.constant 0 : index
    %c0_0 = arith.constant 0 : index
    %0 = vector.load %arg1[%c0, %c0_0] : memref<128x3xf32, #tpu.memory_space<vmem>>, vector<128x3xf32>
    %1 = tpu.concatenate %0, %0, %0, %0, %0, %0, %0, %0, %0, %0, %0, %0, %0, %0, %0, %0 in 1 : vector<128x3xf32>, vector<128x3xf32>, vector<128x3xf32>, vector<128x3xf32>, vector<128x3xf32>, vector<128x3xf32>, vector<128x3xf32>, vector<128x3xf32>, vector<128x3xf32>, vector<128x3xf32>, vector<128x3xf32>, vector<128x3xf32>, vector<128x3xf32>, vector<128x3xf32>, vector<128x3xf32>, vector<128x3xf32> -> vector<128x48xf32>
    %2 = tpu.concatenate %0, %0, %0, %0, %0 in 1 : vector<128x3xf32>, vector<128x3xf32>, vector<128x3xf32>, vector<128x3xf32>, vector<128x3xf32> -> vector<128x15xf32>
    %3 = tpu.concatenate %1, %2 in 1 : vector<128x48xf32>, vector<128x15xf32> -> vector<128x63xf32>
    %c0_1 = arith.constant 0 : index
    %c0_2 = arith.constant 0 : index
    %4 = vector.load %arg2[%c0_1, %c0_2] : memref<1x63xf32, #tpu.memory_space<vmem>>, vector<1x63xf32>
    %5 = vector.broadcast %4 : vector<1x63xf32> to vector<128x63xf32>
    %6 = arith.mulf %3, %5 : vector<128x63xf32>
    %7 = math.sin %6 : vector<128x63xf32>
    %8 = math.cos %6 : vector<128x63xf32>
    %c0_3 = arith.constant 0 : index
    %c0_4 = arith.constant 0 : index
    %9 = vector.load %arg3[%c0_3, %c0_4] : memref<1x63xi32, #tpu.memory_space<vmem>>, vector<1x63xi32>
    %c0_i32 = arith.constant 0 : i32
    %10 = vector.broadcast %c0_i32 : i32 to vector<1x63xi32>
    %11 = arith.cmpi eq, %9, %10 : vector<1x63xi32>
    %c1_i32 = arith.constant 1 : i32
    %12 = vector.broadcast %c1_i32 : i32 to vector<1x63xi32>
    %13 = arith.cmpi eq, %9, %12 : vector<1x63xi32>
    %14 = vector.shape_cast %13 : vector<1x63xi1> to vector<1x63xi1>
    %15 = vector.broadcast %14 : vector<1x63xi1> to vector<128x63xi1>
    %16 = arith.select %15, %7, %8 : vector<128x63xi1>, vector<128x63xf32>
    %17 = vector.shape_cast %11 : vector<1x63xi1> to vector<1x63xi1>
    %18 = vector.broadcast %17 : vector<1x63xi1> to vector<128x63xi1>
    %19 = arith.select %18, %3, %16 : vector<128x63xi1>, vector<128x63xf32>
    %c0_5 = arith.constant 0 : index
    %c0_6 = arith.constant 0 : index
    %20 = vector.load %arg4[%c0_5, %c0_6] : memref<128x63xf32, #tpu.memory_space<vmem>>, vector<128x63xf32>
    tpu.vector_store %arg4[%c0_5, %c0_6], %19 {strides = array<i32>} : memref<128x63xf32, #tpu.memory_space<vmem>>, vector<128x63xf32>,
    return
  }
  func.func @transform_0(%arg0: i32) -> (i32, i32) {
    %c0_i32 = arith.constant 0 : i32
    %c0_i32_0 = arith.constant 0 : i32
    return %arg0, %c0_i32 : i32, i32
  }
  func.func @transform_1(%arg0: i32) -> (i32, i32) {
    %c0_i32 = arith.constant 0 : i32
    %c0_i32_0 = arith.constant 0 : i32
    %c0_i32_1 = arith.constant 0 : i32
    return %c0_i32, %c0_i32_0 : i32, i32
  }
  func.func @transform_2(%arg0: i32) -> (i32, i32) {
    %c0_i32 = arith.constant 0 : i32
    %c0_i32_0 = arith.constant 0 : i32
    %c0_i32_1 = arith.constant 0 : i32
    return %c0_i32, %c0_i32_0 : i32, i32
  }
  func.func @transform_3(%arg0: i32) -> (i32, i32) {
    %c0_i32 = arith.constant 0 : i32
    %c0_i32_0 = arith.constant 0 : i32
    return %arg0, %c0_i32 : i32, i32
  }
}

</mosaic_0001>

<bundles_post_ra>
// kernel: tpu_custom_call.1
= control target key start
LH: loop header
LB: loop body
LE: loop exit
PB: predicated region body
PF: predicated region fallthrough
CT: control target
= control target key end

     0   :  { %s5085_s12 = smov 0   ;;  %s8120_s0 = inlined_call_operand.vmem [shape: f32[256,3], index: 0, kind: input, shape index: {}]   ;;  %s8121_s1 = inlined_call_operand.vmem [shape: f32[1,63], index: 1, kind: input, shape index: {}]   ;;  %s8122_s2 = inlined_call_operand.vmem [shape: s32[1,63], index: 2, kind: input, shape index: {}]   ;;  %s8123_s3 = inlined_call_operand.vmem [shape: f32[256,63], index: 3, kind: output, shape index: {}]  }
   0x1 LB: > { %s4717_s13 = sadd.s32 4294967295, %s5040_s12   ;;  %p4721_p0 = scmp.ge.s32.totalorder %s5040_s12, 1  ;;  %s5040_s12 = sphi %s5085_s12, %s13_s12  }
   0x2   : > { %p138_p1 = scmp.lt.s32.totalorder %s5040_s12, 3 }
   0x4   : > { %p139_p2 = pnand %p4721_p0, %p138_p1 }
   0x6   : > { %142 = sbr.rel (%p139_p2) target bundleno = 1103 (0x44f), region = 32 }
   0xd   : > { %s4722_s14 = sshll.u32 %s4717_s13, 4  ;;  %s5042_s19 = smov 3   ;;  %vm926_vm0 = vcmask 23552   ;;  %vm943_vm1 = vcmask 48128   ;;  %vm960_vm2 = vcmask 72704   ;;  %vm977_vm3 = vcmask 97280  }
   0xe   : > { %p163_p3 = scmp.lt.s32.totalorder %s4722_s14, 31  ;;  %s5043_s20 = smov 6   ;;  %vm994_vm4 = vcmask 121856   ;;  %vm1011_vm5 = vcmask 146432   ;;  %vm1028_vm6 = vcmask 171008   ;;  %vm1045_vm7 = vcmask 195584  }
   0xf   : > { %s5044_s21 = smov 9   ;;  %s5045_s22 = smov 12   ;;  %vm1062_vm8 = vcmask 220160   ;;  %vm1079_vm9 = vcmask 244736   ;;  %vm1096_vm10 = vcmask 269312   ;;  %vm1113_vm11 = vcmask 293888  }
  0x10   : > { %s8295_s14 = smov (!%p163_p3, %s4722_s14), 31  ;;  %s5046_s23 = smov 15   ;;  %vm1130_vm12 = vcmask 318464   ;;  %vm1147_vm13 = vcmask 343040   ;;  %vm1164_vm14 = vcmask 367616   ;;  %vm8137_vm15 = vcmask 392192  }
  0x11   : > { %s4723_s15 = sshll.u32 %s8295_s14, 3  ;;  %s5047_s24 = smov 18  }
  0x12   : > { %s5101_s18 = scalar_lea.vmem %s8120_s0, %s4723_s15  ;;  %s5048_s25 = smov 21  }
  0x13   : > { %v5104_v0 = vld [vmem:[%s5101_s18 + $0x10] sm:$0xff]  ;;  %v5107_v1 = vld [vmem:[%s5101_s18] sm:$0xff]  ;;  %v5112_v2 = vld [vmem:[%s5101_s18 + $0x18] sm:$0xff]  ;;  %s5049_s26 = smov 24   ;;  %s5050_s27 = smov 27  }
  0x14   : > { %210 = vrot.lane.b32.xlu1 %v5104_v0, %s5042_s19  ;;  %206 = vrot.lane.b32.xlu0 %v5107_v1, %s5042_s19  ;;  %v5115_v3 = vld [vmem:[%s5101_s18 + $0x8] sm:$0xff]  ;;  %v5123_v5 = vld [vmem:[%s5101_s18 + $0x20] sm:$0xff]  ;;  %s5051_s28 = smov 30   ;;  %s5052_s29 = smov 33  }
  0x15   : > { %v5120_v4 = vld [vmem:[%s5101_s18 + $0x28] sm:$0xff]  ;;  %v5128_v6 = vld [vmem:[%s5101_s18 + $0x38] sm:$0xff]  ;;  %v5131_v7 = vld [vmem:[%s5101_s18 + $0x30] sm:$0xff]  ;;  %s5053_s30 = smov 36   ;;  %s5054_s4 = smov 39  }
  0x16   : > { %v5136_v8 = vld [vmem:[%s5101_s18 + $0x48] sm:$0xff]  ;;  %v5139_v9 = vld [vmem:[%s5101_s18 + $0x40] sm:$0xff]  ;;  %v5144_v10 = vld [vmem:[%s5101_s18 + $0x58] sm:$0xff]  ;;  %s5055_s5 = smov 42   ;;  %s5056_s6 = smov 45  }
  0x17   : > { %v5147_v11 = vld [vmem:[%s5101_s18 + $0x50] sm:$0xff]  ;;  %v5152_v12 = vld [vmem:[%s5101_s18 + $0x68] sm:$0xff]  ;;  %v5155_v13 = vld [vmem:[%s5101_s18 + $0x60] sm:$0xff]  ;;  %s5057_s7 = smov 48   ;;  %s6611_s17 = scalar_lea.vmem %s8123_s3, %s4723_s15 }
  0x18   : > { %212 = vrot.lane.b32.xlu1 %v5112_v2, %s5042_s19  ;;  %208 = vrot.lane.b32.xlu0 %v5115_v3, %s5042_s19  ;;  %v5160_v14 = vld [vmem:[%s5101_s18 + $0x78] sm:$0xff]  ;;  %v5163_v15 = vld [vmem:[%s5101_s18 + $0x70] sm:$0xff] }
  0x1c   : > { %216 = vrot.lane.b32.xlu1 %v5120_v4, %s5042_s19  ;;  %214 = vrot.lane.b32.xlu0 %v5123_v5, %s5042_s19 }
  0x20   : > { %220 = vrot.lane.b32.xlu1 %v5128_v6, %s5042_s19  ;;  %218 = vrot.lane.b32.xlu0 %v5131_v7, %s5042_s19 }
  0x24   : > { %224 = vrot.lane.b32.xlu1 %v5136_v8, %s5042_s19  ;;  %222 = vrot.lane.b32.xlu0 %v5139_v9, %s5042_s19 }
  0x28   : > { %228 = vrot.lane.b32.xlu1 %v5144_v10, %s5042_s19  ;;  %226 = vrot.lane.b32.xlu0 %v5147_v11, %s5042_s19 }
  0x2c   : > { %232 = vrot.lane.b32.xlu1 %v5152_v12, %s5042_s19  ;;  %230 = vrot.lane.b32.xlu0 %v5155_v13, %s5042_s19 }
  0x30   : > { %236 = vrot.lane.b32.xlu1 %v5160_v14, %s5042_s19  ;;  %234 = vrot.lane.b32.xlu0 %v5163_v15, %s5042_s19 }
  0x34   : > { %256 = vrot.lane.b32.xlu1 %v5115_v3, %s5043_s20  ;;  %254 = vrot.lane.b32.xlu0 %v5107_v1, %s5043_s20 }
  0x38   : > { %260 = vrot.lane.b32.xlu1 %v5112_v2, %s5043_s20  ;;  %258 = vrot.lane.b32.xlu0 %v5104_v0, %s5043_s20 }
  0x3c   : > { %264 = vrot.lane.b32.xlu1 %v5120_v4, %s5043_s20  ;;  %262 = vrot.lane.b32.xlu0 %v5123_v5, %s5043_s20 }
  0x40   : > { %268 = vrot.lane.b32.xlu1 %v5128_v6, %s5043_s20  ;;  %266 = vrot.lane.b32.xlu0 %v5131_v7, %s5043_s20 }
  0x44   : > { %272 = vrot.lane.b32.xlu1 %v5136_v8, %s5043_s20  ;;  %270 = vrot.lane.b32.xlu0 %v5139_v9, %s5043_s20 }
  0x48   : > { %276 = vrot.lane.b32.xlu1 %v5144_v10, %s5043_s20  ;;  %274 = vrot.lane.b32.xlu0 %v5147_v11, %s5043_s20 }
  0x4c   : > { %280 = vrot.lane.b32.xlu1 %v5152_v12, %s5043_s20  ;;  %278 = vrot.lane.b32.xlu0 %v5155_v13, %s5043_s20 }
  0x50   : > { %284 = vrot.lane.b32.xlu1 %v5160_v14, %s5043_s20  ;;  %282 = vrot.lane.b32.xlu0 %v5163_v15, %s5043_s20 }
  0x54   : > { %304 = vrot.lane.b32.xlu1 %v5115_v3, %s5044_s21  ;;  %302 = vrot.lane.b32.xlu0 %v5107_v1, %s5044_s21 }
  0x58   : > { %308 = vrot.lane.b32.xlu1 %v5112_v2, %s5044_s21  ;;  %306 = vrot.lane.b32.xlu0 %v5104_v0, %s5044_s21 }
  0x5c   : > { %312 = vrot.lane.b32.xlu1 %v5120_v4, %s5044_s21  ;;  %310 = vrot.lane.b32.xlu0 %v5123_v5, %s5044_s21 }
  0x60   : > { %316 = vrot.lane.b32.xlu1 %v5128_v6, %s5044_s21  ;;  %314 = vrot.lane.b32.xlu0 %v5131_v7, %s5044_s21 }
  0x64   : > { %320 = vrot.lane.b32.xlu1 %v5136_v8, %s5044_s21  ;;  %318 = vrot.lane.b32.xlu0 %v5139_v9, %s5044_s21 }
  0x68   : > { %324 = vrot.lane.b32.xlu1 %v5144_v10, %s5044_s21  ;;  %322 = vrot.lane.b32.xlu0 %v5147_v11, %s5044_s21 }
  0x6c   : > { %328 = vrot.lane.b32.xlu1 %v5152_v12, %s5044_s21  ;;  %326 = vrot.lane.b32.xlu0 %v5155_v13, %s5044_s21 }
  0x70   : > { %332 = vrot.lane.b32.xlu1 %v5160_v14, %s5044_s21  ;;  %330 = vrot.lane.b32.xlu0 %v5163_v15, %s5044_s21 }
  0x74   : > { %352 = vrot.lane.b32.xlu1 %v5115_v3, %s5045_s22  ;;  %350 = vrot.lane.b32.xlu0 %v5107_v1, %s5045_s22 }
  0x78   : > { %356 = vrot.lane.b32.xlu1 %v5112_v2, %s5045_s22  ;;  %354 = vrot.lane.b32.xlu0 %v5104_v0, %s5045_s22 }
  0x7c   : > { %360 = vrot.lane.b32.xlu1 %v5120_v4, %s5045_s22  ;;  %358 = vrot.lane.b32.xlu0 %v5123_v5, %s5045_s22 }
  0x80   : > { %364 = vrot.lane.b32.xlu1 %v5128_v6, %s5045_s22  ;;  %362 = vrot.lane.b32.xlu0 %v5131_v7, %s5045_s22 }
  0x84   : > { %368 = vrot.lane.b32.xlu1 %v5136_v8, %s5045_s22  ;;  %366 = vrot.lane.b32.xlu0 %v5139_v9, %s5045_s22 }
  0x86   : > { %v5209_v16 = vpop.permute.xlu1 %210  ;;  %v5211_v17 = vpop.permute.xlu0 %206 }
  0x87   : > { %8143 = vst [vmem:[#allocation2_spill] sm:$0xff] %v5211_v17 }
  0x88   : > { %372 = vrot.lane.b32.xlu1 %v5144_v10, %s5045_s22  ;;  %370 = vrot.lane.b32.xlu0 %v5147_v11, %s5045_s22 }
  0x8a   : > { %v5215_v18 = vpop.permute.xlu1 %212  ;;  %v5217_v19 = vpop.permute.xlu0 %208 }
  0x8b   : > { %8144 = vst [vmem:[#allocation3_spill] sm:$0xff] %v5215_v18  ;;  %8145 = vst [vmem:[#allocation4_spill] sm:$0xff] %v5217_v19 }
  0x8c   : > { %376 = vrot.lane.b32.xlu1 %v5152_v12, %s5045_s22  ;;  %374 = vrot.lane.b32.xlu0 %v5155_v13, %s5045_s22 }
  0x8e   : > { %v5221_v20 = vpop.permute.xlu1 %216  ;;  %v5223_v21 = vpop.permute.xlu0 %214 }
  0x90   : > { %380 = vrot.lane.b32.xlu1 %v5160_v14, %s5045_s22  ;;  %378 = vrot.lane.b32.xlu0 %v5163_v15, %s5045_s22 }
  0x92   : > { %v5227_v22 = vpop.permute.xlu1 %220  ;;  %v5229_v23 = vpop.permute.xlu0 %218 }
  0x94   : > { %400 = vrot.lane.b32.xlu1 %v5115_v3, %s5046_s23  ;;  %398 = vrot.lane.b32.xlu0 %v5107_v1, %s5046_s23 }
  0x96   : > { %v5233_v24 = vpop.permute.xlu1 %224  ;;  %v5235_v25 = vpop.permute.xlu0 %222 }
  0x98   : > { %404 = vrot.lane.b32.xlu1 %v5112_v2, %s5046_s23  ;;  %402 = vrot.lane.b32.xlu0 %v5104_v0, %s5046_s23 }
  0x9a   : > { %v5239_v26 = vpop.permute.xlu1 %228  ;;  %v5241_v27 = vpop.permute.xlu0 %226 }
  0x9c   : > { %408 = vrot.lane.b32.xlu1 %v5120_v4, %s5046_s23  ;;  %406 = vrot.lane.b32.xlu0 %v5123_v5, %s5046_s23 }
  0x9e   : > { %v5245_v28 = vpop.permute.xlu1 %232  ;;  %v5247_v29 = vpop.permute.xlu0 %230 }
  0x9f   : > { %8146 = vst [vmem:[#allocation5_spill] sm:$0xff] %v5245_v28  ;;  %8147 = vst [vmem:[#allocation6_spill] sm:$0xff] %v5247_v29 }
  0xa0   : > { %412 = vrot.lane.b32.xlu1 %v5128_v6, %s5046_s23  ;;  %410 = vrot.lane.b32.xlu0 %v5131_v7, %s5046_s23 }
  0xa2   : > { %v5251_v30 = vpop.permute.xlu1 %236  ;;  %v5253_v31 = vpop.permute.xlu0 %234 }
  0xa3   : > { %8148 = vst [vmem:[#allocation7_spill] sm:$0xff] %v5251_v30  ;;  %8149 = vst [vmem:[#allocation8_spill] sm:$0xff] %v5253_v31 }
  0xa4   : > { %416 = vrot.lane.b32.xlu1 %v5136_v8, %s5046_s23  ;;  %414 = vrot.lane.b32.xlu0 %v5139_v9, %s5046_s23 }
  0xa6   : > { %v5257_v32 = vpop.permute.xlu1 %256  ;;  %v5259_v33 = vpop.permute.xlu0 %254 }
  0xa7   : > { %8150 = vst [vmem:[#allocation9_spill] sm:$0xff] %v5257_v32  ;;  %8151 = vst [vmem:[#allocation10_spill] sm:$0xff] %v5259_v33 }
  0xa8   : > { %420 = vrot.lane.b32.xlu1 %v5144_v10, %s5046_s23  ;;  %418 = vrot.lane.b32.xlu0 %v5147_v11, %s5046_s23 }
  0xaa   : > { %v5263_v34 = vpop.permute.xlu1 %260  ;;  %v5265_v35 = vpop.permute.xlu0 %258 }
  0xab   : > { %8152 = vst [vmem:[#allocation11_spill] sm:$0xff] %v5263_v34 }
  0xac   : > { %424 = vrot.lane.b32.xlu1 %v5152_v12, %s5046_s23  ;;  %422 = vrot.lane.b32.xlu0 %v5155_v13, %s5046_s23 }
  0xae   : > { %v5269_v36 = vpop.permute.xlu1 %264  ;;  %v5271_v37 = vpop.permute.xlu0 %262 }
  0xb0   : > { %428 = vrot.lane.b32.xlu1 %v5160_v14, %s5046_s23  ;;  %426 = vrot.lane.b32.xlu0 %v5163_v15, %s5046_s23 }
  0xb2   : > { %v5275_v38 = vpop.permute.xlu1 %268  ;;  %v5277_v39 = vpop.permute.xlu0 %266 }
  0xb4   : > { %448 = vrot.lane.b32.xlu1 %v5115_v3, %s5047_s24  ;;  %446 = vrot.lane.b32.xlu0 %v5107_v1, %s5047_s24 }
  0xb6   : > { %v5281_v40 = vpop.permute.xlu1 %272  ;;  %v5283_v41 = vpop.permute.xlu0 %270 }
  0xb8   : > { %452 = vrot.lane.b32.xlu1 %v5112_v2, %s5047_s24  ;;  %450 = vrot.lane.b32.xlu0 %v5104_v0, %s5047_s24 }
  0xba   : > { %v5287_v42 = vpop.permute.xlu1 %276  ;;  %v5289_v43 = vpop.permute.xlu0 %274 }
  0xbc   : > { %456 = vrot.lane.b32.xlu1 %v5120_v4, %s5047_s24  ;;  %454 = vrot.lane.b32.xlu0 %v5123_v5, %s5047_s24 }
  0xbe   : > { %v5293_v44 = vpop.permute.xlu1 %280  ;;  %v5295_v45 = vpop.permute.xlu0 %278 }
  0xbf   : > { %8153 = vst [vmem:[#allocation12_spill] sm:$0xff] %v5293_v44  ;;  %8154 = vst [vmem:[#allocation13_spill] sm:$0xff] %v5295_v45 }
  0xc0   : > { %460 = vrot.lane.b32.xlu1 %v5128_v6, %s5047_s24  ;;  %458 = vrot.lane.b32.xlu0 %v5131_v7, %s5047_s24 }
  0xc2   : > { %v5299_v46 = vpop.permute.xlu1 %284  ;;  %v5301_v47 = vpop.permute.xlu0 %282 }
  0xc3   : > { %8155 = vst [vmem:[#allocation14_spill] sm:$0xff] %v5299_v46  ;;  %8156 = vst [vmem:[#allocation15_spill] sm:$0xff] %v5301_v47 }
  0xc4   : > { %464 = vrot.lane.b32.xlu1 %v5136_v8, %s5047_s24  ;;  %462 = vrot.lane.b32.xlu0 %v5139_v9, %s5047_s24 }
  0xc6   : > { %v5305_v48 = vpop.permute.xlu1 %304  ;;  %v5307_v49 = vpop.permute.xlu0 %302 }
  0xc7   : > { %8157 = vst [vmem:[#allocation16_spill] sm:$0xff] %v5305_v48  ;;  %8158 = vst [vmem:[#allocation17_spill] sm:$0xff] %v5307_v49 }
  0xc8   : > { %468 = vrot.lane.b32.xlu1 %v5144_v10, %s5047_s24  ;;  %466 = vrot.lane.b32.xlu0 %v5147_v11, %s5047_s24 }
  0xca   : > { %v5311_v50 = vpop.permute.xlu1 %308  ;;  %v5313_v51 = vpop.permute.xlu0 %306 }
  0xcb   : > { %8159 = vst [vmem:[#allocation18_spill] sm:$0xff] %v5311_v50 }
  0xcc   : > { %472 = vrot.lane.b32.xlu1 %v5152_v12, %s5047_s24  ;;  %470 = vrot.lane.b32.xlu0 %v5155_v13, %s5047_s24 }
  0xce   : > { %v5317_v52 = vpop.permute.xlu1 %312  ;;  %v5319_v53 = vpop.permute.xlu0 %310 }
  0xd0   : > { %476 = vrot.lane.b32.xlu1 %v5160_v14, %s5047_s24  ;;  %474 = vrot.lane.b32.xlu0 %v5163_v15, %s5047_s24 }
  0xd2   : > { %v5323_v54 = vpop.permute.xlu1 %316  ;;  %v5325_v55 = vpop.permute.xlu0 %314 }
  0xd4   : > { %496 = vrot.lane.b32.xlu1 %v5115_v3, %s5048_s25  ;;  %494 = vrot.lane.b32.xlu0 %v5107_v1, %s5048_s25 }
  0xd6   : > { %v5329_v56 = vpop.permute.xlu1 %320  ;;  %v5331_v57 = vpop.permute.xlu0 %318 }
  0xd8   : > { %500 = vrot.lane.b32.xlu1 %v5112_v2, %s5048_s25  ;;  %498 = vrot.lane.b32.xlu0 %v5104_v0, %s5048_s25 }
  0xda   : > { %v5335_v58 = vpop.permute.xlu1 %324  ;;  %v5337_v59 = vpop.permute.xlu0 %322 }
  0xdc   : > { %504 = vrot.lane.b32.xlu1 %v5120_v4, %s5048_s25  ;;  %502 = vrot.lane.b32.xlu0 %v5123_v5, %s5048_s25 }
  0xde   : > { %v5341_v60 = vpop.permute.xlu1 %328  ;;  %v5343_v61 = vpop.permute.xlu0 %326 }
  0xdf   : > { %8160 = vst [vmem:[#allocation19_spill] sm:$0xff] %v5341_v60  ;;  %8161 = vst [vmem:[#allocation20_spill] sm:$0xff] %v5343_v61 }
  0xe0   : > { %508 = vrot.lane.b32.xlu1 %v5128_v6, %s5048_s25  ;;  %506 = vrot.lane.b32.xlu0 %v5131_v7, %s5048_s25 }
  0xe2   : > { %v5347_v62 = vpop.permute.xlu1 %332  ;;  %v5349_v63 = vpop.permute.xlu0 %330 }
  0xe3   : > { %8162 = vst [vmem:[#allocation21_spill] sm:$0xff] %v5347_v62  ;;  %8163 = vst [vmem:[#allocation22_spill] sm:$0xff] %v5349_v63 }
  0xe4   : > { %512 = vrot.lane.b32.xlu1 %v5136_v8, %s5048_s25  ;;  %510 = vrot.lane.b32.xlu0 %v5139_v9, %s5048_s25 }
  0xe6   : > { %v5353_v50 = vpop.permute.xlu1 %352  ;;  %v5355_v34 = vpop.permute.xlu0 %350 }
  0xe7   : > { %8164 = vst [vmem:[#allocation23_spill] sm:$0xff] %v5353_v50  ;;  %8165 = vst [vmem:[#allocation24_spill] sm:$0xff] %v5355_v34 }
  0xe8   : > { %516 = vrot.lane.b32.xlu1 %v5144_v10, %s5048_s25  ;;  %514 = vrot.lane.b32.xlu0 %v5147_v11, %s5048_s25 }
  0xea   : > { %v5359_v49 = vpop.permute.xlu1 %356  ;;  %v5361_v48 = vpop.permute.xlu0 %354 }
  0xeb   : > { %8166 = vst [vmem:[#allocation25_spill] sm:$0xff] %v5359_v49 }
  0xec   : > { %520 = vrot.lane.b32.xlu1 %v5152_v12, %s5048_s25  ;;  %518 = vrot.lane.b32.xlu0 %v5155_v13, %s5048_s25 }
  0xee   : > { %v5365_v18 = vpop.permute.xlu1 %360  ;;  %v5367_v33 = vpop.permute.xlu0 %358 }
  0xf0   : > { %524 = vrot.lane.b32.xlu1 %v5160_v14, %s5048_s25  ;;  %522 = vrot.lane.b32.xlu0 %v5163_v15, %s5048_s25 }
  0xf2   : > { %v5371_v34 = vpop.permute.xlu1 %364  ;;  %v5373_v50 = vpop.permute.xlu0 %362 }
  0xf4   : > { %544 = vrot.lane.b32.xlu1 %v5115_v3, %s5049_s26  ;;  %542 = vrot.lane.b32.xlu0 %v5107_v1, %s5049_s26 }
  0xf6   : > { %v5377_v49 = vpop.permute.xlu1 %368  ;;  %v5379_v32 = vpop.permute.xlu0 %366 }
  0xf8   : > { %548 = vrot.lane.b32.xlu1 %v5112_v2, %s5049_s26  ;;  %546 = vrot.lane.b32.xlu0 %v5104_v0, %s5049_s26 }
  0xfa   : > { %v5383_v19 = vpop.permute.xlu1 %372  ;;  %v5385_v17 = vpop.permute.xlu0 %370 }
  0xfc   : > { %552 = vrot.lane.b32.xlu1 %v5120_v4, %s5049_s26  ;;  %550 = vrot.lane.b32.xlu0 %v5123_v5, %s5049_s26 }
  0xfe   : > { %v5389_v63 = vpop.permute.xlu1 %376  ;;  %v5391_v62 = vpop.permute.xlu0 %374 }
  0xff   : > { %8167 = vst [vmem:[#allocation26_spill] sm:$0xff] %v5389_v63  ;;  %8168 = vst [vmem:[#allocation27_spill] sm:$0xff] %v5391_v62 }
 0x100   : > { %556 = vrot.lane.b32.xlu1 %v5128_v6, %s5049_s26  ;;  %554 = vrot.lane.b32.xlu0 %v5131_v7, %s5049_s26 }
 0x102   : > { %v5395_v47 = vpop.permute.xlu1 %380  ;;  %v5397_v46 = vpop.permute.xlu0 %378 }
 0x103   : > { %8169 = vst [vmem:[#allocation28_spill] sm:$0xff] %v5395_v47  ;;  %8170 = vst [vmem:[#allocation29_spill] sm:$0xff] %v5397_v46 }
 0x104   : > { %560 = vrot.lane.b32.xlu1 %v5136_v8, %s5049_s26  ;;  %558 = vrot.lane.b32.xlu0 %v5139_v9, %s5049_s26 }
 0x106   : > { %v5401_v31 = vpop.permute.xlu1 %400  ;;  %v5403_v30 = vpop.permute.xlu0 %398 }
 0x107   : > { %8171 = vst [vmem:[#allocation30_spill] sm:$0xff] %v5401_v31  ;;  %8172 = vst [vmem:[#allocation31_spill] sm:$0xff] %v5403_v30 }
 0x108   : > { %564 = vrot.lane.b32.xlu1 %v5144_v10, %s5049_s26  ;;  %562 = vrot.lane.b32.xlu0 %v5147_v11, %s5049_s26 }
 0x10a   : > { %v5407_v62 = vpop.permute.xlu1 %404  ;;  %v403_v63 = vpop.permute.xlu0 %402 }
 0x10b   : > { %8173 = vst [vmem:[#allocation32_spill] sm:$0xff] %v5407_v62 }
 0x10c   : > { %568 = vrot.lane.b32.xlu1 %v5152_v12, %s5049_s26  ;;  %566 = vrot.lane.b32.xlu0 %v5155_v13, %s5049_s26 }
 0x10e   : > { %v409_v46 = vpop.permute.xlu1 %408  ;;  %v407_v47 = vpop.permute.xlu0 %406 }
 0x110   : > { %572 = vrot.lane.b32.xlu1 %v5160_v14, %s5049_s26  ;;  %570 = vrot.lane.b32.xlu0 %v5163_v15, %s5049_s26 }
 0x112   : > { %v5413_v31 = vpop.permute.xlu1 %412  ;;  %v5415_v30 = vpop.permute.xlu0 %410 }
 0x114   : > { %592 = vrot.lane.b32.xlu1 %v5115_v3, %s5050_s27  ;;  %590 = vrot.lane.b32.xlu0 %v5107_v1, %s5050_s27 }
 0x116   : > { %v5421_v62 = vpop.permute.xlu1 %416  ;;  %v5423_v61 = vpop.permute.xlu0 %414 }
 0x118   : > { %596 = vrot.lane.b32.xlu1 %v5112_v2, %s5050_s27  ;;  %594 = vrot.lane.b32.xlu0 %v5104_v0, %s5050_s27 }
 0x11a   : > { %v5429_v60 = vpop.permute.xlu1 %420  ;;  %v5431_v45 = vpop.permute.xlu0 %418 }
 0x11b   : > { %8174 = vst [vmem:[#allocation33_spill] sm:$0xff] %v5429_v60  ;;  %8175 = vst [vmem:[#allocation34_spill] sm:$0xff] %v5431_v45 }
 0x11c   : > { %600 = vrot.lane.b32.xlu1 %v5120_v4, %s5050_s27  ;;  %598 = vrot.lane.b32.xlu0 %v5123_v5, %s5050_s27 }
 0x11e   : > { %v5437_v44 = vpop.permute.xlu1 %424  ;;  %v5439_v29 = vpop.permute.xlu0 %422 }
 0x11f   : > { %8176 = vst [vmem:[#allocation35_spill] sm:$0xff] %v5437_v44  ;;  %8177 = vst [vmem:[#allocation36_spill] sm:$0xff] %v5439_v29  ;;  %v929_v29 = vsel %vm926_vm0, %v5104_v0, %v5209_v16 }
 0x120   : > { %604 = vrot.lane.b32.xlu1 %v5128_v6, %s5050_s27  ;;  %602 = vrot.lane.b32.xlu0 %v5131_v7, %s5050_s27 }
 0x122   : > { %v5445_v28 = vpop.permute.xlu1 %428  ;;  %v5447_v60 = vpop.permute.xlu0 %426 }
 0x123   : > { %8178 = vst [vmem:[#allocation37_spill] sm:$0xff] %v5445_v28  ;;  %8179 = vst [vmem:[#allocation38_spill] sm:$0xff] %v5447_v60  ;;  %v946_v28 = vsel %vm943_vm1, %v929_v29, %v5265_v35  ;;  %v932_v29 = vsel %vm926_vm0, %v5120_v4, %v5221_v20 }
 0x124   : > { %608 = vrot.lane.b32.xlu1 %v5136_v8, %s5050_s27  ;;  %606 = vrot.lane.b32.xlu0 %v5139_v9, %s5050_s27  ;;  %v963_v60 = vsel %vm960_vm2, %v946_v28, %v5313_v51  ;;  %v931_v28 = vsel %vm926_vm0, %v5123_v5, %v5223_v21 }
 0x125   : > { %v5470_v16 = vsel %vm977_vm3, %v963_v60, %v5361_v48  ;;  %v949_v48 = vsel %vm943_vm1, %v932_v29, %v5269_v36  ;;  %v948_v60 = vsel %vm943_vm1, %v931_v28, %v5271_v37 }
 0x126   : > { %v5456_v44 = vpop.permute.xlu1 %448  ;;  %v5458_v45 = vpop.permute.xlu0 %446  ;;  %v997_v35 = vsel %vm994_vm4, %v5470_v16, %v403_v63  ;;  %v966_v20 = vsel %vm960_vm2, %v949_v48, %v5317_v52  ;;  %v965_v21 = vsel %vm960_vm2, %v948_v60, %v5319_v53  ;;  %v933_v52 = vsel %vm926_vm0, %v5131_v7, %v5229_v23 }
 0x127   : > { %8180 = vst [vmem:[#allocation39_spill] sm:$0xff] %v5456_v44  ;;  %8181 = vst [vmem:[#allocation40_spill] sm:$0xff] %v5458_v45  ;;  %v5499_v36 = vsel %vm977_vm3, %v966_v20, %v5365_v18  ;;  %v5503_v37 = vsel %vm977_vm3, %v965_v21, %v5367_v33  ;;  %v950_v28 = vsel %vm943_vm1, %v933_v52, %v5277_v39 }
 0x128   : > { %612 = vrot.lane.b32.xlu1 %v5144_v10, %s5050_s27  ;;  %610 = vrot.lane.b32.xlu0 %v5147_v11, %s5050_s27  ;;  %v1000_v53 = vsel %vm994_vm4, %v5499_v36, %v409_v46  ;;  %v999_v63 = vsel %vm994_vm4, %v5503_v37, %v407_v47  ;;  %v967_v46 = vsel %vm960_vm2, %v950_v28, %v5325_v55  ;;  %v8187_v28 = vld [vmem:[#allocation34_spill] sm:$0xff] }
 0x129   : > { %v5539_v39 = vsel %vm977_vm3, %v967_v46, %v5373_v50  ;;  %v936_v47 = vsel %vm926_vm0, %v5136_v8, %v5233_v24 }
 0x12a   : > { %v5480_v51 = vpop.permute.xlu1 %452  ;;  %v451_v45 = vpop.permute.xlu0 %450  ;;  %v953_v50 = vsel %vm943_vm1, %v936_v47, %v5281_v40 }
 0x12b   : > { %v5487_v44 = vsel %vm1011_vm5, %v997_v35, %v451_v45  ;;  %v934_v45 = vsel %vm926_vm0, %v5128_v6, %v5227_v22 }
 0x12c   : > { %616 = vrot.lane.b32.xlu1 %v5152_v12, %s5050_s27  ;;  %614 = vrot.lane.b32.xlu0 %v5155_v13, %s5050_s27  ;;  %v951_v33 = vsel %vm943_vm1, %v934_v45, %v5275_v38 }
 0x12d   : > { %v968_v23 = vsel %vm960_vm2, %v951_v33, %v5323_v54  ;;  %v935_v54 = vsel %vm926_vm0, %v5139_v9, %v5235_v25 }
 0x12e   : > { %v457_v18 = vpop.permute.xlu1 %456  ;;  %v455_v29 = vpop.permute.xlu0 %454  ;;  %v5535_v38 = vsel %vm977_vm3, %v968_v23, %v5371_v34  ;;  %v1001_v34 = vsel %vm994_vm4, %v5539_v39, %v5415_v30  ;;  %v952_v24 = vsel %vm943_vm1, %v935_v54, %v5283_v41  ;;  %v8189_v54 = vld [vmem:[#allocation13_spill] sm:$0xff] }
 0x12f   : > { %v5520_v22 = vsel %vm1011_vm5, %v1000_v53, %v457_v18  ;;  %v5523_v35 = vsel %vm1011_vm5, %v999_v63, %v455_v29  ;;  %v1002_v55 = vsel %vm994_vm4, %v5535_v38, %v5413_v31  ;;  %v970_v31 = vsel %vm960_vm2, %v953_v50, %v5329_v56  ;;  %v8184_v63 = vld [vmem:[#allocation5_spill] sm:$0xff]  ;;  %v8185_v18 = vld [vmem:[#allocation6_spill] sm:$0xff] }
 0x130   : > { %620 = vrot.lane.b32.xlu1 %v5160_v14, %s5050_s27  ;;  %618 = vrot.lane.b32.xlu0 %v5163_v15, %s5050_s27  ;;  %v969_v30 = vsel %vm960_vm2, %v952_v24, %v5331_v57  ;;  %v5573_v40 = vsel %vm977_vm3, %v970_v31, %v5377_v49  ;;  %v938_v56 = vsel %vm926_vm0, %v5144_v10, %v5239_v26  ;;  %v8186_v29 = vld [vmem:[#allocation33_spill] sm:$0xff]  ;;  %v8191_v24 = vld [vmem:[#allocation20_spill] sm:$0xff] }
 0x131   : > { %v5577_v41 = vsel %vm977_vm3, %v969_v30, %v5379_v32  ;;  %v937_v57 = vsel %vm926_vm0, %v5147_v11, %v5241_v27  ;;  %v1004_v21 = vsel %vm994_vm4, %v5573_v40, %v5421_v62  ;;  %v955_v32 = vsel %vm943_vm1, %v938_v56, %v5287_v42  ;;  %v8192_v30 = vld [vmem:[#allocation26_spill] sm:$0xff] }
 0x132   : > { %v461_v48 = vpop.permute.xlu1 %460  ;;  %v459_v60 = vpop.permute.xlu0 %458  ;;  %v1003_v49 = vsel %vm994_vm4, %v5577_v41, %v5423_v61  ;;  %v954_v26 = vsel %vm943_vm1, %v937_v57, %v5289_v43  ;;  %v972_v62 = vsel %vm960_vm2, %v955_v32, %v5335_v58  ;;  %v940_v58 = vsel %vm926_vm0, %v5152_v12, %v8184_v63  ;;  %v8194_v57 = vld [vmem:[#allocation27_spill] sm:$0xff] }
 0x133   : > { %v5558_v20 = vsel %vm1011_vm5, %v1002_v55, %v461_v48  ;;  %v5561_v25 = vsel %vm1011_vm5, %v1001_v34, %v459_v60  ;;  %v971_v61 = vsel %vm960_vm2, %v954_v26, %v5337_v59  ;;  %v5611_v42 = vsel %vm977_vm3, %v972_v62, %v5383_v19  ;;  %v8190_v60 = vld [vmem:[#allocation19_spill] sm:$0xff] }
 0x134   : > { %640 = vrot.lane.b32.xlu1 %v5115_v3, %s5051_s28  ;;  %638 = vrot.lane.b32.xlu0 %v5107_v1, %s5051_s28  ;;  %8182 = vst [vmem:[#allocation41_spill] sm:$0xff] %v5611_v42  ;;  %v5615_v43 = vsel %vm977_vm3, %v971_v61, %v5385_v17  ;;  %v939_v59 = vsel %vm926_vm0, %v5155_v13, %v8185_v18  ;;  %v8188_v17 = vld [vmem:[#allocation12_spill] sm:$0xff]  ;;  %v8198_v26 = vld [vmem:[#allocation35_spill] sm:$0xff] }
 0x135   : > { %8183 = vst [vmem:[#allocation42_spill] sm:$0xff] %v5615_v43  ;;  %v1006_v33 = vsel %vm994_vm4, %v5611_v42, %v8186_v29  ;;  %v1005_v19 = vsel %vm994_vm4, %v5615_v43, %v8187_v28  ;;  %v957_v47 = vsel %vm943_vm1, %v940_v58, %v8188_v17  ;;  %v956_v55 = vsel %vm943_vm1, %v939_v59, %v8189_v54  ;;  %v8199_v61 = vld [vmem:[#allocation36_spill] sm:$0xff]  ;;  %v8200_v59 = vld [vmem:[#allocation14_spill] sm:$0xff]  ;;  %v8217_v43 = vld [vmem:[#allocation23_spill] sm:$0xff] }
 0x136   : > { %v465_v45 = vpop.permute.xlu1 %464  ;;  %v463_v52 = vpop.permute.xlu0 %462  ;;  %v974_v50 = vsel %vm960_vm2, %v957_v47, %v8190_v60  ;;  %v973_v31 = vsel %vm960_vm2, %v956_v55, %v8191_v24  ;;  %v8203_v47 = vld [vmem:[#allocation22_spill] sm:$0xff]  ;;  %v8204_v55 = vld [vmem:[#allocation28_spill] sm:$0xff] }
 0x137   : > { %v5596_v53 = vsel %vm1011_vm5, %v1004_v21, %v465_v45  ;;  %v5599_v27 = vsel %vm1011_vm5, %v1003_v49, %v463_v52  ;;  %v5649_v56 = vsel %vm977_vm3, %v974_v50, %v8192_v30  ;;  %v5653_v21 = vsel %vm977_vm3, %v973_v31, %v8194_v57  ;;  %v8196_v49 = vld [vmem:[#allocation7_spill] sm:$0xff]  ;;  %v8197_v52 = vld [vmem:[#allocation8_spill] sm:$0xff]  ;;  %v8206_v50 = vld [vmem:[#allocation29_spill] sm:$0xff] }
 0x138   : > { %644 = vrot.lane.b32.xlu1 %v5112_v2, %s5051_s28  ;;  %642 = vrot.lane.b32.xlu0 %v5104_v0, %s5051_s28  ;;  %8193 = vst [vmem:[#allocation5_spill] sm:$0xff] %v5649_v56  ;;  %8195 = vst [vmem:[#allocation6_spill] sm:$0xff] %v5653_v21  ;;  %v942_v45 = vsel %vm926_vm0, %v5160_v14, %v8196_v49  ;;  %v941_v32 = vsel %vm926_vm0, %v5163_v15, %v8197_v52  ;;  %v8208_v31 = vld [vmem:[#allocation37_spill] sm:$0xff]  ;;  %v8209_v57 = vld [vmem:[#allocation38_spill] sm:$0xff] }
 0x139   : > { %v1008_v62 = vsel %vm994_vm4, %v5649_v56, %v8198_v26  ;;  %v1007_v63 = vsel %vm994_vm4, %v5653_v21, %v8199_v61  ;;  %v959_v29 = vsel %vm943_vm1, %v942_v45, %v8200_v59  ;;  %v8210_v21 = vld [vmem:[#allocation2_spill] sm:$0xff]  ;;  %v8215_v56 = vld [vmem:[#allocation16_spill] sm:$0xff] }
 0x13a   : > { %v469_v23 = vpop.permute.xlu1 %468  ;;  %v467_v46 = vpop.permute.xlu0 %466  ;;  %v8218_v42 = vld [vmem:[#allocation24_spill] sm:$0xff] }
 0x13b   : > { %v5634_v34 = vsel %vm1011_vm5, %v1006_v33, %v469_v23  ;;  %v5637_v48 = vsel %vm1011_vm5, %v1005_v19, %v467_v46  ;;  %v8201_v33 = vld [vmem:[#allocation15_spill] sm:$0xff]  ;;  %v8202_v46 = vld [vmem:[#allocation21_spill] sm:$0xff] }
 0x13c   : > { %648 = vrot.lane.b32.xlu1 %v5120_v4, %s5051_s28  ;;  %646 = vrot.lane.b32.xlu0 %v5123_v5, %s5051_s28  ;;  %v958_v28 = vsel %vm943_vm1, %v941_v32, %v8201_v33  ;;  %v976_v17 = vsel %vm960_vm2, %v959_v29, %v8202_v46 }
 0x13d   : > { %v975_v54 = vsel %vm960_vm2, %v958_v28, %v8203_v47  ;;  %v5683_v60 = vsel %vm977_vm3, %v976_v17, %v8204_v55 }
 0x13e   : > { %v473_v58 = vpop.permute.xlu1 %472  ;;  %v471_v18 = vpop.permute.xlu0 %470  ;;  %8205 = vst [vmem:[#allocation33_spill] sm:$0xff] %v5683_v60  ;;  %v5687_v24 = vsel %vm977_vm3, %v975_v54, %v8206_v50  ;;  %v1010_v30 = vsel %vm994_vm4, %v5683_v60, %v8208_v31 }
 0x13f   : > { %v1025_v19 = vsel %vm1011_vm5, %v1008_v62, %v473_v58  ;;  %v1024_v23 = vsel %vm1011_vm5, %v1007_v63, %v471_v18  ;;  %8207 = vst [vmem:[#allocation34_spill] sm:$0xff] %v5687_v24  ;;  %v1009_v49 = vsel %vm994_vm4, %v5687_v24, %v8209_v57 }
 0x140   : > { %652 = vrot.lane.b32.xlu1 %v5128_v6, %s5051_s28  ;;  %650 = vrot.lane.b32.xlu0 %v5131_v7, %s5051_s28 }
 0x142   : > { %v477_v45 = vpop.permute.xlu1 %476  ;;  %v475_v52 = vpop.permute.xlu0 %474 }
 0x143   : > { %v1027_v32 = vsel %vm1011_vm5, %v1010_v30, %v477_v45  ;;  %v1026_v26 = vsel %vm1011_vm5, %v1009_v49, %v475_v52 }
 0x144   : > { %656 = vrot.lane.b32.xlu1 %v5136_v8, %s5051_s28  ;;  %654 = vrot.lane.b32.xlu0 %v5139_v9, %s5051_s28 }
 0x146   : > { %v5701_v62 = vpop.permute.xlu1 %496  ;;  %v5703_v61 = vpop.permute.xlu0 %494 }
 0x148   : > { %660 = vrot.lane.b32.xlu1 %v5144_v10, %s5051_s28  ;;  %658 = vrot.lane.b32.xlu0 %v5147_v11, %s5051_s28 }
 0x14a   : > { %v5709_v63 = vpop.permute.xlu1 %500  ;;  %v499_v58 = vpop.permute.xlu0 %498 }
 0x14b   : > { %v1031_v18 = vsel %vm1028_vm6, %v5487_v44, %v499_v58 }
 0x14c   : > { %664 = vrot.lane.b32.xlu1 %v5152_v12, %s5051_s28  ;;  %662 = vrot.lane.b32.xlu0 %v5155_v13, %s5051_s28 }
 0x14e   : > { %v505_v59 = vpop.permute.xlu1 %504  ;;  %v503_v29 = vpop.permute.xlu0 %502 }
 0x14f   : > { %v1034_v33 = vsel %vm1028_vm6, %v5520_v22, %v505_v59  ;;  %v1033_v28 = vsel %vm1028_vm6, %v5523_v35, %v503_v29 }
 0x150   : > { %668 = vrot.lane.b32.xlu1 %v5160_v14, %s5051_s28  ;;  %666 = vrot.lane.b32.xlu0 %v5163_v15, %s5051_s28 }
 0x152   : > { %v509_v44 = vpop.permute.xlu1 %508  ;;  %v507_v46 = vpop.permute.xlu0 %506 }
 0x153   : > { %v1036_v17 = vsel %vm1028_vm6, %v5558_v20, %v509_v44  ;;  %v1035_v47 = vsel %vm1028_vm6, %v5561_v25, %v507_v46 }
 0x154   : > { %688 = vrot.lane.b32.xlu1 %v5115_v3, %s5052_s29  ;;  %686 = vrot.lane.b32.xlu0 %v5107_v1, %s5052_s29 }
 0x156   : > { %v513_v22 = vpop.permute.xlu1 %512  ;;  %v511_v35 = vpop.permute.xlu0 %510 }
 0x157   : > { %v1038_v54 = vsel %vm1028_vm6, %v5596_v53, %v513_v22  ;;  %v1037_v55 = vsel %vm1028_vm6, %v5599_v27, %v511_v35 }
 0x158   : > { %692 = vrot.lane.b32.xlu1 %v5112_v2, %s5052_s29  ;;  %690 = vrot.lane.b32.xlu0 %v5104_v0, %s5052_s29 }
 0x15a   : > { %v517_v20 = vpop.permute.xlu1 %516  ;;  %v515_v25 = vpop.permute.xlu0 %514 }
 0x15b   : > { %v1040_v50 = vsel %vm1028_vm6, %v5634_v34, %v517_v20  ;;  %v1039_v31 = vsel %vm1028_vm6, %v5637_v48, %v515_v25 }
 0x15c   : > { %696 = vrot.lane.b32.xlu1 %v5120_v4, %s5052_s29  ;;  %694 = vrot.lane.b32.xlu0 %v5123_v5, %s5052_s29 }
 0x15e   : > { %v521_v53 = vpop.permute.xlu1 %520  ;;  %v519_v27 = vpop.permute.xlu0 %518 }
 0x15f   : > { %v1042_v30 = vsel %vm1028_vm6, %v1025_v19, %v521_v53  ;;  %v1041_v57 = vsel %vm1028_vm6, %v1024_v23, %v519_v27 }
 0x160   : > { %700 = vrot.lane.b32.xlu1 %v5128_v6, %s5052_s29  ;;  %698 = vrot.lane.b32.xlu0 %v5131_v7, %s5052_s29 }
 0x162   : > { %v525_v34 = vpop.permute.xlu1 %524  ;;  %v523_v48 = vpop.permute.xlu0 %522 }
 0x163   : > { %v1044_v49 = vsel %vm1028_vm6, %v1027_v32, %v525_v34  ;;  %v1043_v45 = vsel %vm1028_vm6, %v1026_v26, %v523_v48 }
 0x164   : > { %704 = vrot.lane.b32.xlu1 %v5136_v8, %s5052_s29  ;;  %702 = vrot.lane.b32.xlu0 %v5139_v9, %s5052_s29 }
 0x166   : > { %v5761_v19 = vpop.permute.xlu1 %544  ;;  %v5763_v23 = vpop.permute.xlu0 %542 }
 0x168   : > { %708 = vrot.lane.b32.xlu1 %v5144_v10, %s5052_s29  ;;  %706 = vrot.lane.b32.xlu0 %v5147_v11, %s5052_s29 }
 0x16a   : > { %v5769_v52 = vpop.permute.xlu1 %548  ;;  %v547_v32 = vpop.permute.xlu0 %546 }
 0x16b   : > { %v1048_v26 = vsel %vm1045_vm7, %v1031_v18, %v547_v32 }
 0x16c   : > { %712 = vrot.lane.b32.xlu1 %v5152_v12, %s5052_s29  ;;  %710 = vrot.lane.b32.xlu0 %v5155_v13, %s5052_s29 }
 0x16e   : > { %v553_v58 = vpop.permute.xlu1 %552  ;;  %v551_v59 = vpop.permute.xlu0 %550 }
 0x16f   : > { %v1051_v29 = vsel %vm1045_vm7, %v1034_v33, %v553_v58  ;;  %v1050_v44 = vsel %vm1045_vm7, %v1033_v28, %v551_v59 }
 0x170   : > { %716 = vrot.lane.b32.xlu1 %v5160_v14, %s5052_s29  ;;  %714 = vrot.lane.b32.xlu0 %v5163_v15, %s5052_s29 }
 0x172   : > { %v557_v46 = vpop.permute.xlu1 %556  ;;  %v555_v18 = vpop.permute.xlu0 %554 }
 0x173   : > { %v1053_v22 = vsel %vm1045_vm7, %v1036_v17, %v557_v46  ;;  %v1052_v35 = vsel %vm1045_vm7, %v1035_v47, %v555_v18 }
 0x174   : > { %736 = vrot.lane.b32.xlu1 %v5115_v3, %s5053_s30  ;;  %734 = vrot.lane.b32.xlu0 %v5107_v1, %s5053_s30 }
 0x176   : > { %v561_v33 = vpop.permute.xlu1 %560  ;;  %v559_v28 = vpop.permute.xlu0 %558 }
 0x177   : > { %v1055_v20 = vsel %vm1045_vm7, %v1038_v54, %v561_v33  ;;  %v1054_v25 = vsel %vm1045_vm7, %v1037_v55, %v559_v28 }
 0x178   : > { %740 = vrot.lane.b32.xlu1 %v5112_v2, %s5053_s30  ;;  %738 = vrot.lane.b32.xlu0 %v5104_v0, %s5053_s30 }
 0x17a   : > { %v565_v17 = vpop.permute.xlu1 %564  ;;  %v563_v47 = vpop.permute.xlu0 %562 }
 0x17b   : > { %v1057_v53 = vsel %vm1045_vm7, %v1040_v50, %v565_v17  ;;  %v1056_v27 = vsel %vm1045_vm7, %v1039_v31, %v563_v47 }
 0x17c   : > { %744 = vrot.lane.b32.xlu1 %v5120_v4, %s5053_s30  ;;  %742 = vrot.lane.b32.xlu0 %v5123_v5, %s5053_s30 }
 0x17e   : > { %v569_v54 = vpop.permute.xlu1 %568  ;;  %v567_v55 = vpop.permute.xlu0 %566 }
 0x17f   : > { %v1059_v34 = vsel %vm1045_vm7, %v1042_v30, %v569_v54  ;;  %v1058_v48 = vsel %vm1045_vm7, %v1041_v57, %v567_v55 }
 0x180   : > { %748 = vrot.lane.b32.xlu1 %v5128_v6, %s5053_s30  ;;  %746 = vrot.lane.b32.xlu0 %v5131_v7, %s5053_s30 }
 0x182   : > { %v573_v50 = vpop.permute.xlu1 %572  ;;  %v571_v31 = vpop.permute.xlu0 %570 }
 0x183   : > { %v1061_v32 = vsel %vm1045_vm7, %v1044_v49, %v573_v50  ;;  %v1060_v58 = vsel %vm1045_vm7, %v1043_v45, %v571_v31 }
 0x184   : > { %752 = vrot.lane.b32.xlu1 %v5136_v8, %s5053_s30  ;;  %750 = vrot.lane.b32.xlu0 %v5139_v9, %s5053_s30 }
 0x186   : > { %v5812_v30 = vpop.permute.xlu1 %592  ;;  %v5814_v57 = vpop.permute.xlu0 %590 }
 0x188   : > { %756 = vrot.lane.b32.xlu1 %v5144_v10, %s5053_s30  ;;  %754 = vrot.lane.b32.xlu0 %v5147_v11, %s5053_s30 }
 0x18a   : > { %v5820_v49 = vpop.permute.xlu1 %596  ;;  %v595_v45 = vpop.permute.xlu0 %594 }
 0x18b   : > { %v1065_v59 = vsel %vm1062_vm8, %v1048_v26, %v595_v45  ;;  %v5891_v45 = vld [vmem:[%s5101_s18 + $0x8] sm:$0xff] }
 0x18c   : > { %760 = vrot.lane.b32.xlu1 %v5152_v12, %s5053_s30  ;;  %758 = vrot.lane.b32.xlu0 %v5155_v13, %s5053_s30 }
 0x18e   : > { %v601_v46 = vpop.permute.xlu1 %600  ;;  %v599_v18 = vpop.permute.xlu0 %598 }
 0x18f   : > { %v1068_v33 = vsel %vm1062_vm8, %v1051_v29, %v601_v46  ;;  %v1067_v28 = vsel %vm1062_vm8, %v1050_v44, %v599_v18 }
 0x190   : > { %764 = vrot.lane.b32.xlu1 %v5160_v14, %s5053_s30  ;;  %762 = vrot.lane.b32.xlu0 %v5163_v15, %s5053_s30 }
 0x192   : > { %v605_v17 = vpop.permute.xlu1 %604  ;;  %v603_v26 = vpop.permute.xlu0 %602 }
 0x193   : > { %v1070_v47 = vsel %vm1062_vm8, %v1053_v22, %v605_v17  ;;  %v1069_v54 = vsel %vm1062_vm8, %v1052_v35, %v603_v26 }
 0x194   : > { %784 = vrot.lane.b32.xlu1 %v5115_v3, %s5054_s4  ;;  %782 = vrot.lane.b32.xlu0 %v5107_v1, %s5054_s4 }
 0x196   : > { %v609_v29 = vpop.permute.xlu1 %608  ;;  %v607_v44 = vpop.permute.xlu0 %606 }
 0x197   : > { %v1072_v55 = vsel %vm1062_vm8, %v1055_v20, %v609_v29  ;;  %v1071_v50 = vsel %vm1062_vm8, %v1054_v25, %v607_v44  ;;  %v5020_v29 = vld [vmem:[%s5101_s18 + $0x28] sm:$0xff]  ;;  %v5021_v44 = vld [vmem:[%s5101_s18 + $0x20] sm:$0xff] }
 0x198   : > { %788 = vrot.lane.b32.xlu1 %v5112_v2, %s5054_s4  ;;  %786 = vrot.lane.b32.xlu0 %v5104_v0, %s5054_s4 }
 0x19a   : > { %v613_v22 = vpop.permute.xlu1 %612  ;;  %v611_v35 = vpop.permute.xlu0 %610 }
 0x19b   : > { %v1074_v31 = vsel %vm1062_vm8, %v1057_v53, %v613_v22  ;;  %v1073_v3 = vsel %vm1062_vm8, %v1056_v27, %v611_v35 }
 0x19c   : > { %792 = vrot.lane.b32.xlu1 %v5120_v4, %s5054_s4  ;;  %790 = vrot.lane.b32.xlu0 %v5123_v5, %s5054_s4 }
 0x19e   : > { %v617_v1 = vpop.permute.xlu1 %616  ;;  %v615_v20 = vpop.permute.xlu0 %614 }
 0x19f   : > { %v1076_v25 = vsel %vm1062_vm8, %v1059_v34, %v617_v1  ;;  %v1075_v2 = vsel %vm1062_vm8, %v1058_v48, %v615_v20 }
 0x1a0   : > { %796 = vrot.lane.b32.xlu1 %v5128_v6, %s5054_s4  ;;  %794 = vrot.lane.b32.xlu0 %v5131_v7, %s5054_s4 }
 0x1a2   : > { %v621_v0 = vpop.permute.xlu1 %620  ;;  %v619_v53 = vpop.permute.xlu0 %618 }
 0x1a3   : > { %v1078_v27 = vsel %vm1062_vm8, %v1061_v32, %v621_v0  ;;  %v1077_v4 = vsel %vm1062_vm8, %v1060_v58, %v619_v53  ;;  %v5938_v0 = vld [vmem:[%s5101_s18 + $0x48] sm:$0xff]  ;;  %v5943_v53 = vld [vmem:[%s5101_s18 + $0x40] sm:$0xff] }
 0x1a4   : > { %800 = vrot.lane.b32.xlu1 %v5136_v8, %s5054_s4  ;;  %798 = vrot.lane.b32.xlu0 %v5139_v9, %s5054_s4 }
 0x1a6   : > { %v5863_v5 = vpop.permute.xlu1 %640  ;;  %v5865_v34 = vpop.permute.xlu0 %638 }
 0x1a8   : > { %804 = vrot.lane.b32.xlu1 %v5144_v10, %s5054_s4  ;;  %802 = vrot.lane.b32.xlu0 %v5147_v11, %s5054_s4 }
 0x1aa   : > { %v5871_v6 = vpop.permute.xlu1 %644  ;;  %v643_v7 = vpop.permute.xlu0 %642 }
 0x1ab   : > { %v1082_v8 = vsel %vm1079_vm9, %v1065_v59, %v643_v7 }
 0x1ac   : > { %808 = vrot.lane.b32.xlu1 %v5152_v12, %s5054_s4  ;;  %806 = vrot.lane.b32.xlu0 %v5155_v13, %s5054_s4 }
 0x1ae   : > { %v649_v9 = vpop.permute.xlu1 %648  ;;  %v647_v48 = vpop.permute.xlu0 %646 }
 0x1af   : > { %v1085_v10 = vsel %vm1079_vm9, %v1068_v33, %v649_v9  ;;  %v1084_v11 = vsel %vm1079_vm9, %v1067_v28, %v647_v48  ;;  %v5903_v33 = vld [vmem:[%s5101_s18 + $0x18] sm:$0xff]  ;;  %v5019_v28 = vld [vmem:[%s5101_s18 + $0x10] sm:$0xff] }
 0x1b0   : > { %812 = vrot.lane.b32.xlu1 %v5160_v14, %s5054_s4  ;;  %810 = vrot.lane.b32.xlu0 %v5163_v15, %s5054_s4  ;;  %v5896_v14 = vld [vmem:[%s5101_s18] sm:$0xff] }
 0x1b2   : > { %v653_v32 = vpop.permute.xlu1 %652  ;;  %v651_v58 = vpop.permute.xlu0 %650 }
 0x1b3   : > { %v5885_v12 = vsel %vm1079_vm9, %v1070_v47, %v653_v32  ;;  %v5888_v13 = vsel %vm1079_vm9, %v1069_v54, %v651_v58 }
 0x1b4   : > { %832 = vrot.lane.b32.xlu1 %v5891_v45, %s5055_s5  ;;  %830 = vrot.lane.b32.xlu0 %v5896_v14, %s5055_s5 }
 0x1b6   : > { %v657_v15 = vpop.permute.xlu1 %656  ;;  %v655_v59 = vpop.permute.xlu0 %654 }
 0x1b7   : > { %v1089_v46 = vsel %vm1079_vm9, %v1072_v55, %v657_v15  ;;  %v1088_v18 = vsel %vm1079_vm9, %v1071_v50, %v655_v59  ;;  %v5967_v15 = vld [vmem:[%s5101_s18 + $0x68] sm:$0xff]  ;;  %v5972_v59 = vld [vmem:[%s5101_s18 + $0x60] sm:$0xff] }
 0x1b8   : > { %836 = vrot.lane.b32.xlu1 %v5903_v33, %s5055_s5  ;;  %834 = vrot.lane.b32.xlu0 %v5019_v28, %s5055_s5 }
 0x1ba   : > { %v661_v17 = vpop.permute.xlu1 %660  ;;  %v659_v26 = vpop.permute.xlu0 %658 }
 0x1bb   : > { %v1091_v47 = vsel %vm1079_vm9, %v1074_v31, %v661_v17  ;;  %v1090_v54 = vsel %vm1079_vm9, %v1073_v3, %v659_v26  ;;  %v5922_v31 = vld [vmem:[%s5101_s18 + $0x38] sm:$0xff]  ;;  %v5927_v3 = vld [vmem:[%s5101_s18 + $0x30] sm:$0xff] }
 0x1bc   : > { %840 = vrot.lane.b32.xlu1 %v5020_v29, %s5055_s5  ;;  %838 = vrot.lane.b32.xlu0 %v5021_v44, %s5055_s5 }
 0x1be   : > { %v665_v55 = vpop.permute.xlu1 %664  ;;  %v663_v50 = vpop.permute.xlu0 %662 }
 0x1bf   : > { %v5916_v22 = vsel %vm1079_vm9, %v1076_v25, %v665_v55  ;;  %v5919_v35 = vsel %vm1079_vm9, %v1075_v2, %v663_v50 }
 0x1c0   : > { %844 = vrot.lane.b32.xlu1 %v5922_v31, %s5055_s5  ;;  %842 = vrot.lane.b32.xlu0 %v5927_v3, %s5055_s5 }
 0x1c2   : > { %v669_v1 = vpop.permute.xlu1 %668  ;;  %v667_v20 = vpop.permute.xlu0 %666 }
 0x1c3   : > { %v5932_v25 = vsel %vm1079_vm9, %v1078_v27, %v669_v1  ;;  %v5935_v2 = vsel %vm1079_vm9, %v1077_v4, %v667_v20  ;;  %v5952_v27 = vld [vmem:[%s5101_s18 + $0x58] sm:$0xff]  ;;  %v5957_v4 = vld [vmem:[%s5101_s18 + $0x50] sm:$0xff] }
 0x1c4   : > { %848 = vrot.lane.b32.xlu1 %v5938_v0, %s5055_s5  ;;  %846 = vrot.lane.b32.xlu0 %v5943_v53, %s5055_s5  ;;  %v5988_v1 = vld [vmem:[%s5101_s18 + $0x70] sm:$0xff] }
 0x1c6   : > { %v5947_v7 = vpop.permute.xlu1 %688  ;;  %v5949_v9 = vpop.permute.xlu0 %686 }
 0x1c8   : > { %852 = vrot.lane.b32.xlu1 %v5952_v27, %s5055_s5  ;;  %850 = vrot.lane.b32.xlu0 %v5957_v4, %s5055_s5 }
 0x1ca   : > { %v5961_v48 = vpop.permute.xlu1 %692  ;;  %v691_v32 = vpop.permute.xlu0 %690 }
 0x1cb   : > { %v5964_v58 = vsel %vm1096_vm10, %v1082_v8, %v691_v32  ;;  %v5983_v8 = vld [vmem:[%s5101_s18 + $0x78] sm:$0xff] }
 0x1cc   : > { %856 = vrot.lane.b32.xlu1 %v5967_v15, %s5055_s5  ;;  %854 = vrot.lane.b32.xlu0 %v5972_v59, %s5055_s5 }
 0x1ce   : > { %v697_v17 = vpop.permute.xlu1 %696  ;;  %v695_v26 = vpop.permute.xlu0 %694 }
 0x1cf   : > { %v5977_v55 = vsel %vm1096_vm10, %v1085_v10, %v697_v17  ;;  %v5980_v50 = vsel %vm1096_vm10, %v1084_v11, %v695_v26 }
 0x1d0   : > { %860 = vrot.lane.b32.xlu1 %v5983_v8, %s5055_s5  ;;  %858 = vrot.lane.b32.xlu0 %v5988_v1, %s5055_s5 }
 0x1d2   : > { %v701_v20 = vpop.permute.xlu1 %700  ;;  %v699_v32 = vpop.permute.xlu0 %698 }
 0x1d3   : > { %v5994_v24 = vsel %vm1096_vm10, %v5885_v12, %v701_v20  ;;  %v5998_v10 = vsel %vm1096_vm10, %v5888_v13, %v699_v32 }
 0x1d4   : > { %880 = vrot.lane.b32.xlu1 %v5891_v45, %s5056_s6  ;;  %878 = vrot.lane.b32.xlu0 %v5896_v14, %s5056_s6 }
 0x1d6   : > { %v705_v11 = vpop.permute.xlu1 %704  ;;  %v703_v17 = vpop.permute.xlu0 %702 }
 0x1d7   : > { %v6005_v26 = vsel %vm1096_vm10, %v1089_v46, %v705_v11  ;;  %v6008_v60 = vsel %vm1096_vm10, %v1088_v18, %v703_v17  ;;  %v927_v46 = vsel %vm926_vm0, %v5896_v14, %v8210_v21  ;;  %v8211_v11 = vld [vmem:[#allocation4_spill] sm:$0xff]  ;;  %v8216_v14 = vld [vmem:[#allocation17_spill] sm:$0xff] }
 0x1d8   : > { %884 = vrot.lane.b32.xlu1 %v5903_v33, %s5056_s6  ;;  %882 = vrot.lane.b32.xlu0 %v5019_v28, %s5056_s6  ;;  %v928_v18 = vsel %vm926_vm0, %v5891_v45, %v8211_v11  ;;  %v8212_v28 = vld [vmem:[#allocation9_spill] sm:$0xff] }
 0x1d9   : > { %v945_v17 = vsel %vm943_vm1, %v928_v18, %v8212_v28 }
 0x1da   : > { %v709_v12 = vpop.permute.xlu1 %708  ;;  %v707_v13 = vpop.permute.xlu0 %706  ;;  %v962_v21 = vsel %vm960_vm2, %v945_v17, %v8215_v56  ;;  %v8219_v56 = vld [vmem:[#allocation11_spill] sm:$0xff]  ;;  %v8220_v17 = vld [vmem:[#allocation30_spill] sm:$0xff] }
 0x1db   : > { %v6014_v20 = vsel %vm1096_vm10, %v1091_v47, %v709_v12  ;;  %v6017_v32 = vsel %vm1096_vm10, %v1090_v54, %v707_v13  ;;  %v8213_v47 = vld [vmem:[#allocation10_spill] sm:$0xff]  ;;  %v8214_v54 = vld [vmem:[#allocation3_spill] sm:$0xff] }
 0x1dc   : > { %888 = vrot.lane.b32.xlu1 %v5020_v29, %s5056_s6  ;;  %886 = vrot.lane.b32.xlu0 %v5021_v44, %s5056_s6  ;;  %v944_v12 = vsel %vm943_vm1, %v927_v46, %v8213_v47  ;;  %v930_v13 = vsel %vm926_vm0, %v5903_v33, %v8214_v54  ;;  %v979_v44 = vsel %vm977_vm3, %v962_v21, %v8217_v43  ;;  %v8224_v21 = vld [vmem:[#allocation40_spill] sm:$0xff] }
 0x1dd   : > { %v961_v45 = vsel %vm960_vm2, %v944_v12, %v8216_v14  ;;  %v947_v28 = vsel %vm943_vm1, %v930_v13, %v8219_v56  ;;  %v996_v47 = vsel %vm994_vm4, %v979_v44, %v8220_v17  ;;  %v8221_v12 = vld [vmem:[#allocation31_spill] sm:$0xff]  ;;  %v8225_v14 = vld [vmem:[#allocation25_spill] sm:$0xff] }
 0x1de   : > { %v713_v11 = vpop.permute.xlu1 %712  ;;  %v711_v29 = vpop.permute.xlu0 %710  ;;  %v978_v18 = vsel %vm977_vm3, %v961_v45, %v8218_v42  ;;  %v8222_v42 = vld [vmem:[#allocation18_spill] sm:$0xff] }
 0x1df   : > { %v6044_v46 = vsel %vm1096_vm10, %v5916_v22, %v713_v11  ;;  %v6048_v33 = vsel %vm1096_vm10, %v5919_v35, %v711_v29  ;;  %v995_v43 = vsel %vm994_vm4, %v978_v18, %v8221_v12  ;;  %v964_v22 = vsel %vm960_vm2, %v947_v28, %v8222_v42  ;;  %v8223_v35 = vld [vmem:[#allocation39_spill] sm:$0xff] }
 0x1e0   : > { %892 = vrot.lane.b32.xlu1 %v5922_v31, %s5056_s6  ;;  %890 = vrot.lane.b32.xlu0 %v5927_v3, %s5056_s6  ;;  %v1013_v54 = vsel %vm1011_vm5, %v996_v47, %v8223_v35  ;;  %v1012_v13 = vsel %vm1011_vm5, %v995_v43, %v8224_v21  ;;  %v981_v45 = vsel %vm977_vm3, %v964_v22, %v8225_v14  ;;  %v8227_v21 = vld [vmem:[#allocation41_spill] sm:$0xff] }
 0x1e1   : > { %v1030_v11 = vsel %vm1028_vm6, %v1013_v54, %v5701_v62  ;;  %v1029_v31 = vsel %vm1028_vm6, %v1012_v13, %v5703_v61  ;;  %v8226_v62 = vld [vmem:[#allocation32_spill] sm:$0xff]  ;;  %v8228_v13 = vld [vmem:[#allocation42_spill] sm:$0xff] }
 0x1e2   : > { %v717_v29 = vpop.permute.xlu1 %716  ;;  %v715_v3 = vpop.permute.xlu0 %714  ;;  %v1047_v56 = vsel %vm1045_vm7, %v1030_v11, %v5761_v19  ;;  %v1046_v28 = vsel %vm1045_vm7, %v1029_v31, %v5763_v23  ;;  %v998_v12 = vsel %vm994_vm4, %v981_v45, %v8226_v62  ;;  %v8229_v11 = vld [vmem:[#allocation5_spill] sm:$0xff]  ;;  %v8230_v31 = vld [vmem:[#allocation6_spill] sm:$0xff] }
 0x1e3   : > { %v6078_v17 = vsel %vm1096_vm10, %v5932_v25, %v717_v29  ;;  %v6082_v47 = vsel %vm1096_vm10, %v5935_v2, %v715_v3  ;;  %v1064_v61 = vsel %vm1062_vm8, %v1047_v56, %v5812_v30  ;;  %v1063_v19 = vsel %vm1062_vm8, %v1046_v28, %v5814_v57 }
 0x1e4   : > { %896 = vrot.lane.b32.xlu1 %v5938_v0, %s5056_s6  ;;  %894 = vrot.lane.b32.xlu0 %v5943_v53, %s5056_s6  ;;  %v1015_v23 = vsel %vm1011_vm5, %v998_v12, %v5480_v51  ;;  %v1081_v25 = vsel %vm1079_vm9, %v1064_v61, %v5863_v5  ;;  %v1080_v2 = vsel %vm1079_vm9, %v1063_v19, %v5865_v34 }
 0x1e5   : > { %v1032_v30 = vsel %vm1028_vm6, %v1015_v23, %v5709_v63  ;;  %v1098_v57 = vsel %vm1096_vm10, %v1081_v25, %v5947_v7  ;;  %v1097_v0 = vsel %vm1096_vm10, %v1080_v2, %v5949_v9 }
 0x1e6   : > { %v737_v53 = vpop.permute.xlu1 %736  ;;  %v735_v43 = vpop.permute.xlu0 %734  ;;  %v1049_v51 = vsel %vm1045_vm7, %v1032_v30, %v5769_v52 }
 0x1e7   : > { %v1115_v42 = vsel %vm1113_vm11, %v1098_v57, %v737_v53  ;;  %v1114_v5 = vsel %vm1113_vm11, %v1097_v0, %v735_v43  ;;  %v1066_v34 = vsel %vm1062_vm8, %v1049_v51, %v5820_v49 }
 0x1e8   : > { %900 = vrot.lane.b32.xlu1 %v5952_v27, %s5056_s6  ;;  %898 = vrot.lane.b32.xlu0 %v5957_v4, %s5056_s6  ;;  %v1083_v63 = vsel %vm1079_vm9, %v1066_v34, %v5871_v6 }
 0x1e9   : > { %v1100_v7 = vsel %vm1096_vm10, %v1083_v63, %v5961_v48 }
 0x1ea   : > { %v741_v52 = vpop.permute.xlu1 %740  ;;  %v739_v9 = vpop.permute.xlu0 %738 }
 0x1eb   : > { %v1117_v22 = vsel %vm1113_vm11, %v1100_v7, %v741_v52  ;;  %v1116_v35 = vsel %vm1113_vm11, %v5964_v58, %v739_v9 }
 0x1ec   : > { %904 = vrot.lane.b32.xlu1 %v5967_v15, %s5056_s6  ;;  %902 = vrot.lane.b32.xlu0 %v5972_v59, %s5056_s6 }
 0x1ee   : > { %v745_v49 = vpop.permute.xlu1 %744  ;;  %v743_v27 = vpop.permute.xlu0 %742 }
 0x1ef   : > { %v1119_v6 = vsel %vm1113_vm11, %v5977_v55, %v745_v49  ;;  %v1118_v4 = vsel %vm1113_vm11, %v5980_v50, %v743_v27 }
 0x1f0   : > { %908 = vrot.lane.b32.xlu1 %v5983_v8, %s5056_s6  ;;  %906 = vrot.lane.b32.xlu0 %v5988_v1, %s5056_s6 }
 0x1f2   : > { %v749_v48 = vpop.permute.xlu1 %748  ;;  %v747_v58 = vpop.permute.xlu0 %746 }
 0x1f3   : > { %v1121_v15 = vsel %vm1113_vm11, %v5994_v24, %v749_v48  ;;  %v1120_v59 = vsel %vm1113_vm11, %v5998_v10, %v747_v58 }
 0x1f4   : > { %1199 = vrot.lane.b32.xlu1 %v979_v44, %s5057_s7  ;;  %1197 = vrot.lane.b32.xlu0 %v978_v18, %s5057_s7 }
 0x1f6   : > { %v753_v55 = vpop.permute.xlu1 %752  ;;  %v751_v50 = vpop.permute.xlu0 %750 }
 0x1f7   : > { %v1123_v8 = vsel %vm1113_vm11, %v6005_v26, %v753_v55  ;;  %v1122_v1 = vsel %vm1113_vm11, %v6008_v60, %v751_v50 }
 0x1f8   : > { %1203 = vrot.lane.b32.xlu1 %v981_v45, %s5057_s7  ;;  %1201 = vrot.lane.b32.xlu0 %v5470_v16, %s5057_s7 }
 0x1fa   : > { %v757_v24 = vpop.permute.xlu1 %756  ;;  %v755_v10 = vpop.permute.xlu0 %754 }
 0x1fb   : > { %v1125_v44 = vsel %vm1113_vm11, %v6014_v20, %v757_v24  ;;  %v1124_v18 = vsel %vm1113_vm11, %v6017_v32, %v755_v10 }
 0x1fc   : > { %1207 = vrot.lane.b32.xlu1 %v5499_v36, %s5057_s7  ;;  %1205 = vrot.lane.b32.xlu0 %v5503_v37, %s5057_s7 }
 0x1fe   : > { %v761_v60 = vpop.permute.xlu1 %760  ;;  %v759_v26 = vpop.permute.xlu0 %758 }
 0x1ff   : > { %v1127_v54 = vsel %vm1113_vm11, %v6044_v46, %v761_v60  ;;  %v1126_v16 = vsel %vm1113_vm11, %v6048_v33, %v759_v26 }
 0x200   : > { %1211 = vrot.lane.b32.xlu1 %v5535_v38, %s5057_s7  ;;  %1209 = vrot.lane.b32.xlu0 %v5539_v39, %s5057_s7 }
 0x202   : > { %v765_v20 = vpop.permute.xlu1 %764  ;;  %v763_v32 = vpop.permute.xlu0 %762 }
 0x203   : > { %v1129_v36 = vsel %vm1113_vm11, %v6078_v17, %v765_v20  ;;  %v1128_v37 = vsel %vm1113_vm11, %v6082_v47, %v763_v32  ;;  %v8231_v17 = vld [vmem:[#allocation33_spill] sm:$0xff]  ;;  %v8232_v47 = vld [vmem:[#allocation34_spill] sm:$0xff] }
 0x204   : > { %1215 = vrot.lane.b32.xlu1 %v5573_v40, %s5057_s7  ;;  %1213 = vrot.lane.b32.xlu0 %v5577_v41, %s5057_s7 }
 0x206   : > { %v785_v46 = vpop.permute.xlu1 %784  ;;  %v783_v38 = vpop.permute.xlu0 %782 }
 0x207   : > { %v6173_v33 = vsel %vm1130_vm12, %v1115_v42, %v785_v46  ;;  %v6176_v39 = vsel %vm1130_vm12, %v1114_v5, %v783_v38 }
 0x208   : > { %1219 = vrot.lane.b32.xlu1 %v8227_v21, %s5057_s7  ;;  %1217 = vrot.lane.b32.xlu0 %v8228_v13, %s5057_s7 }
 0x20a   : > { %v789_v14 = vpop.permute.xlu1 %788  ;;  %v787_v40 = vpop.permute.xlu0 %786 }
 0x20b   : > { %v1134_v45 = vsel %vm1130_vm12, %v1117_v22, %v789_v14  ;;  %v1133_v41 = vsel %vm1130_vm12, %v1116_v35, %v787_v40 }
 0x20c   : > { %1223 = vrot.lane.b32.xlu1 %v8229_v11, %s5057_s7  ;;  %1221 = vrot.lane.b32.xlu0 %v8230_v31, %s5057_s7 }
 0x20e   : > { %v793_v29 = vpop.permute.xlu1 %792  ;;  %v791_v3 = vpop.permute.xlu0 %790 }
 0x20f   : > { %v1136_v56 = vsel %vm1130_vm12, %v1119_v6, %v793_v29  ;;  %v1135_v28 = vsel %vm1130_vm12, %v1118_v4, %v791_v3 }
 0x210   : > { %1227 = vrot.lane.b32.xlu1 %v8231_v17, %s5057_s7  ;;  %1225 = vrot.lane.b32.xlu0 %v8232_v47, %s5057_s7 }
 0x212   : > { %v797_v62 = vpop.permute.xlu1 %796  ;;  %v795_v12 = vpop.permute.xlu0 %794 }
 0x213   : > { %v1138_v61 = vsel %vm1130_vm12, %v1121_v15, %v797_v62  ;;  %v1137_v19 = vsel %vm1130_vm12, %v1120_v59, %v795_v12 }
 0x216   : > { %v801_v23 = vpop.permute.xlu1 %800  ;;  %v799_v25 = vpop.permute.xlu0 %798 }
 0x217   : > { %v1140_v2 = vsel %vm1130_vm12, %v1123_v8, %v801_v23  ;;  %v1139_v30 = vsel %vm1130_vm12, %v1122_v1, %v799_v25 }
 0x21a   : > { %v805_v57 = vpop.permute.xlu1 %804  ;;  %v803_v0 = vpop.permute.xlu0 %802 }
 0x21b   : > { %v1142_v53 = vsel %vm1130_vm12, %v1125_v44, %v805_v57  ;;  %v1141_v43 = vsel %vm1130_vm12, %v1124_v18, %v803_v0 }
 0x21e   : > { %v809_v51 = vpop.permute.xlu1 %808  ;;  %v807_v42 = vpop.permute.xlu0 %806 }
 0x21f   : > { %v1144_v5 = vsel %vm1130_vm12, %v1127_v54, %v809_v51  ;;  %v1143_v34 = vsel %vm1130_vm12, %v1126_v16, %v807_v42 }
 0x222   : > { %v813_v63 = vpop.permute.xlu1 %812  ;;  %v811_v7 = vpop.permute.xlu0 %810 }
 0x223   : > { %v1146_v52 = vsel %vm1130_vm12, %v1129_v36, %v813_v63  ;;  %v1145_v9 = vsel %vm1130_vm12, %v1128_v37, %v811_v7 }
 0x226   : > { %v6204_v22 = vpop.permute.xlu1 %832  ;;  %v6206_v35 = vpop.permute.xlu0 %830 }
 0x22a   : > { %v837_v49 = vpop.permute.xlu1 %836  ;;  %v835_v27 = vpop.permute.xlu0 %834 }
 0x22b   : > { %v1151_v6 = vsel %vm1147_vm13, %v1134_v45, %v837_v49  ;;  %v1150_v4 = vsel %vm1147_vm13, %v1133_v41, %v835_v27  ;;  %v6271_v49 = vld [vmem:[%s8121_s1] ss:$0 sm:$0xff] }
 0x22e   : > { %v841_v48 = vpop.permute.xlu1 %840  ;;  %v839_v58 = vpop.permute.xlu0 %838 }
 0x22f   : > { %v1153_v15 = vsel %vm1147_vm13, %v1136_v56, %v841_v48  ;;  %v1152_v59 = vsel %vm1147_vm13, %v1135_v28, %v839_v58 }
 0x232   : > { %v845_v55 = vpop.permute.xlu1 %844  ;;  %v843_v50 = vpop.permute.xlu0 %842 }
 0x233   : > { %v1155_v8 = vsel %vm1147_vm13, %v1138_v61, %v845_v55  ;;  %v1154_v1 = vsel %vm1147_vm13, %v1137_v19, %v843_v50 }
 0x236   : > { %v849_v24 = vpop.permute.xlu1 %848  ;;  %v847_v10 = vpop.permute.xlu0 %846 }
 0x237   : > { %v1157_v44 = vsel %vm1147_vm13, %v1140_v2, %v849_v24  ;;  %v1156_v18 = vsel %vm1147_vm13, %v1139_v30, %v847_v10 }
 0x23a   : > { %v853_v60 = vpop.permute.xlu1 %852  ;;  %v851_v26 = vpop.permute.xlu0 %850 }
 0x23b   : > { %v1159_v54 = vsel %vm1147_vm13, %v1142_v53, %v853_v60  ;;  %v1158_v16 = vsel %vm1147_vm13, %v1141_v43, %v851_v26 }
 0x23e   : > { %v857_v20 = vpop.permute.xlu1 %856  ;;  %v855_v32 = vpop.permute.xlu0 %854 }
 0x23f   : > { %v1161_v36 = vsel %vm1147_vm13, %v1144_v5, %v857_v20  ;;  %v1160_v37 = vsel %vm1147_vm13, %v1143_v34, %v855_v32 }
 0x242   : > { %v861_v46 = vpop.permute.xlu1 %860  ;;  %v859_v38 = vpop.permute.xlu0 %858 }
 0x243   : > { %v1163_v21 = vsel %vm1147_vm13, %v1146_v52, %v861_v46  ;;  %v1162_v13 = vsel %vm1147_vm13, %v1145_v9, %v859_v38  ;;  %v1149_v52 = vsel %vm1147_vm13, %v6173_v33, %v6204_v22  ;;  %v1148_v9 = vsel %vm1147_vm13, %v6176_v39, %v6206_v35 }
 0x246   : > { %v881_v14 = vpop.permute.xlu1 %880  ;;  %v879_v40 = vpop.permute.xlu0 %878 }
 0x247   : > { %v1166_v27 = vsel %vm1164_vm14, %v1149_v52, %v881_v14 }
 0x24a   : > { %v885_v45 = vpop.permute.xlu1 %884  ;;  %v883_v41 = vpop.permute.xlu0 %882 }
 0x24b   : > { %v1168_v11 = vsel %vm1164_vm14, %v1151_v6, %v885_v45  ;;  %v6224_v31 = vsel %vm1164_vm14, %v1150_v4, %v883_v41  ;;  %v1165_v6 = vsel %vm1164_vm14, %v1148_v9, %v879_v40 }
 0x24e   : > { %v889_v29 = vpop.permute.xlu1 %888  ;;  %v887_v3 = vpop.permute.xlu0 %886 }
 0x24f   : > { %v6227_v56 = vsel %vm1164_vm14, %v1153_v15, %v889_v29  ;;  %v6230_v28 = vsel %vm1164_vm14, %v1152_v59, %v887_v3  ;;  %v5058_v29 = vmov 683565275  }
 0x252   : > { %v893_v17 = vpop.permute.xlu1 %892  ;;  %v891_v47 = vpop.permute.xlu0 %890 }
 0x253   : > { %v6233_v62 = vsel %vm1164_vm14, %v1155_v8, %v893_v17  ;;  %v6236_v12 = vsel %vm1164_vm14, %v1154_v1, %v891_v47 }
 0x256   : > { %v897_v61 = vpop.permute.xlu1 %896  ;;  %v895_v19 = vpop.permute.xlu0 %894 }
 0x257   : > { %v6239_v23 = vsel %vm1164_vm14, %v1157_v44, %v897_v61  ;;  %v6242_v25 = vsel %vm1164_vm14, %v1156_v18, %v895_v19  ;;  %v8131_v61 = vmov 2475754826  }
 0x25a   : > { %v901_v2 = vpop.permute.xlu1 %900  ;;  %v899_v30 = vpop.permute.xlu0 %898 }
 0x25b   : > { %v6245_v57 = vsel %vm1164_vm14, %v1159_v54, %v901_v2  ;;  %v6248_v0 = vsel %vm1164_vm14, %v1158_v16, %v899_v30  ;;  %v8133_v2 = vmov 2131351028  }
 0x25e   : > { %v905_v53 = vpop.permute.xlu1 %904  ;;  %v903_v43 = vpop.permute.xlu0 %902 }
 0x25f   : > { %v6251_v51 = vsel %vm1164_vm14, %v1161_v36, %v905_v53  ;;  %v6254_v42 = vsel %vm1164_vm14, %v1160_v37, %v903_v43  ;;  %v8138_v53 = vmov 2102212464  }
 0x262   : > { %v909_v5 = vpop.permute.xlu1 %908  ;;  %v907_v34 = vpop.permute.xlu0 %906 }
 0x263   : > { %v6257_v63 = vsel %vm1164_vm14, %v1163_v21, %v909_v5  ;;  %v6260_v7 = vsel %vm1164_vm14, %v1162_v13, %v907_v34  ;;  %v5062_v5 = vmov 920167782  }
 0x266   : > { %v1200_v4 = vpop.permute.xlu1 %1199  ;;  %v1198_v48 = vpop.permute.xlu0 %1197 }
 0x267   : > { %v6276_v58 = vsel %vm8137_vm15, %v1166_v27, %v1200_v4  ;;  %v6279_v33 = vsel %vm8137_vm15, %v1165_v6, %v1198_v48  ;;  %v8135_v48 = vmov 1326507024  }
 0x268   : > { %v6283_v39 = vmul.f32 %v6271_v49, %v6276_v58  ;;  %v6287_v22 = vmul.f32 %v6271_v49, %v6279_v33 }
 0x26a   : > { %v1389_v35 = vand.u32 2147483647, %v6283_v39  ;;  %v1392_v15 = vand.u32 2139095040, %v6283_v39  ;;  %v1204_v59 = vpop.permute.xlu1 %1203  ;;  %v1285_v55 = vand.u32 2147483647, %v6287_v22  ;;  %v1288_v50 = vand.u32 2139095040, %v6287_v22 }
 0x26b   : > { %v6294_v1 = vsel %vm8137_vm15, %v1168_v11, %v1204_v59 }
 0x26c   : > { %v1393_v8 = vshrl.u32 %v1392_v15, 23  ;;  %v1396_v24 = vand.u32 8388607, %v1389_v35  ;;  %v1289_v10 = vshrl.u32 %v1288_v50, 23  ;;  %v1292_v44 = vand.u32 8388607, %v1285_v55 }
 0x26d   : > { %v6302_v18 = vmul.f32 %v6271_v49, %v6294_v1 }
 0x26e   : > { %v4731_v60 = vadd.s32 4294967169, %v1393_v8  ;;  %v4727_v26 = vadd.s32 4294967169, %v1289_v10  ;;  %v1397_v20 = vor.u32 8388608, %v1396_v24  ;;  %v1293_v32 = vor.u32 8388608, %v1292_v44 }
 0x26f   : > { %v1600_v16 = vand.u32 2139095040, %v6302_v18  ;;  %v8130_v45 = vand.u32 2147483647, %v6302_v18 }
 0x270   : > { %v1399_v54 = vadd.s32 1, %v4731_v60  ;;  %v1295_v36 = vadd.s32 1, %v4727_v26  ;;  %v6305_v14 = vshll.u32 %v1397_v20, 8  ;;  %v6307_v40 = vshll.u32 %v1293_v32, 8 }
 0x271   : > { %v1601_v37 = vshrl.u32 %v1600_v16, 23 }
 0x272   : > { %vm1400_vm0 = vcmp.gt.s32.totalorder %v1399_v54, 0  ;;  %vm1296_vm1 = vcmp.gt.s32.totalorder %v1295_v36, 0 }
 0x273   : > { %v1401_v46 = vsel %vm1400_vm0, %v1399_v54, 0  ;;  %v1297_v13 = vsel %vm1296_vm1, %v1295_v36, 0  ;;  %v6310_v41 = vadd.s32 4294967169, %v1601_v37  ;;  %vm6409_vm0 = vcmp.le.f32.partialorder %v1389_v35, 0.7853982 }
 0x274   : > { %v1402_v38 = vshrl.u32 %v1401_v46, 5  ;;  %v1403_v21 = vand.u32 31, %v1401_v46  ;;  %v6313_v17 = vshrl.u32 %v1297_v13, 5  ;;  %v1299_v47 = vand.u32 31, %v1297_v13 }
 0x275   : > { %vm1391_vm1 = vcmp.lt.s32.totalorder %v6283_v39, 0 }
 0x276   : > { %v1404_v11 = vsub.s32 32, %v1403_v21  ;;  %v1406_v3 = vshll.u32 %v5058_v29, %v1403_v21  ;;  %v1409_v19 = vshll.u32 %v8131_v61, %v1403_v21  ;;  %v1412_v30 = vshll.u32 %v8133_v2, %v1403_v21 }
 0x277   : > { %v1415_v43 = vshll.u32 %v8138_v53, %v1403_v21  ;;  %v1418_v34 = vshll.u32 %v5062_v5, %v1403_v21  ;;  %vm1421_vm2 = vcmp.lt.s32.totalorder %v1402_v38, 1  ;;  %vm1422_vm3 = vcmp.lt.s32.totalorder %v1402_v38, 2 }
 0x278   : > { %v1407_v52 = vshrl.u32 %v8131_v61, %v1404_v11  ;;  %v1410_v9 = vshrl.u32 %v8133_v2, %v1404_v11  ;;  %v1413_v27 = vshrl.u32 %v8138_v53, %v1404_v11  ;;  %v1405_v6 = vshrl.u32 %v5058_v29, %v1404_v11 }
 0x279   : > { %v1416_v4 = vshrl.u32 %v5062_v5, %v1404_v11  ;;  %v1419_v15 = vshrl.u32 %v8135_v48, %v1404_v11  ;;  %v1300_v24 = vsub.s32 32, %v1299_v47  ;;  %vm1423_vm4 = vcmp.lt.s32.totalorder %v1402_v38, 3 }
 0x27a   : > { %v1408_v59 = vor.u32 %v1407_v52, %v1406_v3  ;;  %v1411_v50 = vor.u32 %v1410_v9, %v1409_v19  ;;  %v1414_v8 = vor.u32 %v1413_v27, %v1412_v30  ;;  %vm1424_vm5 = vcmp.lt.s32.totalorder %v1402_v38, 4 }
 0x27b   : > { %v1417_v10 = vor.u32 %v1416_v4, %v1415_v43  ;;  %v1420_v44 = vor.u32 %v1419_v15, %v1418_v34  ;;  %v1302_v37 = vshll.u32 %v5058_v29, %v1299_v47  ;;  %v1303_v13 = vshrl.u32 %v8131_v61, %v1300_v24 }
 0x27c   : > { %v1425_v60 = vsel %vm1421_vm2, %v1405_v6, %v1408_v59  ;;  %v1426_v26 = vsel %vm1424_vm5, %v1414_v8, 2102212464  ;;  %v1429_v54 = vsel %vm1421_vm2, %v1408_v59, %v1411_v50  ;;  %v1433_v16 = vsel %vm1421_vm2, %v1411_v50, %v1414_v8 }
 0x27d   : > { %v1427_v20 = vsel %vm1423_vm4, %v1411_v50, %v1426_v26  ;;  %v1430_v32 = vsel %vm1424_vm5, %v1417_v10, 920167782  ;;  %v1434_v36 = vsel %vm1424_vm5, %v1420_v44, 1326507024  ;;  %v1305_v11 = vshll.u32 %v8131_v61, %v1299_v47 }
 0x27e   : > { %v1431_v46 = vsel %vm1423_vm4, %v1414_v8, %v1430_v32  ;;  %v1435_v21 = vsel %vm1423_vm4, %v1417_v10, %v1434_v36  ;;  %v1428_v3 = vsel %vm1422_vm3, %v1425_v60, %v1427_v20  ;;  %v1306_v43 = vshrl.u32 %v8133_v2, %v1300_v24 }
 0x27f   : > { %v1432_v19 = vsel %vm1422_vm3, %v1429_v54, %v1431_v46  ;;  %v1436_v30 = vsel %vm1422_vm3, %v1433_v16, %v1435_v21  ;;  %v1304_v6 = vor.u32 %v1303_v13, %v1302_v37  ;;  %v1308_v15 = vshll.u32 %v8133_v2, %v1299_v47 }
 0x280   : > { %v6336_v34 = vmul.u32.u64.low %v6305_v14, %v1436_v30  ;;  %v6337_v52 = vmul.u32.u64.high %v6305_v14, %v1436_v30, %v6336_v34  ;;  %v6340_v9 = vmul.u32.u64.low %v6305_v14, %v1432_v19  ;;  %v6341_v27 = vmul.u32.u64.high %v6305_v14, %v1432_v19, %v6340_v9 }
 0x281   : > { %v1307_v4 = vor.u32 %v1306_v43, %v1305_v11  ;;  %v1309_v59 = vshrl.u32 %v8138_v53, %v1300_v24  ;;  %v1301_v38 = vshrl.u32 %v5058_v29, %v1300_v24  ;;  %v1311_v50 = vshll.u32 %v8138_v53, %v1299_v47 }
 0x282   : > { %v1312_v8 = vshrl.u32 %v5062_v5, %v1300_v24  ;;  %v1315_v10 = vshrl.u32 %v8135_v48, %v1300_v24  ;;  %v1444_v44 = vmul.u32 %v6305_v14, %v1428_v3  ;;  %v1314_v26 = vshll.u32 %v5062_v5, %v1299_v47 }
 0x283   : > { %v1310_v60 = vor.u32 %v1309_v59, %v1308_v15  ;;  %vm1317_vm6 = vcmp.lt.s32.totalorder %v6313_v17, 1  ;;  %vm1446_vm7 = vc.u32 %v6337_v52, %v6340_v9  ;;  %v1447_v54 = vadd.s32 1, %v6341_v27 }
 0x284   : > { %v1313_v16 = vor.u32 %v1312_v8, %v1311_v50  ;;  %vm1318_vm8 = vcmp.lt.s32.totalorder %v6313_v17, 2  ;;  %v1316_v20 = vor.u32 %v1315_v10, %v1314_v26  ;;  %vm1319_vm9 = vcmp.lt.s32.totalorder %v6313_v17, 3 }
 0x285   : > { %vm1320_vm10 = vcmp.lt.s32.totalorder %v6313_v17, 4  ;;  %v1325_v24 = vsel %vm1317_vm6, %v1304_v6, %v1307_v4  ;;  %v1448_v14 = vsel %vm1446_vm7, %v1447_v54, %v6341_v27  ;;  %v1329_v36 = vsel %vm1317_vm6, %v1307_v4, %v1310_v60  ;;  %v1208_v17 = vpop.permute.xlu1 %1207 }
 0x286   : > { %v1322_v32 = vsel %vm1320_vm10, %v1310_v60, 2102212464  ;;  %v1326_v47 = vsel %vm1320_vm10, %v1313_v16, 920167782  ;;  %v1449_v37 = vadd.s32 %v1448_v14, %v1444_v44  ;;  %v1321_v46 = vsel %vm1317_vm6, %v1301_v38, %v1304_v6  ;;  %v4597_v38 = vld [vmem:[%s8122_s2] sm:$0x1] }
 0x287   : > { %v1327_v21 = vsel %vm1319_vm9, %v1310_v60, %v1326_v47  ;;  %v1330_v13 = vsel %vm1320_vm10, %v1316_v20, 1326507024  ;;  %v1323_v11 = vsel %vm1319_vm9, %v1307_v4, %v1322_v32  ;;  %v1607_v30 = vadd.s32 1, %v6310_v41  ;;  %v1202_v4 = vpop.permute.xlu0 %1201 }
 0x288   : > { %v1328_v3 = vsel %vm1318_vm8, %v1325_v24, %v1327_v21  ;;  %v1331_v19 = vsel %vm1319_vm9, %v1313_v16, %v1330_v13  ;;  %v1450_v43 = vadd.s32 536870912, %v1449_v37  ;;  %v4601_v50 = vlaneseq }
 0x289   : > { %v1332_v34 = vsel %vm1318_vm8, %v1329_v36, %v1331_v19  ;;  %v6366_v27 = vmul.u32.u64.low %v6307_v40, %v1328_v3  ;;  %v6367_v15 = vmul.u32.u64.high %v6307_v40, %v1328_v3, %v6366_v27  ;;  %vm1608_vm11 = vcmp.gt.s32.totalorder %v1607_v30, 0 }
 0x28a   : > { %v6370_v59 = vmul.u32.u64.low %v6307_v40, %v1332_v34  ;;  %v6371_v6 = vmul.u32.u64.high %v6307_v40, %v1332_v34, %v6370_v59  ;;  %v1451_v41 = vshrl.u32 %v1450_v43, 30  ;;  %v1324_v8 = vsel %vm1318_vm8, %v1321_v46, %v1323_v11 }
 0x28b   : > { %v1609_v10 = vsel %vm1608_vm11, %v1607_v30, 0  ;;  %v1604_v44 = vand.u32 8388607, %v8130_v45  ;;  %v1343_v26 = vadd.s32 1, %v6367_v15  ;;  %v6383_v16 = vsel %vm8137_vm15, %v6224_v31, %v1202_v4 }
 0x28c   : > { %v1452_v60 = vshll.u32 %v1451_v41, 30  ;;  %v1611_v54 = vand.u32 31, %v1609_v10  ;;  %vm4598_vm12 = vcmp.eq.s32.totalorder %v4597_v38, 0  ;;  %vm4599_vm13 = vcmp.eq.s32.totalorder %v4597_v38, 1 }
 0x28d   : > { %v1340_v20 = vmul.u32 %v6307_v40, %v1324_v8  ;;  %vm1342_vm14 = vc.u32 %v6371_v6, %v6366_v27  ;;  %v6387_v24 = vshrl.u32 %v4601_v50, 7  ;;  %v1605_v36 = vor.u32 8388608, %v1604_v44 }
 0x28e   : > { %v6389_v14 = vsub.s32 %v1449_v37, %v1452_v60  ;;  %v1344_v32 = vsel %vm1342_vm14, %v1343_v26, %v6367_v15  ;;  %v6394_v46 = vmul.f32 %v6271_v49, %v6383_v16  ;;  %v1475_v21 = vsub.s32 4, %v1451_v41 }
 0x28f   : > { %v1345_v47 = vadd.s32 %v1344_v32, %v1340_v20  ;;  %v1612_v13 = vsub.s32 32, %v1611_v54  ;;  %v6399_v40 = vsel %vm8137_vm15, %v6227_v56, %v1208_v17  ;;  %v5064_v11 = vmov 0  }
 0x290   : > { %v1455_v31 = vsub.s32 0, %v6389_v14  ;;  %v6401_v3 = vsel %vm4599_vm13, 1, %v5064_v11  ;;  %v6404_v37 = vsel %vm4598_vm12, 1, %v5064_v11  ;;  %v6417_v15 = vshll.u32 %v1605_v36, 8 }
 0x291   : > { %v1346_v19 = vadd.s32 536870912, %v1345_v47  ;;  %v6422_v4 = vmul.f32 %v6271_v49, %v6399_v40  ;;  %v1445_v35 = vadd.s32 %v6340_v9, %v6337_v52  ;;  %v1476_v50 = vsel %vm1391_vm1, %v1475_v21, %v1451_v41 }
 0x292   : > { %v4732_v56 = vmin.u32 %v1455_v31, %v6389_v14  ;;  %v1615_v8 = vshrl.u32 %v8131_v61, %v1612_v13  ;;  %v6430_v44 = vadd.s32 %v6366_v27, %v6371_v6  ;;  %v6433_v26 = vshrl.u32 %v1609_v10, 5 }
 0x293   : > { %v6415_v34 = vshrl.u32 %v1346_v19, 30  ;;  %v1496_v20 = vand.u32 2139095040, %v6394_v46  ;;  %v1614_v32 = vshll.u32 %v5058_v29, %v1611_v54  ;;  %v1618_v52 = vshrl.u32 %v8133_v2, %v1612_v13 }
 0x294   : > { %v1457_v38 = vclz %v4732_v56  ;;  %v1621_v9 = vshrl.u32 %v8138_v53, %v1612_v13  ;;  %v6441_v41 = vsel %vm6409_vm0, 0, %v1476_v50  ;;  %v1617_v27 = vshll.u32 %v8131_v61, %v1611_v54 }
 0x295   : > { %v1348_v60 = vshll.u32 %v6415_v34, 30  ;;  %v1624_v6 = vshrl.u32 %v5062_v5, %v1612_v13  ;;  %v1613_v10 = vshrl.u32 %v5058_v29, %v1612_v13  ;;  %v1616_v31 = vor.u32 %v1615_v8, %v1614_v32 }
 0x296   : > { %v4733_v17 = vadd.s32 4294967294, %v1457_v38  ;;  %v1620_v21 = vshll.u32 %v8133_v2, %v1611_v54  ;;  %v1623_v56 = vshll.u32 %v8138_v53, %v1611_v54  ;;  %v1627_v38 = vshrl.u32 %v8135_v48, %v1612_v13 }
 0x297   : > { %v6443_v36 = vsub.s32 %v1345_v47, %v1348_v60  ;;  %v1619_v60 = vor.u32 %v1618_v52, %v1617_v27  ;;  %v1371_v30 = vsub.s32 4, %v6415_v34  ;;  %v1626_v8 = vshll.u32 %v5062_v5, %v1611_v54 }
 0x298   : > { %vm4734_vm2 = vcmp.lt.s32.totalorder %v4733_v17, 0  ;;  %v1622_v45 = vor.u32 %v1621_v9, %v1620_v21  ;;  %v1625_v59 = vor.u32 %v1624_v6, %v1623_v56  ;;  %vm1629_vm3 = vcmp.lt.s32.totalorder %v6433_v26, 1 }
 0x299   : > { %v1460_v11 = vsel %vm4734_vm2, 0, %v4733_v17  ;;  %v1351_v19 = vsub.s32 0, %v6443_v36  ;;  %vm1287_vm4 = vcmp.lt.s32.totalorder %v6287_v22, 0  ;;  %v1628_v48 = vor.u32 %v1627_v38, %v1626_v8 }
 0x29a   : > { %v1461_v50 = vsub.s32 32, %v1460_v11  ;;  %v1465_v47 = vsub.s32 4294967266, %v1460_v11  ;;  %v1462_v32 = vshll.u32 %v6389_v14, %v1460_v11  ;;  %vm1630_vm5 = vcmp.lt.s32.totalorder %v6433_v26, 2 }
 0x29b   : > { %v4728_v61 = vmin.u32 %v1351_v19, %v6443_v36  ;;  %vm1632_vm6 = vcmp.lt.s32.totalorder %v6433_v26, 4  ;;  %v1637_v54 = vsel %vm1629_vm3, %v1616_v31, %v1619_v60  ;;  %vm1631_vm7 = vcmp.lt.s32.totalorder %v6433_v26, 3 }
 0x29c   : > { %v1463_v17 = vshrl.u32 %v1445_v35, %v1461_v50  ;;  %v1466_v2 = vadd.s32 127, %v1465_v47  ;;  %v1634_v27 = vsel %vm1632_vm6, %v1622_v45, 2102212464  ;;  %v1633_v35 = vsel %vm1629_vm3, %v1613_v10, %v1616_v31 }
 0x29d   : > { %v1353_v13 = vclz %v4728_v61  ;;  %v1638_v61 = vsel %vm1632_vm6, %v1625_v59, 920167782  ;;  %vm6471_vm8 = vcmp.le.f32.partialorder %v1285_v55, 0.7853982  ;;  %v1635_v21 = vsel %vm1631_vm7, %v1619_v60, %v1634_v27 }
 0x29e   : > { %v1464_v52 = vor.u32 %v1463_v17, %v1462_v32  ;;  %v1467_v9 = vshll.u32 %v1466_v2, 23  ;;  %v1639_v11 = vsel %vm1631_vm7, %v1622_v45, %v1638_v61  ;;  %v1641_v19 = vsel %vm1629_vm3, %v1619_v60, %v1622_v45 }
 0x29f   : > { %v4729_v14 = vadd.s32 4294967294, %v1353_v13  ;;  %v1640_v10 = vsel %vm1630_vm5, %v1637_v54, %v1639_v11  ;;  %v1642_v31 = vsel %vm1632_vm6, %v1628_v48, 1326507024  ;;  %v1497_v55 = vshrl.u32 %v1496_v20, 23 }
 0x2a0   : > { %v1468_v6 = vor.u32 4788187, %v1467_v9  ;;  %v1471_v56 = vcvt.s32.f32 %v1464_v52  ;;  %v1643_v47 = vsel %vm1631_vm7, %v1625_v59, %v1642_v31  ;;  %v6504_v31 = vand.u32 3, %v6441_v41 }
 0x2a1   : > { %vm4730_vm9 = vcmp.lt.s32.totalorder %v4729_v14, 0  ;;  %v1644_v13 = vsel %vm1630_vm5, %v1641_v19, %v1643_v47  ;;  %v4735_v9 = vadd.s32 4294967169, %v1497_v55  ;;  %v1636_v19 = vsel %vm1630_vm5, %v1633_v35, %v1635_v21 }
 0x2a2   : > { %v1469_v38 = vand.u32 2147483647, %v1468_v6  ;;  %v1356_v50 = vsel %vm4730_vm9, 0, %v4729_v14  ;;  %v6485_v60 = vmul.u32.u64.low %v6417_v15, %v1644_v13  ;;  %v6486_v52 = vmul.u32.u64.high %v6417_v15, %v1644_v13, %v6485_v60 }
 0x2a3   : > { %v1357_v8 = vsub.s32 32, %v1356_v50  ;;  %v1358_v32 = vshll.u32 %v6443_v36, %v1356_v50  ;;  %v1361_v17 = vsub.s32 4294967266, %v1356_v50  ;;  %v1482_v36 = vadd.s32 3, %v6441_v41 }
 0x2a4   : > { %v1472_v45 = vmul.f32 %v1471_v56, %v1469_v38  ;;  %v6490_v54 = vmul.u32.u64.low %v6417_v15, %v1640_v10  ;;  %v6491_v59 = vmul.u32.u64.high %v6417_v15, %v1640_v10, %v6490_v54  ;;  %v1372_v14 = vsel %vm1287_vm4, %v1371_v30, %v6415_v34 }
 0x2a5   : > { %v1359_v27 = vshrl.u32 %v6430_v44, %v1357_v8  ;;  %v1362_v48 = vadd.s32 127, %v1361_v17  ;;  %v1503_v61 = vadd.s32 1, %v4735_v9  ;;  %v8237_v44 = vand.u32 2147483647, %v6394_v46 }
 0x2a6   : > { %v1473_v20 = vxor.u32 2147483648, %v1472_v45  ;;  %vm1654_vm10 = vc.u32 %v6486_v52, %v6490_v54  ;;  %v1374_v26 = vsel %vm6471_vm8, 0, %v1372_v14  ;;  %v1655_v35 = vadd.s32 1, %v6491_v59 }
 0x2a7   : > { %v1360_v6 = vor.u32 %v1359_v27, %v1358_v32  ;;  %v1363_v11 = vshll.u32 %v1362_v48, 23  ;;  %v1500_v56 = vand.u32 8388607, %v8237_v44  ;;  %vm1504_vm11 = vcmp.gt.s32.totalorder %v1503_v61, 0 }
 0x2a8   : > { %v1474_v10 = vsel %vm1391_vm1, %v1473_v20, %v1472_v45  ;;  %v6513_v21 = vand.u32 3, %v1482_v36  ;;  %v1652_v38 = vmul.u32 %v6417_v15, %v1636_v19  ;;  %v1505_v41 = vsel %vm1504_vm11, %v1503_v61, 0 }
 0x2a9   : > { %v1477_v30 = vsel %vm6409_vm0, %v6283_v39, %v1474_v10  ;;  %v1364_v34 = vor.u32 4788187, %v1363_v11  ;;  %v1367_v47 = vcvt.s32.f32 %v1360_v6  ;;  %v1656_v55 = vsel %vm1654_vm10, %v1655_v35, %v6491_v59 }
 0x2aa   : > { %4952 = vcosq.f32 %v1477_v30  ;;  %v8238_v43 = vsub.s32 0, %v6387_v24  ;;  %v1378_v32 = vadd.s32 3, %v1374_v26  ;;  %v1657_v17 = vadd.s32 %v1656_v55, %v1652_v38 }
 0x2ab   : > { %4954 = vsinq.f32 %v1477_v30  ;;  %v1365_v50 = vand.u32 2147483647, %v1364_v34  ;;  %v1507_v13 = vand.u32 31, %v1505_v41  ;;  %v1501_v9 = vor.u32 8388608, %v1500_v56 }
 0x2ac   : > { %v6520_v8 = vrot.slane %v6401_v3, %v8238_v43  ;;  %v8239_v45 = vmov %v8238_v43  ;;  %v1808_v27 = vand.u32 2139095040, %v6422_v4  ;;  %vm3150_vm12 = vcmp.eq.s32.totalorder %v6504_v31, 2 }
 0x2ad   : > { %v6525_v60 = vrot.slane %v6404_v37, %v8239_v45  ;;  %v1368_v15 = vmul.f32 %v1367_v47, %v1365_v50  ;;  %v1658_v48 = vadd.s32 536870912, %v1657_v17  ;;  %v6529_v59 = vsub.s32 32, %v1507_v13 }
 0x2ae   : > { %vm1485_vm13 = vcmp.eq.s32.totalorder %v6513_v21, 0  ;;  %vm1488_vm14 = vcmp.eq.s32.totalorder %v6513_v21, 2  ;;  %vm3147_vm0 = vcmp.eq.s32.totalorder %v6504_v31, 0  ;;  %v6534_v24 = vshrl.u32 %v1505_v41, 5 }
 0x2af   : > { %v1369_v3 = vxor.u32 2147483648, %v1368_v15  ;;  %vm4605_vm1 = vcmp.eq.s32.totalorder %v6520_v8, 1  ;;  %vm1484_vm2 = vcmp.lt.s32.totalorder %v6513_v21, 2  ;;  %vm3146_vm3 = vcmp.lt.s32.totalorder %v6504_v31, 2 }
 0x2b0   : > { %v6539_v37 = vand.u32 3, %v1378_v32  ;;  %v6541_v20 = vand.u32 3, %v1374_v26  ;;  %vm8140_vm5 = vcmp.lt.s32.totalorder %v6302_v18, 0  ;;  %v1659_v36 = vshrl.u32 %v1658_v48, 30 }
 0x2b1   : > { %v1805_v14 = vand.u32 2147483647, %v6422_v4  ;;  %vm4627_vm6 = vcmp.eq.s32.totalorder %v6525_v60, 1  ;;  %vm1481_vm7 = vweird.f32 %v6283_v39  ;;  %v1370_v61 = vsel %vm1287_vm4, %v1369_v3, %v1368_v15 }
 0x2b2   : > { %v6550_v6 = vadd.s32 %v6490_v54, %v6486_v52  ;;  %v6552_v11 = vshll.u32 %v1501_v9, 8  ;;  %v6554_v19 = vshrl.u32 %v1808_v27, 23  ;;  %vm8142_vm9 = vcmask 515072  }
 0x2b3   : > { %v1373_v44 = vsel %vm6471_vm8, %v6287_v22, %v1370_v61  ;;  %v1660_v56 = vshll.u32 %v1659_v36, 30  ;;  %v1510_v10 = vshll.u32 %v5058_v29, %v1507_v13  ;;  %v8240_v30 = vmov 2475754826  }
 0x2b4   : > { %v1511_v34 = vshrl.u32 %v8240_v30, %v6529_v59  ;;  %4956 = vcosq.f32 %v1373_v44  ;;  %v1513_v26 = vshll.u32 %v8240_v30, %v1507_v13  ;;  %v8241_v52 = vmov 2131351028   ;;  %v4953_v38 = vpop.eup %4952 }
 0x2b5   : > { %v1514_v54 = vshrl.u32 %v8241_v52, %v6529_v59  ;;  %v1517_v35 = vshrl.u32 %v8138_v53, %v6529_v59  ;;  %vm1525_vm4 = vcmp.lt.s32.totalorder %v6534_v24, 1  ;;  %4958 = vsinq.f32 %v1373_v44  ;;  %v4955_v43 = vpop.eup %4954 }
 0x2b6   : > { %v8242_v2 = vand.u32 2147483647, %v6302_v18  ;;  %v6574_v50 = vsub.s32 %v1657_v17, %v1660_v56  ;;  %v1516_v47 = vshll.u32 %v8241_v52, %v1507_v13  ;;  %v1520_v55 = vshrl.u32 %v5062_v5, %v6529_v59 }
 0x2b7   : > { %v1489_v32 = vxor.u32 2147483648, %v4953_v38  ;;  %v1683_v45 = vsub.s32 4, %v1659_v36  ;;  %v1519_v15 = vshll.u32 %v8138_v53, %v1507_v13  ;;  %v8245_v9 = vmov 1326507024  }
 0x2b8   : > { %vm6570_vm8 = vcmp.le.f32.partialorder %v8242_v2, 0.7853982  ;;  %v1523_v27 = vshrl.u32 %v8245_v9, %v6529_v59  ;;  %v1486_v48 = vxor.u32 2147483648, %v4955_v43  ;;  %v1663_v3 = vsub.s32 0, %v6574_v50 }
 0x2b9   : > { %v1512_v61 = vor.u32 %v1511_v34, %v1510_v10  ;;  %v1522_v17 = vshll.u32 %v5062_v5, %v1507_v13  ;;  %v1490_v44 = vsel %vm1488_vm14, %v1489_v32, %v4955_v43  ;;  %v3152_v56 = vsel %vm3150_vm12, %v1489_v32, %v4955_v43 }
 0x2ba   : > { %vm1384_vm11 = vcmp.eq.s32.totalorder %v6539_v37, 2  ;;  %vm3047_vm15 = vcmp.eq.s32.totalorder %v6541_v20, 2  ;;  %v1515_v2 = vor.u32 %v1514_v54, %v1513_v26  ;;  %v1518_v53 = vor.u32 %v1517_v35, %v1516_v47 }
 0x2bb   : > { %v1487_v10 = vsel %vm1485_vm13, %v4953_v38, %v1486_v48  ;;  %v3149_v13 = vsel %vm3147_vm0, %v4953_v38, %v1486_v48  ;;  %vm1381_vm10 = vcmp.eq.s32.totalorder %v6539_v37, 0  ;;  %vm3044_vm14 = vcmp.eq.s32.totalorder %v6541_v20, 0 }
 0x2bc   : > { %v4740_v34 = vmin.u32 %v1663_v3, %v6574_v50  ;;  %v1521_v43 = vor.u32 %v1520_v55, %v1519_v15  ;;  %v1491_v32 = vsel %vm1484_vm2, %v1487_v10, %v1490_v44  ;;  %v3153_v26 = vsel %vm3146_vm3, %v3149_v13, %v3152_v56 }
 0x2bd   : > { %vm1380_vm12 = vcmp.lt.s32.totalorder %v6539_v37, 2  ;;  %vm3043_vm13 = vcmp.lt.s32.totalorder %v6541_v20, 2  ;;  %v1684_v54 = vsel %vm8140_vm5, %v1683_v45, %v1659_v36  ;;  %v1524_v35 = vor.u32 %v1523_v27, %v1522_v17 }
 0x2be   : > { %v1492_v21 = vsel %vm1481_vm7, nan, %v1491_v32  ;;  %v3154_v31 = vsel %vm1481_vm7, nan, %v3153_v26  ;;  %vm1377_vm0 = vweird.f32 %v6287_v22  ;;  %v1665_v38 = vclz %v4740_v34  ;;  %v4957_v48 = vpop.eup %4956 }
 0x2bf   : > { %vm1528_vm2 = vcmp.lt.s32.totalorder %v6534_v24, 4  ;;  %v4607_v36 = vsel %vm4605_vm1, %v1492_v21, %v3154_v31  ;;  %v1509_v47 = vshrl.u32 %v5058_v29, %v6529_v59  ;;  %vm1527_vm3 = vcmp.lt.s32.totalorder %v6534_v24, 3 }
 0x2c0   : > { %v1530_v55 = vsel %vm1528_vm2, %v1518_v53, 2102212464  ;;  %v4629_v45 = vsel %vm4627_vm6, %v6276_v58, %v4607_v36  ;;  %v4741_v39 = vadd.s32 4294967294, %v1665_v38  ;;  %v1533_v15 = vsel %vm1525_vm4, %v1512_v61, %v1515_v2  ;;  %v4959_v58 = vpop.eup %4958 }
 0x2c1   : > { %v1534_v27 = vsel %vm1528_vm2, %v1521_v43, 920167782  ;;  %4646 = vst.msk [vmem:[%s6611_s17 + $0x8] sm:$0xff] %vm8142_vm9, %v4629_v45  ;;  %v6633_v3 = vsel %vm6570_vm8, 0, %v1684_v54  ;;  %v1537_v17 = vsel %vm1525_vm4, %v1515_v2, %v1518_v53  ;;  %v1538_v44 = vsel %vm1528_vm2, %v1524_v35, 1326507024 }
 0x2c2   : > { %v1535_v59 = vsel %vm1527_vm3, %v1518_v53, %v1534_v27  ;;  %v1385_v56 = vxor.u32 2147483648, %v4957_v48  ;;  %vm4742_vm7 = vcmp.lt.s32.totalorder %v4741_v39, 0  ;;  %v1529_v10 = vsel %vm1525_vm4, %v1509_v47, %v1512_v61 }
 0x2c3   : > { %v1539_v13 = vsel %vm1527_vm3, %v1521_v43, %v1538_v44  ;;  %v1382_v34 = vxor.u32 2147483648, %v4959_v58  ;;  %v1668_v32 = vsel %vm4742_vm7, 0, %v4741_v39  ;;  %v1531_v26 = vsel %vm1527_vm3, %v1515_v2, %v1530_v55 }
 0x2c4   : > { %vm8246_vm5 = vcmp.lt.s32.totalorder %v6534_v24, 2  ;;  %v1386_v53 = vsel %vm1384_vm11, %v1385_v56, %v4959_v58  ;;  %v3049_v35 = vsel %vm3047_vm15, %v1385_v56, %v4959_v58  ;;  %v1669_v21 = vsub.s32 32, %v1668_v32 }
 0x2c5   : > { %v1536_v54 = vsel %vm8246_vm5, %v1533_v15, %v1535_v59  ;;  %vm8247_vm4 = vmmov %vm8246_vm5  ;;  %v1383_v43 = vsel %vm1381_vm10, %v4957_v48, %v1382_v34  ;;  %v3046_v31 = vsel %vm3044_vm14, %v4957_v48, %v1382_v34  ;;  %v1673_v2 = vsub.s32 4294967266, %v1668_v32 }
 0x2c6   : > { %v1540_v61 = vsel %vm8247_vm4, %v1537_v17, %v1539_v13  ;;  %v4747_v38 = vadd.s32 4294967169, %v6554_v19  ;;  %v1387_v36 = vsel %vm1380_vm12, %v1383_v43, %v1386_v53  ;;  %v3050_v47 = vsel %vm3043_vm13, %v3046_v31, %v3049_v35  ;;  %vm8248_vm15 = vmmov %vm8247_vm4 }
 0x2c7   : > { %v1670_v55 = vshll.u32 %v6574_v50, %v1668_v32  ;;  %v1671_v45 = vshrl.u32 %v6550_v6, %v1669_v21  ;;  %v1388_v39 = vsel %vm1377_vm0, nan, %v1387_v36  ;;  %v3051_v15 = vsel %vm1377_vm0, nan, %v3050_v47 }
 0x2c8   : > { %v1674_v27 = vadd.s32 127, %v1673_v2  ;;  %v1815_v48 = vadd.s32 1, %v4747_v38  ;;  %v4606_v19 = vsel %vm4605_vm1, %v1388_v39, %v3051_v15  ;;  %v1532_v22 = vsel %vm8248_vm15, %v1529_v10, %v1531_v26 }
 0x2c9   : > { %v1672_v37 = vor.u32 %v1671_v45, %v1670_v55  ;;  %v6671_v59 = vmul.u32.u64.low %v6552_v11, %v1540_v61  ;;  %v6672_v20 = vmul.u32.u64.high %v6552_v11, %v1540_v61, %v6671_v59  ;;  %v4628_v6 = vsel %vm4627_vm6, %v6279_v33, %v4606_v19 }
 0x2ca   : > { %v1675_v50 = vshll.u32 %v1674_v27, 23  ;;  %v6678_v17 = vmul.u32.u64.low %v6552_v11, %v1536_v54  ;;  %v6679_v44 = vmul.u32.u64.high %v6552_v11, %v1536_v54, %v6678_v17  ;;  %4645 = vst.msk [vmem:[%s6611_s17] sm:$0xff] %vm8142_vm9, %v4628_v6  ;;  %vm1816_vm5 = vcmp.gt.s32.totalorder %v1815_v48, 0  ;;  %v1206_v6 = vpop.permute.xlu0 %1205 }
 0x2cb   : > { %v1817_v56 = vsel %vm1816_vm5, %v1815_v48, 0  ;;  %v1690_v13 = vadd.s32 3, %v6633_v3  ;;  %v1812_v33 = vand.u32 8388607, %v1805_v14  ;;  %v1679_v54 = vcvt.s32.f32 %v1672_v37 }
 0x2cc   : > { %v1676_v58 = vor.u32 4788187, %v1675_v50  ;;  %vm1550_vm10 = vc.u32 %v6672_v20, %v6678_v17  ;;  %v1819_v34 = vand.u32 31, %v1817_v56  ;;  %v1548_v53 = vmul.u32 %v6552_v11, %v1532_v22 }
 0x2cd   : > { %v1551_v35 = vadd.s32 1, %v6679_v44  ;;  %v6693_v24 = vshrl.u32 %v1817_v56, 5  ;;  %v8249_v2 = vmov 2102212464   ;;  %v6707_v48 = vand.u32 3, %v6633_v3 }
 0x2ce   : > { %v1677_v32 = vand.u32 2147483647, %v1676_v58  ;;  %v1820_v10 = vsub.s32 32, %v1819_v34  ;;  %v1822_v26 = vshll.u32 %v5058_v29, %v1819_v34  ;;  %v1825_v21 = vshll.u32 %v8240_v30, %v1819_v34 }
 0x2cf   : > { %v1552_v43 = vsel %vm1550_vm10, %v1551_v35, %v6679_v44  ;;  %v1828_v31 = vshll.u32 %v8241_v52, %v1819_v34  ;;  %v1831_v38 = vshll.u32 %v8249_v2, %v1819_v34  ;;  %v1834_v55 = vshll.u32 %v5062_v5, %v1819_v34 }
 0x2d0   : > { %v1680_v61 = vmul.f32 %v1679_v54, %v1677_v32  ;;  %v1553_v36 = vadd.s32 %v1552_v43, %v1548_v53  ;;  %v1823_v47 = vshrl.u32 %v8240_v30, %v1820_v10  ;;  %v1826_v11 = vshrl.u32 %v8241_v52, %v1820_v10 }
 0x2d1   : > { %v1829_v39 = vshrl.u32 %v8249_v2, %v1820_v10  ;;  %v1832_v15 = vshrl.u32 %v5062_v5, %v1820_v10  ;;  %v1835_v27 = vshrl.u32 %v8245_v9, %v1820_v10  ;;  %vm8250_vm11 = vcmp.lt.s32.totalorder %v6302_v18, 0 }
 0x2d2   : > { %v1681_v45 = vxor.u32 2147483648, %v1680_v61  ;;  %v1554_v19 = vadd.s32 536870912, %v1553_v36  ;;  %v1824_v37 = vor.u32 %v1823_v47, %v1822_v26  ;;  %v1827_v59 = vor.u32 %v1826_v11, %v1825_v21 }
 0x2d3   : > { %v1830_v44 = vor.u32 %v1829_v39, %v1828_v31  ;;  %v1833_v22 = vor.u32 %v1832_v15, %v1831_v38  ;;  %v1836_v58 = vor.u32 %v1835_v27, %v1834_v55  ;;  %v6714_v34 = vand.u32 3, %v1690_v13 }
 0x2d4   : > { %v1682_v50 = vsel %vm8250_vm11, %v1681_v45, %v1680_v61  ;;  %v1555_v32 = vshrl.u32 %v1554_v19, 30  ;;  %v1813_v54 = vor.u32 8388608, %v1812_v33  ;;  %vm1837_vm14 = vcmp.lt.s32.totalorder %v6693_v24, 1 }
 0x2d5   : > { %v1685_v56 = vsel %vm6570_vm8, %v6302_v18, %v1682_v50  ;;  %vm1839_vm12 = vcmp.lt.s32.totalorder %v6693_v24, 3  ;;  %vm8251_vm13 = vcmask 392192   ;;  %vm1840_vm0 = vcmp.lt.s32.totalorder %v6693_v24, 4 }
 0x2d6   : > { %4960 = vcosq.f32 %v1685_v56  ;;  %v6720_v3 = vsel %vm8251_vm13, %v6230_v28, %v1206_v6  ;;  %v1556_v53 = vshll.u32 %v1555_v32, 30  ;;  %v1845_v41 = vsel %vm1837_vm14, %v1824_v37, %v1827_v59 }
 0x2d7   : > { %4962 = vsinq.f32 %v1685_v56  ;;  %v1842_v13 = vsel %vm1840_vm0, %v1830_v44, 2102212464  ;;  %v1846_v35 = vsel %vm1840_vm0, %v1833_v22, 920167782  ;;  %v1849_v33 = vsel %vm1837_vm14, %v1827_v59, %v1830_v44 }
 0x2d8   : > { %v1850_v26 = vsel %vm1840_vm0, %v1836_v58, 1326507024  ;;  %v6727_v21 = vsub.s32 %v1553_v36, %v1556_v53  ;;  %v1821_v61 = vshrl.u32 %v5058_v29, %v1820_v10  ;;  %vm1838_vm8 = vcmp.lt.s32.totalorder %v6693_v24, 2 }
 0x2d9   : > { %v1847_v28 = vsel %vm1839_vm12, %v1830_v44, %v1846_v35  ;;  %v1851_v31 = vsel %vm1839_vm12, %v1833_v22, %v1850_v26  ;;  %v1853_v38 = vshll.u32 %v1813_v54, 8  ;;  %v6739_v47 = vmul.f32 %v6271_v49, %v6720_v3 }
 0x2da   : > { %v1848_v43 = vsel %vm1838_vm8, %v1845_v41, %v1847_v28  ;;  %v1559_v36 = vsub.s32 0, %v6727_v21  ;;  %v1841_v10 = vsel %vm1837_vm14, %v1821_v61, %v1824_v37  ;;  %v1843_v11 = vsel %vm1839_vm12, %v1827_v59, %v1842_v13  ;;  %v1212_v59 = vpop.permute.xlu1 %1211 }
 0x2db   : > { %v1852_v55 = vsel %vm1838_vm8, %v1849_v33, %v1851_v31  ;;  %v8252_v45 = vand.u32 2147483647, %v6394_v46  ;;  %v6757_v27 = vmul.u32.u64.low %v1853_v38, %v1848_v43  ;;  %v6758_v19 = vmul.u32.u64.high %v1853_v38, %v1848_v43, %v6757_v27 }
 0x2dc   : > { %v6754_v15 = vmul.u32.u64.low %v1853_v38, %v1852_v55  ;;  %v6755_v49 = vmul.u32.u64.high %v1853_v38, %v1852_v55, %v6754_v15  ;;  %vm1689_vm3 = vweird.f32 %v6302_v18  ;;  %vm3352_vm7 = vcmp.lt.s32.totalorder %v6707_v48, 2 }
 0x2dd   : > { %vm6750_vm2 = vcmp.le.f32.partialorder %v8252_v45, 0.7853982  ;;  %vm3353_vm4 = vcmp.eq.s32.totalorder %v6707_v48, 0  ;;  %vm1495_vm15 = vcmp.lt.s32.totalorder %v6394_v46, 0  ;;  %v4736_v37 = vmin.u32 %v1559_v36, %v6727_v21 }
 0x2de   : > { %vm1692_vm5 = vcmp.lt.s32.totalorder %v6714_v34, 2  ;;  %v1579_v6 = vsub.s32 4, %v1555_v32  ;;  %v1844_v50 = vsel %vm1838_vm8, %v1841_v10, %v1843_v11  ;;  %v1704_v44 = vand.u32 2139095040, %v6739_v47 }
 0x2df   : > { %vm1693_vm10 = vcmp.eq.s32.totalorder %v6714_v34, 0  ;;  %vm1696_vm11 = vcmp.eq.s32.totalorder %v6714_v34, 2  ;;  %vm3356_vm14 = vcmp.eq.s32.totalorder %v6707_v48, 2  ;;  %v1561_v22 = vclz %v4736_v37 }
 0x2e0   : > { %v4961_v58 = vpop.eup %4960  ;;  %v1549_v56 = vadd.s32 %v6678_v17, %v6672_v20  ;;  %vm1862_vm12 = vc.u32 %v6755_v49, %v6757_v27  ;;  %v1863_v54 = vadd.s32 1, %v6758_v19  ;;  %v6780_v24 = vsel %vm8251_vm13, %v6233_v62, %v1212_v59 }
 0x2e1   : > { %v4963_v53 = vpop.eup %4962  ;;  %v1697_v41 = vxor.u32 2147483648, %v4961_v58  ;;  %v4737_v13 = vadd.s32 4294967294, %v1561_v22  ;;  %v1860_v35 = vmul.u32 %v1853_v38, %v1844_v50  ;;  %v1705_v33 = vshrl.u32 %v1704_v44, 23 }
 0x2e2   : > { %v1694_v26 = vxor.u32 2147483648, %v4963_v53  ;;  %v1580_v61 = vsel %vm1495_vm15, %v1579_v6, %v1555_v32  ;;  %v1864_v20 = vsel %vm1862_vm12, %v1863_v54, %v6758_v19  ;;  %v1701_v17 = vand.u32 2147483647, %v6739_v47 }
 0x2e3   : > { %v1698_v28 = vsel %vm1696_vm11, %v1697_v41, %v4963_v53  ;;  %v3358_v62 = vsel %vm3356_vm14, %v1697_v41, %v4963_v53  ;;  %vm4738_vm0 = vcmp.lt.s32.totalorder %v4737_v13, 0  ;;  %v1865_v43 = vadd.s32 %v1864_v20, %v1860_v35 }
 0x2e4   : > { %v1695_v31 = vsel %vm1693_vm10, %v4961_v58, %v1694_v26  ;;  %v3355_v38 = vsel %vm3353_vm4, %v4961_v58, %v1694_v26  ;;  %v1564_v36 = vsel %vm4738_vm0, 0, %v4737_v13  ;;  %v4743_v32 = vadd.s32 4294967169, %v1705_v33  ;;  %v6820_v33 = vld [vmem:[%s8121_s1] ss:$0 sm:$0xff] }
 0x2e5   : > { %v1699_v10 = vsel %vm1692_vm5, %v1695_v31, %v1698_v28  ;;  %v3359_v11 = vsel %vm3352_vm7, %v3355_v38, %v3358_v62  ;;  %v1565_v55 = vsub.s32 32, %v1564_v36  ;;  %v1582_v45 = vsel %vm6750_vm2, 0, %v1580_v61 }
 0x2e6   : > { %v1700_v15 = vsel %vm1689_vm3, nan, %v1699_v10  ;;  %v3360_v19 = vsel %vm1689_vm3, nan, %v3359_v11  ;;  %v1569_v37 = vsub.s32 4294967266, %v1564_v36  ;;  %v1866_v59 = vadd.s32 536870912, %v1865_v43 }
 0x2e7   : > { %v4609_v34 = vsel %vm4605_vm1, %v1700_v15, %v3360_v19  ;;  %v1567_v6 = vshrl.u32 %v1549_v56, %v1565_v55  ;;  %v1708_v48 = vand.u32 8388607, %v1701_v17  ;;  %v1711_v50 = vadd.s32 1, %v4743_v32 }
 0x2e8   : > { %v4631_v44 = vsel %vm4627_vm6, %v6294_v1, %v4609_v34  ;;  %v1566_v22 = vshll.u32 %v6727_v21, %v1564_v36  ;;  %v1570_v58 = vadd.s32 127, %v1569_v37  ;;  %v6812_v54 = vshrl.u32 %v1866_v59, 30 }
 0x2e9   : > { %4648 = vst.msk [vmem:[%s6611_s17 + $0x18] sm:$0xff] %vm8142_vm9, %v4631_v44  ;;  %vm1712_vm8 = vcmp.gt.s32.totalorder %v1711_v50, 0  ;;  %v1586_v13 = vadd.s32 3, %v1582_v45  ;;  %v6824_v1 = vmul.f32 %v6820_v33, %v6780_v24  ;;  %v1709_v61 = vor.u32 8388608, %v1708_v48 }
 0x2ea   : > { %v1568_v18 = vor.u32 %v1567_v6, %v1566_v22  ;;  %v1571_v53 = vshll.u32 %v1570_v58, 23  ;;  %v1868_v56 = vshll.u32 %v6812_v54, 30  ;;  %v1713_v41 = vsel %vm1712_vm8, %v1711_v50, 0 }
 0x2eb   : > { %v1715_v35 = vand.u32 31, %v1713_v41  ;;  %v6828_v31 = vand.u32 3, %v1582_v45  ;;  %v6831_v36 = vand.u32 3, %v1586_v13  ;;  %v1861_v32 = vadd.s32 %v6757_v27, %v6755_v49 }
 0x2ec   : > { %v1572_v21 = vor.u32 4788187, %v1571_v53  ;;  %v6826_v26 = vsub.s32 %v1865_v43, %v1868_v56  ;;  %v1575_v62 = vcvt.s32.f32 %v1568_v18  ;;  %v2013_v11 = vand.u32 2147483647, %v6824_v1 }
 0x2ed   : > { %v1716_v20 = vsub.s32 32, %v1715_v35  ;;  %v6839_v19 = vshll.u32 %v1709_v61, 8  ;;  %v1891_v45 = vsub.s32 4, %v6812_v54  ;;  %v6842_v37 = vshrl.u32 %v1713_v41, 5 }
 0x2ee   : > { %v1573_v28 = vand.u32 2147483647, %v1572_v21  ;;  %v1871_v38 = vsub.s32 0, %v6826_v26  ;;  %v1718_v59 = vshll.u32 %v5058_v29, %v1715_v35  ;;  %v2016_v34 = vand.u32 2139095040, %v6824_v1 }
 0x2ef   : > { %v1719_v10 = vshrl.u32 %v8240_v30, %v1716_v20  ;;  %v1722_v15 = vshrl.u32 %v8241_v52, %v1716_v20  ;;  %v1721_v6 = vshll.u32 %v8240_v30, %v1715_v35  ;;  %v1724_v48 = vshll.u32 %v8241_v52, %v1715_v35 }
 0x2f0   : > { %v1576_v55 = vmul.f32 %v1575_v62, %v1573_v28  ;;  %v4748_v43 = vmin.u32 %v1871_v38, %v6826_v26  ;;  %v1725_v44 = vshrl.u32 %v8249_v2, %v1716_v20  ;;  %v1727_v22 = vshll.u32 %v8249_v2, %v1715_v35 }
 0x2f1   : > { %v1720_v50 = vor.u32 %v1719_v10, %v1718_v59  ;;  %v1728_v58 = vshrl.u32 %v5062_v5, %v1716_v20  ;;  %v1723_v56 = vor.u32 %v1722_v15, %v1721_v6  ;;  %v1731_v41 = vshrl.u32 %v8245_v9, %v1716_v20 }
 0x2f2   : > { %v1577_v49 = vxor.u32 2147483648, %v1576_v55  ;;  %v1873_v27 = vclz %v4748_v43  ;;  %vm1807_vm3 = vcmp.lt.s32.totalorder %v6422_v4, 0  ;;  %v1726_v21 = vor.u32 %v1725_v44, %v1724_v48 }
 0x2f3   : > { %v1729_v61 = vor.u32 %v1728_v58, %v1727_v22  ;;  %v1730_v28 = vshll.u32 %v5062_v5, %v1715_v35  ;;  %v1717_v62 = vshrl.u32 %v5058_v29, %v1716_v20  ;;  %vm1733_vm4 = vcmp.lt.s32.totalorder %v6842_v37, 1 }
 0x2f4   : > { %v1578_v18 = vsel %vm1495_vm15, %v1577_v49, %v1576_v55  ;;  %v4749_v53 = vadd.s32 4294967294, %v1873_v27  ;;  %vm1734_vm15 = vcmp.lt.s32.totalorder %v6842_v37, 2  ;;  %vm1735_vm5 = vcmp.lt.s32.totalorder %v6842_v37, 3 }
 0x2f5   : > { %v1581_v13 = vsel %vm6750_vm2, %v6394_v46, %v1578_v18  ;;  %v1732_v10 = vor.u32 %v1731_v41, %v1730_v28  ;;  %vm6864_vm2 = vcmp.le.f32.partialorder %v1805_v14, 0.7853982  ;;  %vm1736_vm10 = vcmp.lt.s32.totalorder %v6842_v37, 4 }
 0x2f6   : > { %4964 = vcosq.f32 %v1581_v13  ;;  %vm4750_vm7 = vcmp.lt.s32.totalorder %v4749_v53, 0  ;;  %v1738_v20 = vsel %vm1736_vm10, %v1726_v21, 2102212464  ;;  %v1741_v15 = vsel %vm1733_vm4, %v1720_v50, %v1723_v56 }
 0x2f7   : > { %4966 = vsinq.f32 %v1581_v13  ;;  %v1876_v38 = vsel %vm4750_vm7, 0, %v4749_v53  ;;  %v1742_v59 = vsel %vm1736_vm10, %v1729_v61, 920167782  ;;  %vm3253_vm11 = vcmp.eq.s32.totalorder %v6828_v31, 2 }
 0x2f8   : > { %v1877_v55 = vsub.s32 32, %v1876_v38  ;;  %v1881_v43 = vsub.s32 4294967266, %v1876_v38  ;;  %v1878_v35 = vshll.u32 %v6826_v26, %v1876_v38  ;;  %v1743_v27 = vsel %vm1735_vm5, %v1726_v21, %v1742_v59 }
 0x2f9   : > { %v1745_v6 = vsel %vm1733_vm4, %v1723_v56, %v1726_v21  ;;  %vm3250_vm14 = vcmp.eq.s32.totalorder %v6828_v31, 0  ;;  %v1737_v26 = vsel %vm1733_vm4, %v1717_v62, %v1720_v50  ;;  %v1744_v48 = vsel %vm1734_vm15, %v1741_v15, %v1743_v27 }
 0x2fa   : > { %v1879_v49 = vshrl.u32 %v1861_v32, %v1877_v55  ;;  %v1882_v14 = vadd.s32 127, %v1881_v43  ;;  %v1746_v44 = vsel %vm1736_vm10, %v1732_v10, 1326507024  ;;  %v2017_v22 = vshrl.u32 %v2016_v34, 23 }
 0x2fb   : > { %vm3249_vm12 = vcmp.lt.s32.totalorder %v6828_v31, 2  ;;  %v1739_v18 = vsel %vm1735_vm5, %v1723_v56, %v1738_v20  ;;  %v1747_v53 = vsel %vm1735_vm5, %v1729_v61, %v1746_v44  ;;  %vm1585_vm13 = vweird.f32 %v6394_v46 }
 0x2fc   : > { %v1880_v32 = vor.u32 %v1879_v49, %v1878_v35  ;;  %v1883_v58 = vshll.u32 %v1882_v14, 23  ;;  %v1748_v50 = vsel %vm1734_vm15, %v1745_v6, %v1747_v53  ;;  %v4755_v34 = vadd.s32 4294967169, %v2017_v22 }
 0x2fd   : > { %v6892_v41 = vmul.u32.u64.low %v6839_v19, %v1744_v48  ;;  %v6893_v13 = vmul.u32.u64.high %v6839_v19, %v1744_v48, %v6892_v41  ;;  %v1892_v28 = vsel %vm1807_vm3, %v1891_v45, %v6812_v54  ;;  %vm1588_vm0 = vcmp.lt.s32.totalorder %v6831_v36, 2 }
 0x2fe   : > { %v1884_v21 = vor.u32 4788187, %v1883_v58  ;;  %v6900_v56 = vmul.u32.u64.low %v6839_v19, %v1748_v50  ;;  %v6901_v62 = vmul.u32.u64.high %v6839_v19, %v1748_v50, %v6900_v56  ;;  %vm1589_vm8 = vcmp.eq.s32.totalorder %v6831_v36, 0 }
 0x2ff   : > { %v1740_v61 = vsel %vm1734_vm15, %v1737_v26, %v1739_v18  ;;  %v2023_v38 = vadd.s32 1, %v4755_v34  ;;  %vm1592_vm7 = vcmp.eq.s32.totalorder %v6831_v36, 2  ;;  %v1887_v43 = vcvt.s32.f32 %v1880_v32 }
 0x300   : > { %v4965_v10 = vpop.eup %4964  ;;  %v1885_v55 = vand.u32 2147483647, %v1884_v21  ;;  %v6910_v54 = vand.u32 8388607, %v2013_v11  ;;  %v1894_v20 = vsel %vm6864_vm2, 0, %v1892_v28  ;;  %v1759_v15 = vadd.s32 1, %v6893_v13 }
 0x301   : > { %v4967_v45 = vpop.eup %4966  ;;  %v1593_v35 = vxor.u32 2147483648, %v4965_v10  ;;  %vm2024_vm4 = vcmp.gt.s32.totalorder %v2023_v38, 0  ;;  %v1756_v49 = vmul.u32 %v6839_v19, %v1740_v61  ;;  %vm1758_vm15 = vc.u32 %v6901_v62, %v6892_v41 }
 0x302   : > { %v1590_v37 = vxor.u32 2147483648, %v4967_v45  ;;  %v1888_v59 = vmul.f32 %v1887_v43, %v1885_v55  ;;  %v1760_v6 = vsel %vm1758_vm15, %v1759_v15, %v6893_v13  ;;  %v2025_v26 = vsel %vm2024_vm4, %v2023_v38, 0  ;;  %v1210_v38 = vpop.permute.xlu0 %1209 }
 0x303   : > { %v1594_v14 = vsel %vm1592_vm7, %v1593_v35, %v4967_v45  ;;  %v3255_v27 = vsel %vm3253_vm11, %v1593_v35, %v4967_v45  ;;  %v1761_v32 = vadd.s32 %v1760_v6, %v1756_v49  ;;  %v1898_v18 = vadd.s32 3, %v1894_v20 }
 0x304   : > { %v1591_v48 = vsel %vm1589_vm8, %v4965_v10, %v1590_v37  ;;  %v3252_v44 = vsel %vm3250_vm14, %v4965_v10, %v1590_v37  ;;  %v1889_v22 = vxor.u32 2147483648, %v1888_v59  ;;  %v2027_v53 = vand.u32 31, %v2025_v26 }
 0x305   : > { %v1595_v19 = vsel %vm1588_vm0, %v1591_v48, %v1594_v14  ;;  %v3256_v58 = vsel %vm3249_vm12, %v3252_v44, %v3255_v27  ;;  %v1762_v21 = vadd.s32 536870912, %v1761_v32  ;;  %v6943_v61 = vand.u32 3, %v1894_v20  ;;  %v1216_v14 = vpop.permute.xlu1 %1215 }
 0x306   : > { %v1596_v50 = vsel %vm1585_vm13, nan, %v1595_v19  ;;  %v3257_v13 = vsel %vm1585_vm13, nan, %v3256_v58  ;;  %v1890_v34 = vsel %vm1807_vm3, %v1889_v22, %v1888_v59  ;;  %v2028_v28 = vsub.s32 32, %v2027_v53 }
 0x307   : > { %v4608_v36 = vsel %vm4605_vm1, %v1596_v50, %v3257_v13  ;;  %v1893_v31 = vsel %vm6864_vm2, %v6422_v4, %v1890_v34  ;;  %v6945_v46 = vshrl.u32 %v1762_v21, 30  ;;  %v6949_v10 = vand.u32 3, %v1898_v18 }
 0x308   : > { %v4630_v56 = vsel %vm4627_vm6, %v6383_v16, %v4608_v36  ;;  %4968 = vcosq.f32 %v1893_v31  ;;  %v2021_v39 = vor.u32 8388608, %v6910_v54  ;;  %v2031_v43 = vshrl.u32 %v8240_v30, %v2028_v28 }
 0x309   : > { %4647 = vst.msk [vmem:[%s6611_s17 + $0x10] sm:$0xff] %vm8142_vm9, %v4630_v56  ;;  %4970 = vsinq.f32 %v1893_v31  ;;  %v1764_v55 = vshll.u32 %v6945_v46, 30  ;;  %v2034_v45 = vshrl.u32 %v8241_v52, %v2028_v28  ;;  %v2037_v16 = vshrl.u32 %v8249_v2, %v2028_v28 }
 0x30a   : > { %v2039_v35 = vshll.u32 %v8249_v2, %v2027_v53  ;;  %v2040_v20 = vshrl.u32 %v5062_v5, %v2028_v28  ;;  %vm8257_vm3 = vcmask 392192   ;;  %vm3562_vm2 = vcmp.eq.s32.totalorder %v6943_v61, 2 }
 0x30b   : > { %v6960_v15 = vsel %vm8257_vm3, %v6236_v12, %v1210_v38  ;;  %v6963_v37 = vsub.s32 %v1761_v32, %v1764_v55  ;;  %v6965_v59 = vshrl.u32 %v2025_v26, 5  ;;  %v2030_v54 = vshll.u32 %v5058_v29, %v2027_v53  ;;  %vm8258_vm0 = vmmov %vm8257_vm3 }
 0x30c   : > { %v2033_v49 = vshll.u32 %v8240_v30, %v2027_v53  ;;  %vm1901_vm5 = vcmp.eq.s32.totalorder %v6949_v10, 0  ;;  %vm3559_vm10 = vcmp.eq.s32.totalorder %v6943_v61, 0  ;;  %v2036_v27 = vshll.u32 %v8241_v52, %v2027_v53 }
 0x30d   : > { %v2041_v6 = vor.u32 %v2040_v20, %v2039_v35  ;;  %v2043_v12 = vshrl.u32 %v8245_v9, %v2028_v28  ;;  %vm1900_vm11 = vcmp.lt.s32.totalorder %v6949_v10, 2  ;;  %vm1904_vm14 = vcmp.eq.s32.totalorder %v6949_v10, 2 }
 0x30e   : > { %vm3558_vm12 = vcmp.lt.s32.totalorder %v6943_v61, 2  ;;  %v1767_v26 = vsub.s32 0, %v6963_v37  ;;  %v2032_v48 = vor.u32 %v2031_v43, %v2030_v54  ;;  %v2035_v44 = vor.u32 %v2034_v45, %v2033_v49 }
 0x30f   : > { %vm1897_vm13 = vweird.f32 %v6422_v4  ;;  %v2038_v22 = vor.u32 %v2037_v16, %v2036_v27  ;;  %v2042_v32 = vshll.u32 %v5062_v5, %v2027_v53  ;;  %v6981_v19 = vmul.f32 %v6820_v33, %v6960_v15 }
 0x310   : > { %v6985_v58 = vsel %vm8258_vm0, %v6239_v23, %v1216_v14  ;;  %v1757_v18 = vadd.s32 %v6892_v41, %v6901_v62  ;;  %v4744_v50 = vmin.u32 %v1767_v26, %v6963_v37  ;;  %vm2048_vm8 = vcmp.lt.s32.totalorder %v6965_v59, 4 }
 0x311   : > { %v6991_v13 = vshll.u32 %v2021_v39, 8  ;;  %v2029_v34 = vshrl.u32 %v5058_v29, %v2028_v28  ;;  %v2044_v53 = vor.u32 %v2043_v12, %v2042_v32  ;;  %vm2045_vm7 = vcmp.lt.s32.totalorder %v6965_v59, 1 }
 0x312   : > { %v2054_v21 = vsel %vm2048_vm8, %v2041_v6, 920167782  ;;  %v4969_v36 = vpop.eup %4968  ;;  %v1769_v23 = vclz %v4744_v50  ;;  %v1787_v31 = vsub.s32 4, %v6945_v46  ;;  %vm2047_vm4 = vcmp.lt.s32.totalorder %v6965_v59, 3 }
 0x313   : > { %v2053_v41 = vsel %vm2045_vm7, %v2032_v48, %v2035_v44  ;;  %v4971_v62 = vpop.eup %4970  ;;  %v1905_v56 = vxor.u32 2147483648, %v4969_v36  ;;  %vm2046_vm15 = vcmp.lt.s32.totalorder %v6965_v59, 2  ;;  %v2049_v38 = vsel %vm2045_vm7, %v2029_v34, %v2032_v48 }
 0x314   : > { %v2055_v28 = vsel %vm2047_vm4, %v2038_v22, %v2054_v21  ;;  %v1902_v55 = vxor.u32 2147483648, %v4971_v62  ;;  %v4745_v39 = vadd.s32 4294967294, %v1769_v23  ;;  %v2050_v43 = vsel %vm2048_vm8, %v2038_v22, 2102212464 }
 0x315   : > { %v2057_v45 = vsel %vm2045_vm7, %v2035_v44, %v2038_v22  ;;  %v1906_v16 = vsel %vm1904_vm14, %v1905_v56, %v4971_v62  ;;  %v3564_v35 = vsel %vm3562_vm2, %v1905_v56, %v4971_v62  ;;  %v2056_v20 = vsel %vm2046_vm15, %v2053_v41, %v2055_v28 }
 0x316   : > { %v2058_v54 = vsel %vm2048_vm8, %v2044_v53, 1326507024  ;;  %v1903_v49 = vsel %vm1901_vm5, %v4969_v36, %v1902_v55  ;;  %v3561_v14 = vsel %vm3559_vm10, %v4969_v36, %v1902_v55  ;;  %vm4746_vm3 = vcmp.lt.s32.totalorder %v4745_v39, 0 }
 0x317   : > { %v2059_v27 = vsel %vm2047_vm4, %v2041_v6, %v2058_v54  ;;  %v1907_v12 = vsel %vm1900_vm11, %v1903_v49, %v1906_v16  ;;  %v3565_v26 = vsel %vm3558_vm12, %v3561_v14, %v3564_v35  ;;  %v1772_v48 = vsel %vm4746_vm3, 0, %v4745_v39  ;;  %v1214_v35 = vpop.permute.xlu0 %1213  ;;  %vm8261_vm11 = vmmov %vm8258_vm0 }
 0x318   : > { %v2060_v22 = vsel %vm2046_vm15, %v2057_v45, %v2059_v27  ;;  %v1908_v32 = vsel %vm1897_vm13, nan, %v1907_v12  ;;  %v3566_v50 = vsel %vm1897_vm13, nan, %v3565_v26  ;;  %v1773_v34 = vsub.s32 32, %v1772_v48 }
 0x319   : > { %v2051_v6 = vsel %vm2047_vm4, %v2035_v44, %v2050_v43  ;;  %v4611_v10 = vsel %vm4605_vm1, %v1908_v32, %v3566_v50  ;;  %v1777_v53 = vsub.s32 4294967266, %v1772_v48  ;;  %v1774_v44 = vshll.u32 %v6963_v37, %v1772_v48 }
 0x31a   : > { %v7033_v61 = vmul.u32.u64.low %v6991_v13, %v2060_v22  ;;  %v7034_v21 = vmul.u32.u64.high %v6991_v13, %v2060_v22, %v7033_v61  ;;  %v4633_v36 = vsel %vm4627_vm6, %v6399_v40, %v4611_v10  ;;  %v1775_v23 = vshrl.u32 %v1757_v18, %v1773_v34 }
 0x31b   : > { %v7040_v4 = vmul.u32.u64.low %v6991_v13, %v2056_v20  ;;  %v7041_v41 = vmul.u32.u64.high %v6991_v13, %v2056_v20, %v7040_v4  ;;  %4650 = vst.msk [vmem:[%s6611_s17 + $0x28] sm:$0xff] %vm8142_vm9, %v4633_v36  ;;  %v1778_v62 = vadd.s32 127, %v1777_v53  ;;  %v1912_v56 = vand.u32 2139095040, %v6981_v19 }
 0x31c   : > { %vm1703_vm2 = vcmp.lt.s32.totalorder %v6739_v47, 0  ;;  %v2052_v28 = vsel %vm2046_vm15, %v2049_v38, %v2051_v6  ;;  %v7052_v40 = vmul.f32 %v6820_v33, %v6985_v58  ;;  %v1776_v18 = vor.u32 %v1775_v23, %v1774_v44 }
 0x31d   : > { %v1779_v55 = vshll.u32 %v1778_v62, 23  ;;  %v1788_v39 = vsel %vm1703_vm2, %v1787_v31, %v6945_v46  ;;  %vm2070_vm5 = vc.u32 %v7034_v21, %v7040_v4  ;;  %v2071_v37 = vadd.s32 1, %v7041_v41 }
 0x31e   : > { %v1913_v43 = vshrl.u32 %v1912_v56, 23  ;;  %vm7061_vm10 = vcmp.le.f32.partialorder %v1701_v17, 0.7853982  ;;  %v2068_v45 = vmul.u32 %v6991_v13, %v2052_v28  ;;  %v2224_v16 = vand.u32 2139095040, %v7052_v40 }
 0x31f   : > { %v1780_v38 = vor.u32 4788187, %v1779_v55  ;;  %v1790_v46 = vsel %vm7061_vm10, 0, %v1788_v39  ;;  %v2072_v31 = vsel %vm2070_vm5, %v2071_v37, %v7041_v41  ;;  %v1909_v20 = vand.u32 2147483647, %v6981_v19 }
 0x320   : > { %v4751_v54 = vadd.s32 4294967169, %v1913_v43  ;;  %v1783_v14 = vcvt.s32.f32 %v1776_v18  ;;  %v2073_v17 = vadd.s32 %v2072_v31, %v2068_v45  ;;  %v2225_v12 = vshrl.u32 %v2224_v16, 23 }
 0x321   : > { %v1781_v49 = vand.u32 2147483647, %v1780_v38  ;;  %v7073_v26 = vsel %vm8261_vm11, %v6242_v25, %v1214_v35  ;;  %v1794_v48 = vadd.s32 3, %v1790_v46  ;;  %v1916_v32 = vand.u32 8388607, %v1909_v20 }
 0x322   : > { %v1919_v27 = vadd.s32 1, %v4751_v54  ;;  %v2074_v22 = vadd.s32 536870912, %v2073_v17  ;;  %v2221_v50 = vand.u32 2147483647, %v7052_v40  ;;  %v7080_v53 = vmul.f32 %v6820_v33, %v7073_v26 }
 0x323   : > { %v1784_v13 = vmul.f32 %v1783_v14, %v1781_v49  ;;  %v7082_v61 = vand.u32 3, %v1790_v46  ;;  %vm8141_vm12 = vcmp.lt.s32.totalorder %v6824_v1, 0  ;;  %v4763_v36 = vadd.s32 4294967169, %v2225_v12 }
 0x324   : > { %vm1920_vm14 = vcmp.gt.s32.totalorder %v1919_v27, 0  ;;  %v2075_v6 = vshrl.u32 %v2074_v22, 30  ;;  %v7087_v41 = vand.u32 3, %v1794_v48  ;;  %vm7091_vm13 = vcmp.le.f32.partialorder %v2013_v11, 0.7853982 }
 0x325   : > { %v1785_v34 = vxor.u32 2147483648, %v1784_v13  ;;  %v1921_v10 = vsel %vm1920_vm14, %v1919_v27, 0  ;;  %v7096_v62 = vadd.s32 %v7040_v4, %v7034_v21  ;;  %v1917_v18 = vor.u32 8388608, %v1916_v32 }
 0x326   : > { %v1923_v25 = vand.u32 31, %v1921_v10  ;;  %v2076_v56 = vshll.u32 %v2075_v6, 30  ;;  %v7103_v39 = vand.u32 8388607, %v2221_v50  ;;  %v2099_v11 = vsub.s32 4, %v2075_v6 }
 0x327   : > { %v1786_v23 = vsel %vm1703_vm2, %v1785_v34, %v1784_v13  ;;  %v2120_v43 = vand.u32 2139095040, %v7080_v53  ;;  %v7108_v21 = vshrl.u32 %v1921_v10, 5  ;;  %v7111_v38 = vadd.s32 1, %v4763_v36 }
 0x328   : > { %v1789_v28 = vsel %vm7061_vm10, %v6739_v47, %v1786_v23  ;;  %v1924_v55 = vsub.s32 32, %v1923_v25  ;;  %v7105_v37 = vsub.s32 %v2073_v17, %v2076_v56  ;;  %v1926_v45 = vshll.u32 %v5058_v29, %v1923_v25 }
 0x329   : > { %4972 = vcosq.f32 %v1789_v28  ;;  %v1929_v16 = vshll.u32 %v8240_v30, %v1923_v25  ;;  %v1932_v46 = vshll.u32 %v8241_v52, %v1923_v25  ;;  %v1935_v54 = vshll.u32 %v8249_v2, %v1923_v25 }
 0x32a   : > { %4974 = vsinq.f32 %v1789_v28  ;;  %v1927_v4 = vshrl.u32 %v8240_v30, %v1924_v55  ;;  %v2079_v59 = vsub.s32 0, %v7105_v37  ;;  %v1930_v35 = vshrl.u32 %v8241_v52, %v1924_v55 }
 0x32b   : > { %v1933_v31 = vshrl.u32 %v8249_v2, %v1924_v55  ;;  %v1936_v49 = vshrl.u32 %v5062_v5, %v1924_v55  ;;  %vm1800_vm0 = vcmp.eq.s32.totalorder %v7087_v41, 2  ;;  %vm3459_vm8 = vcmp.eq.s32.totalorder %v7082_v61, 2 }
 0x32c   : > { %v4756_v14 = vmin.u32 %v2079_v59, %v7105_v37  ;;  %v2100_v17 = vsel %vm8141_vm12, %v2099_v11, %v2075_v6  ;;  %v1928_v27 = vor.u32 %v1927_v4, %v1926_v45  ;;  %v7126_v12 = vshll.u32 %v1917_v18, 8 }
 0x32d   : > { %vm1797_vm7 = vcmp.eq.s32.totalorder %v7087_v41, 0  ;;  %vm3456_vm4 = vcmp.eq.s32.totalorder %v7082_v61, 0  ;;  %v1931_v13 = vor.u32 %v1930_v35, %v1929_v16  ;;  %v1934_v48 = vor.u32 %v1933_v31, %v1932_v46 }
 0x32e   : > { %v1937_v22 = vor.u32 %v1936_v49, %v1935_v54  ;;  %v2229_v32 = vor.u32 8388608, %v7103_v39  ;;  %vm1796_vm15 = vcmp.lt.s32.totalorder %v7087_v41, 2  ;;  %vm3455_vm3 = vcmp.lt.s32.totalorder %v7082_v61, 2 }
 0x32f   : > { %v2081_v34 = vclz %v4756_v14  ;;  %v1925_v10 = vshrl.u32 %v5058_v29, %v1924_v55  ;;  %vm2232_vm2 = vcmp.gt.s32.totalorder %v7111_v38, 0  ;;  %v2121_v6 = vshrl.u32 %v2120_v43, 23 }
 0x330   : > { %vm1793_vm5 = vweird.f32 %v6739_v47  ;;  %v7138_v36 = vsel %vm7091_vm13, 0, %v2100_v17  ;;  %v1938_v23 = vshll.u32 %v5062_v5, %v1923_v25  ;;  %v1939_v56 = vshrl.u32 %v8245_v9, %v1924_v55 }
 0x331   : > { %vm1941_vm10 = vcmp.lt.s32.totalorder %v7108_v21, 1  ;;  %v4757_v28 = vadd.s32 4294967294, %v2081_v34  ;;  %vm1943_vm11 = vcmp.lt.s32.totalorder %v7108_v21, 3  ;;  %vm1944_vm14 = vcmp.lt.s32.totalorder %v7108_v21, 4 }
 0x332   : > { %v1945_v18 = vsel %vm1941_vm10, %v1925_v10, %v1928_v27  ;;  %v1940_v39 = vor.u32 %v1939_v56, %v1938_v23  ;;  %v1946_v11 = vsel %vm1944_vm14, %v1934_v48, 2102212464  ;;  %v1949_v43 = vsel %vm1941_vm10, %v1928_v27, %v1931_v13 }
 0x333   : > { %v1950_v25 = vsel %vm1944_vm14, %v1937_v22, 920167782  ;;  %v4973_v55 = vpop.eup %4972  ;;  %vm4758_vm12 = vcmp.lt.s32.totalorder %v4757_v28, 0  ;;  %vm1942_vm9 = vcmp.lt.s32.totalorder %v7108_v21, 2  ;;  %v1947_v4 = vsel %vm1943_vm11, %v1931_v13, %v1946_v11 }
 0x334   : > { %v1951_v59 = vsel %vm1943_vm11, %v1934_v48, %v1950_v25  ;;  %v4975_v45 = vpop.eup %4974  ;;  %v1801_v16 = vxor.u32 2147483648, %v4973_v55  ;;  %v2084_v35 = vsel %vm4758_vm12, 0, %v4757_v28  ;;  %v1948_v46 = vsel %vm1942_vm9, %v1945_v18, %v1947_v4 }
 0x335   : > { %v1953_v31 = vsel %vm1941_vm10, %v1931_v13, %v1934_v48  ;;  %v1798_v54 = vxor.u32 2147483648, %v4975_v45  ;;  %v2085_v49 = vsub.s32 32, %v2084_v35  ;;  %v2089_v14 = vsub.s32 4294967266, %v2084_v35 }
 0x336   : > { %v1952_v17 = vsel %vm1942_vm9, %v1949_v43, %v1951_v59  ;;  %v1802_v27 = vsel %vm1800_vm0, %v1801_v16, %v4975_v45  ;;  %v3461_v34 = vsel %vm3459_vm8, %v1801_v16, %v4975_v45  ;;  %v2086_v10 = vshll.u32 %v7105_v37, %v2084_v35 }
 0x337   : > { %v1954_v23 = vsel %vm1944_vm14, %v1940_v39, 1326507024  ;;  %v1799_v13 = vsel %vm1797_vm7, %v4973_v55, %v1798_v54  ;;  %v3458_v48 = vsel %vm3456_vm4, %v4973_v55, %v1798_v54  ;;  %v2087_v56 = vshrl.u32 %v7096_v62, %v2085_v49 }
 0x338   : > { %v2090_v28 = vadd.s32 127, %v2089_v14  ;;  %v1803_v18 = vsel %vm1796_vm15, %v1799_v13, %v1802_v27  ;;  %v3462_v11 = vsel %vm3455_vm3, %v3458_v48, %v3461_v34  ;;  %v1955_v37 = vsel %vm1943_vm11, %v1937_v22, %v1954_v23 }
 0x339   : > { %v2233_v39 = vsel %vm2232_vm2, %v7111_v38, 0  ;;  %v1804_v43 = vsel %vm1793_vm5, nan, %v1803_v18  ;;  %v3463_v62 = vsel %vm1793_vm5, nan, %v3462_v11  ;;  %v2088_v25 = vor.u32 %v2087_v56, %v2086_v10 }
 0x33a   : > { %v2091_v55 = vshll.u32 %v2090_v28, 23  ;;  %v4610_v41 = vsel %vm4605_vm1, %v1804_v43, %v3463_v62  ;;  %v1956_v61 = vsel %vm1942_vm9, %v1953_v31, %v1955_v37  ;;  %v7201_v47 = vshrl.u32 %v2233_v39, 5 }
 0x33b   : > { %v7194_v22 = vmul.u32.u64.low %v7126_v12, %v1952_v17  ;;  %v7195_v4 = vmul.u32.u64.high %v7126_v12, %v1952_v17, %v7194_v22  ;;  %v4632_v38 = vsel %vm4627_vm6, %v6720_v3, %v4610_v41  ;;  %vm8264_vm12 = vcmask 515072  }
 0x33c   : > { %v2092_v59 = vor.u32 4788187, %v2091_v55  ;;  %4649 = vst.msk [vmem:[%s6611_s17 + $0x20] sm:$0xff] %vm8264_vm12, %v4632_v38  ;;  %v7206_v45 = vmul.u32.u64.low %v7126_v12, %v1956_v61  ;;  %v7207_v16 = vmul.u32.u64.high %v7126_v12, %v1956_v61, %v7206_v45  ;;  %v2235_v21 = vand.u32 31, %v2233_v39 }
 0x33d   : > { %v7209_v35 = vshll.u32 %v2229_v32, 8  ;;  %v2095_v54 = vcvt.s32.f32 %v2088_v25  ;;  %v2106_v49 = vadd.s32 3, %v7138_v36  ;;  %v1964_v14 = vmul.u32 %v7126_v12, %v1948_v46 }
 0x33e   : > { %v2093_v31 = vand.u32 2147483647, %v2092_v59  ;;  %v1967_v3 = vadd.s32 1, %v7195_v4  ;;  %v2236_v17 = vsub.s32 32, %v2235_v21  ;;  %vm2253_vm9 = vcmp.lt.s32.totalorder %v7201_v47, 1 }
 0x33f   : > { %v4759_v27 = vadd.s32 4294967169, %v2121_v6  ;;  %v2238_v10 = vshll.u32 %v5058_v29, %v2235_v21  ;;  %v2241_v23 = vshll.u32 %v8240_v30, %v2235_v21  ;;  %v2244_v32 = vshll.u32 %v8241_v52, %v2235_v21 }
 0x340   : > { %v2096_v34 = vmul.f32 %v2095_v54, %v2093_v31  ;;  %vm1966_vm0 = vc.u32 %v7207_v16, %v7194_v22  ;;  %v2239_v13 = vshrl.u32 %v8240_v30, %v2236_v17  ;;  %v2247_v12 = vshll.u32 %v8249_v2, %v2235_v21 }
 0x341   : > { %v2250_v46 = vshll.u32 %v5062_v5, %v2235_v21  ;;  %v1968_v56 = vsel %vm1966_vm0, %v1967_v3, %v7195_v4  ;;  %v2242_v6 = vshrl.u32 %v8241_v52, %v2236_v17  ;;  %v2245_v28 = vshrl.u32 %v8249_v2, %v2236_v17 }
 0x342   : > { %v2097_v48 = vxor.u32 2147483648, %v2096_v34  ;;  %v1969_v18 = vadd.s32 %v1968_v56, %v1964_v14  ;;  %v2240_v11 = vor.u32 %v2239_v13, %v2238_v10  ;;  %v2248_v37 = vshrl.u32 %v5062_v5, %v2236_v17 }
 0x343   : > { %v2251_v39 = vshrl.u32 %v8245_v9, %v2236_v17  ;;  %vm8265_vm8 = vcmp.lt.s32.totalorder %v6824_v1, 0  ;;  %v2243_v62 = vor.u32 %v2242_v6, %v2241_v23  ;;  %v2246_v25 = vor.u32 %v2245_v28, %v2244_v32 }
 0x344   : > { %v2098_v43 = vsel %vm8265_vm8, %v2097_v48, %v2096_v34  ;;  %vm2254_vm7 = vcmp.lt.s32.totalorder %v7201_v47, 2  ;;  %v1970_v41 = vadd.s32 536870912, %v1969_v18  ;;  %v2249_v61 = vor.u32 %v2248_v37, %v2247_v12 }
 0x345   : > { %v2101_v55 = vsel %vm7091_vm13, %v6824_v1, %v2098_v43  ;;  %v2252_v4 = vor.u32 %v2251_v39, %v2250_v46  ;;  %vm2255_vm4 = vcmp.lt.s32.totalorder %v7201_v47, 3  ;;  %vm2256_vm15 = vcmp.lt.s32.totalorder %v7201_v47, 4 }
 0x346   : > { %4976 = vcosq.f32 %v2101_v55  ;;  %v2261_v38 = vsel %vm2253_vm9, %v2240_v11, %v2243_v62  ;;  %v1971_v59 = vshrl.u32 %v1970_v41, 30  ;;  %v2237_v45 = vshrl.u32 %v5058_v29, %v2236_v17 }
 0x347   : > { %4978 = vsinq.f32 %v2101_v55  ;;  %v2262_v21 = vsel %vm2256_vm15, %v2249_v61, 920167782  ;;  %v2258_v31 = vsel %vm2256_vm15, %v2246_v25, 2102212464  ;;  %v2265_v54 = vsel %vm2253_vm9, %v2243_v62, %v2246_v25 }
 0x348   : > { %v2263_v44 = vsel %vm2255_vm4, %v2246_v25, %v2262_v21  ;;  %v2266_v14 = vsel %vm2256_vm15, %v2252_v4, 1326507024  ;;  %v3763_v3 = vand.u32 3, %v7138_v36  ;;  %v1972_v34 = vshll.u32 %v1971_v59, 30 }
 0x349   : > { %v2264_v10 = vsel %vm2254_vm7, %v2261_v38, %v2263_v44  ;;  %v2267_v23 = vsel %vm2255_vm4, %v2249_v61, %v2266_v14  ;;  %v2257_v17 = vsel %vm2253_vm9, %v2237_v45, %v2240_v11  ;;  %v2259_v36 = vsel %vm2255_vm4, %v2243_v62, %v2258_v31 }
 0x34a   : > { %v2268_v32 = vsel %vm2254_vm7, %v2265_v54, %v2267_v23  ;;  %v7253_v13 = vmul.u32.u64.low %v7209_v35, %v2264_v10  ;;  %v7254_v12 = vmul.u32.u64.high %v7209_v35, %v2264_v10, %v7253_v13  ;;  %v7257_v46 = vsub.s32 %v1969_v18, %v1972_v34 }
 0x34b   : > { %v7262_v48 = vmul.u32.u64.low %v7209_v35, %v2268_v32  ;;  %v7263_v56 = vmul.u32.u64.high %v7209_v35, %v2268_v32, %v7262_v48  ;;  %v2107_v6 = vand.u32 3, %v2106_v49  ;;  %v2127_v28 = vadd.s32 1, %v4759_v27 }
 0x34c   : > { %vm2105_vm13 = vweird.f32 %v6824_v1  ;;  %vm7268_vm3 = vcmp.le.f32.partialorder %v1909_v20, 0.7853982  ;;  %vm1911_vm2 = vcmp.lt.s32.totalorder %v6981_v19, 0  ;;  %v1975_v18 = vsub.s32 0, %v7257_v46  ;;  %v1220_v48 = vpop.permute.xlu1 %1219 }
 0x34d   : > { %v1995_v37 = vsub.s32 4, %v1971_v59  ;;  %v2260_v39 = vsel %vm2254_vm7, %v2257_v17, %v2259_v36  ;;  %v2279_v43 = vadd.s32 1, %v7254_v12  ;;  %vm2128_vm5 = vcmp.gt.s32.totalorder %v2127_v28, 0 }
 0x34e   : > { %vm3764_vm10 = vcmp.lt.s32.totalorder %v3763_v3, 2  ;;  %vm3765_vm11 = vcmp.eq.s32.totalorder %v3763_v3, 0  ;;  %v4752_v49 = vmin.u32 %v1975_v18, %v7257_v46  ;;  %v2117_v20 = vand.u32 2147483647, %v7080_v53 }
 0x34f   : > { %vm2108_vm14 = vcmp.lt.s32.totalorder %v2107_v6, 2  ;;  %vm2109_vm12 = vcmp.eq.s32.totalorder %v2107_v6, 0  ;;  %vm3768_vm9 = vcmp.eq.s32.totalorder %v3763_v3, 2  ;;  %vm2278_vm0 = vc.u32 %v7263_v56, %v7253_v13 }
 0x350   : > { %v4977_v27 = vpop.eup %4976  ;;  %v1977_v47 = vclz %v4752_v49  ;;  %v2276_v55 = vmul.u32 %v7209_v35, %v2260_v39  ;;  %v2129_v41 = vsel %vm2128_vm5, %v2127_v28, 0  ;;  %vm2112_vm8 = vcmp.eq.s32.totalorder %v2107_v6, 2 }
 0x351   : > { %v4979_v62 = vpop.eup %4978  ;;  %v2113_v25 = vxor.u32 2147483648, %v4977_v27  ;;  %v1996_v4 = vsel %vm1911_vm2, %v1995_v37, %v1971_v59  ;;  %v2280_v38 = vsel %vm2278_vm0, %v2279_v43, %v7254_v12  ;;  %v1965_v34 = vadd.s32 %v7194_v22, %v7207_v16 }
 0x352   : > { %v2110_v61 = vxor.u32 2147483648, %v4979_v62  ;;  %v4753_v31 = vadd.s32 4294967294, %v1977_v47  ;;  %v2281_v44 = vadd.s32 %v2280_v38, %v2276_v55  ;;  %v2131_v35 = vand.u32 31, %v2129_v41 }
 0x353   : > { %v2114_v45 = vsel %vm2112_vm8, %v2113_v25, %v4979_v62  ;;  %v3770_v21 = vsel %vm3768_vm9, %v2113_v25, %v4979_v62  ;;  %v1998_v36 = vsel %vm7268_vm3, 0, %v1996_v4  ;;  %v7301_v6 = vand.u32 8388607, %v2117_v20 }
 0x354   : > { %v2111_v54 = vsel %vm2109_vm12, %v4977_v27, %v2110_v61  ;;  %v3767_v14 = vsel %vm3765_vm11, %v4977_v27, %v2110_v61  ;;  %vm4754_vm7 = vcmp.lt.s32.totalorder %v4753_v31, 0  ;;  %v2282_v59 = vadd.s32 536870912, %v2281_v44 }
 0x355   : > { %v2115_v10 = vsel %vm2108_vm14, %v2111_v54, %v2114_v45  ;;  %v3771_v23 = vsel %vm3764_vm10, %v3767_v14, %v3770_v21  ;;  %v1980_v12 = vsel %vm4754_vm7, 0, %v4753_v31  ;;  %v2132_v18 = vsub.s32 32, %v2131_v35 }
 0x356   : > { %v2116_v17 = vsel %vm2105_vm13, nan, %v2115_v10  ;;  %v3772_v32 = vsel %vm2105_vm13, nan, %v3771_v23  ;;  %v1981_v16 = vsub.s32 32, %v1980_v12  ;;  %v1985_v3 = vsub.s32 4294967266, %v1980_v12 }
 0x357   : > { %v4613_v22 = vsel %vm4605_vm1, %v2116_v17, %v3772_v32  ;;  %v7306_v1 = vshrl.u32 %v2282_v59, 30  ;;  %vm8268_vm4 = vcmask 515072   ;;  %v1982_v37 = vshll.u32 %v7257_v46, %v1980_v12 }
 0x358   : > { %v4635_v28 = vsel %vm4627_vm6, %v6780_v24, %v4613_v22  ;;  %v1983_v39 = vshrl.u32 %v1965_v34, %v1981_v16  ;;  %v1986_v43 = vadd.s32 127, %v1985_v3  ;;  %vm8269_vm15 = vcmask 392192  }
 0x359   : > { %4652 = vst.msk [vmem:[%s6611_s17 + $0x38] sm:$0xff] %vm8268_vm4, %v4635_v28  ;;  %v7313_v49 = vsel %vm8269_vm15, %v6245_v57, %v1220_v48  ;;  %v2002_v27 = vadd.s32 3, %v1998_v36  ;;  %v2284_v62 = vshll.u32 %v7306_v1, 30  ;;  %v7316_v55 = vand.u32 3, %v1998_v36 }
 0x35a   : > { %v1984_v25 = vor.u32 %v1983_v39, %v1982_v37  ;;  %v1987_v47 = vshll.u32 %v1986_v43, 23  ;;  %v2125_v24 = vor.u32 8388608, %v7301_v6  ;;  %v2135_v4 = vshrl.u32 %v8240_v30, %v2132_v18 }
 0x35b   : > { %v7319_v61 = vsub.s32 %v2281_v44, %v2284_v62  ;;  %v2138_v46 = vshrl.u32 %v8241_v52, %v2132_v18  ;;  %v7325_v38 = vmul.f32 %v6820_v33, %v7313_v49  ;;  %v7327_v45 = vshrl.u32 %v2129_v41, 5 }
 0x35c   : > { %v1988_v57 = vor.u32 4788187, %v1987_v47  ;;  %v2134_v21 = vshll.u32 %v5058_v29, %v2131_v35  ;;  %v2141_v31 = vshrl.u32 %v8249_v2, %v2132_v18  ;;  %v2137_v44 = vshll.u32 %v8240_v30, %v2131_v35 }
 0x35d   : > { %v2287_v54 = vsub.s32 0, %v7319_v61  ;;  %v2140_v14 = vshll.u32 %v8241_v52, %v2131_v35  ;;  %v2144_v34 = vshrl.u32 %v5062_v5, %v2132_v18  ;;  %v1991_v23 = vcvt.s32.f32 %v1984_v25 }
 0x35e   : > { %v1989_v10 = vand.u32 2147483647, %v1988_v57  ;;  %v2143_v33 = vshll.u32 %v8249_v2, %v2131_v35  ;;  %v2147_v59 = vshrl.u32 %v8245_v9, %v2132_v18  ;;  %v7337_v41 = vand.u32 3, %v2002_v27 }
 0x35f   : > { %v4764_v17 = vmin.u32 %v2287_v54, %v7319_v61  ;;  %v2136_v32 = vor.u32 %v2135_v4, %v2134_v21  ;;  %v2139_v12 = vor.u32 %v2138_v46, %v2137_v44  ;;  %v2142_v48 = vor.u32 %v2141_v31, %v2140_v14 }
 0x360   : > { %v1992_v36 = vmul.f32 %v1991_v23, %v1989_v10  ;;  %v2145_v22 = vor.u32 %v2144_v34, %v2143_v33  ;;  %v2146_v16 = vshll.u32 %v5062_v5, %v2131_v35  ;;  %vm2223_vm13 = vcmp.lt.s32.totalorder %v7052_v40, 0 }
 0x361   : > { %v2277_v3 = vadd.s32 %v7253_v13, %v7263_v56  ;;  %v2289_v6 = vclz %v4764_v17  ;;  %v2133_v28 = vshrl.u32 %v5058_v29, %v2132_v18  ;;  %vm2149_vm5 = vcmp.lt.s32.totalorder %v7327_v45, 1 }
 0x362   : > { %v1993_v37 = vxor.u32 2147483648, %v1992_v36  ;;  %v2307_v39 = vsub.s32 4, %v7306_v1  ;;  %v2148_v43 = vor.u32 %v2147_v59, %v2146_v16  ;;  %vm2152_vm10 = vcmp.lt.s32.totalorder %v7327_v45, 4 }
 0x363   : > { %v4765_v27 = vadd.s32 4294967294, %v2289_v6  ;;  %vm2151_vm11 = vcmp.lt.s32.totalorder %v7327_v45, 3  ;;  %v2157_v35 = vsel %vm2149_vm5, %v2136_v32, %v2139_v12  ;;  %v2158_v62 = vsel %vm2152_vm10, %v2145_v22, 920167782 }
 0x364   : > { %v1994_v13 = vsel %vm1911_vm2, %v1993_v37, %v1992_v36  ;;  %vm2150_vm14 = vcmp.lt.s32.totalorder %v7327_v45, 2  ;;  %v2154_v56 = vsel %vm2152_vm10, %v2142_v48, 2102212464  ;;  %v2159_v18 = vsel %vm2151_vm11, %v2142_v48, %v2158_v62 }
 0x365   : > { %v1997_v25 = vsel %vm7268_vm3, %v6981_v19, %v1994_v13  ;;  %vm4766_vm12 = vcmp.lt.s32.totalorder %v4765_v27, 0  ;;  %v2160_v47 = vsel %vm2150_vm14, %v2157_v35, %v2159_v18  ;;  %v2161_v4 = vsel %vm2149_vm5, %v2139_v12, %v2142_v48 }
 0x366   : > { %4980 = vcosq.f32 %v1997_v25  ;;  %v2292_v46 = vsel %vm4766_vm12, 0, %v4765_v27  ;;  %v2162_v57 = vsel %vm2152_vm10, %v2148_v43, 1326507024  ;;  %v2165_v21 = vshll.u32 %v2125_v24, 8 }
 0x367   : > { %4982 = vsinq.f32 %v1997_v25  ;;  %v2293_v31 = vsub.s32 32, %v2292_v46  ;;  %v2297_v54 = vsub.s32 4294967266, %v2292_v46  ;;  %v2153_v44 = vsel %vm2149_vm5, %v2133_v28, %v2136_v32 }
 0x368   : > { %v2155_v11 = vsel %vm2151_vm11, %v2139_v12, %v2154_v56  ;;  %v2163_v14 = vsel %vm2151_vm11, %v2145_v22, %v2162_v57  ;;  %v7369_v34 = vmul.u32.u64.low %v2165_v21, %v2160_v47  ;;  %v7370_v10 = vmul.u32.u64.high %v2165_v21, %v2160_v47, %v7369_v34 }
 0x369   : > { %v2294_v23 = vshll.u32 %v7319_v61, %v2292_v46  ;;  %v2295_v33 = vshrl.u32 %v2277_v3, %v2293_v31  ;;  %v2298_v24 = vadd.s32 127, %v2297_v54  ;;  %v2164_v59 = vsel %vm2150_vm14, %v2161_v4, %v2163_v14 }
 0x36a   : > { %v2308_v17 = vsel %vm2223_vm13, %v2307_v39, %v7306_v1  ;;  %v7379_v32 = vmul.u32.u64.low %v2165_v21, %v2164_v59  ;;  %v7380_v12 = vmul.u32.u64.high %v2165_v21, %v2164_v59, %v7379_v32  ;;  %v2432_v36 = vand.u32 2139095040, %v7325_v38  ;;  %v1218_v39 = vpop.permute.xlu0 %1217 }
 0x36b   : > { %vm7385_vm3 = vcmp.le.f32.partialorder %v2221_v50, 0.7853982  ;;  %v2296_v61 = vor.u32 %v2295_v33, %v2294_v23  ;;  %v2299_v22 = vshll.u32 %v2298_v24, 23  ;;  %v2156_v16 = vsel %vm2150_vm14, %v2153_v44, %v2155_v11  ;;  %v7422_v24 = vld [vmem:[%s8121_s1] ss:$0 sm:$0xff] }
 0x36c   : > { %vm3661_vm2 = vcmp.lt.s32.totalorder %v7316_v55, 2  ;;  %vm3662_vm9 = vcmp.eq.s32.totalorder %v7316_v55, 0  ;;  %v2175_v1 = vadd.s32 1, %v7370_v10  ;;  %v2433_v3 = vshrl.u32 %v2432_v36, 23 }
 0x36d   : > { %vm2001_vm0 = vweird.f32 %v6981_v19  ;;  %vm2004_vm8 = vcmp.lt.s32.totalorder %v7337_v41, 2  ;;  %vm3665_vm7 = vcmp.eq.s32.totalorder %v7316_v55, 2  ;;  %v2300_v50 = vor.u32 4788187, %v2299_v22 }
 0x36e   : > { %v2310_v6 = vsel %vm7385_vm3, 0, %v2308_v17  ;;  %v2172_v28 = vmul.u32 %v2165_v21, %v2156_v16  ;;  %vm2174_vm4 = vc.u32 %v7380_v12, %v7369_v34  ;;  %v2429_v45 = vand.u32 2147483647, %v7325_v38 }
 0x36f   : > { %v4771_v37 = vadd.s32 4294967169, %v2433_v3  ;;  %vm2005_vm15 = vcmp.eq.s32.totalorder %v7337_v41, 0  ;;  %v2301_v43 = vand.u32 2147483647, %v2300_v50  ;;  %v2303_v27 = vcvt.s32.f32 %v2296_v61 }
 0x370   : > { %v2176_v35 = vsel %vm2174_vm4, %v2175_v1, %v7370_v10  ;;  %v4981_v62 = vpop.eup %4980  ;;  %vm2008_vm5 = vcmp.eq.s32.totalorder %v7337_v41, 2  ;;  %v2314_v13 = vadd.s32 3, %v2310_v6  ;;  %v7405_v46 = vand.u32 3, %v2310_v6 }
 0x371   : > { %v2177_v56 = vadd.s32 %v2176_v35, %v2172_v28  ;;  %v2439_v18 = vadd.s32 1, %v4771_v37  ;;  %v4983_v25 = vpop.eup %4982  ;;  %v2009_v47 = vxor.u32 2147483648, %v4981_v62  ;;  %v2304_v4 = vmul.f32 %v2303_v27, %v2301_v43 }
 0x372   : > { %vm8272_vm10 = vcmask 392192   ;;  %v2006_v21 = vxor.u32 2147483648, %v4983_v25  ;;  %v2436_v54 = vand.u32 8388607, %v2429_v45  ;;  %v7443_v55 = vand.u32 3, %v2314_v13 }
 0x373   : > { %v7409_v57 = vsel %vm8272_vm10, %v6248_v0, %v1218_v39  ;;  %v2178_v31 = vadd.s32 536870912, %v2177_v56  ;;  %vm2440_vm11 = vcmp.gt.s32.totalorder %v2439_v18, 0  ;;  %v2010_v44 = vsel %vm2008_vm5, %v2009_v47, %v4983_v25 }
 0x374   : > { %v3667_v11 = vsel %vm3665_vm7, %v2009_v47, %v4983_v25  ;;  %v2305_v14 = vxor.u32 2147483648, %v2304_v4  ;;  %v2441_v10 = vsel %vm2440_vm11, %v2439_v18, 0  ;;  %v2007_v23 = vsel %vm2005_vm15, %v4981_v62, %v2006_v21 }
 0x375   : > { %v3664_v33 = vsel %vm3662_vm9, %v4981_v62, %v2006_v21  ;;  %v2179_v0 = vshrl.u32 %v2178_v31, 30  ;;  %v7426_v59 = vmul.f32 %v7422_v24, %v7409_v57  ;;  %v2011_v17 = vsel %vm2004_vm8, %v2007_v23, %v2010_v44 }
 0x376   : > { %v3668_v32 = vsel %vm3661_vm2, %v3664_v33, %v3667_v11  ;;  %v2306_v36 = vsel %vm2223_vm13, %v2305_v14, %v2304_v4  ;;  %v2443_v61 = vand.u32 31, %v2441_v10  ;;  %v2012_v22 = vsel %vm2001_vm0, nan, %v2011_v17 }
 0x377   : > { %v3669_v16 = vsel %vm2001_vm0, nan, %v3668_v32  ;;  %v2309_v1 = vsel %vm7385_vm3, %v7052_v40, %v2306_v36  ;;  %v2180_v41 = vshll.u32 %v2179_v0, 30  ;;  %vm8273_vm13 = vcmask 515072  }
 0x378   : > { %v4612_v3 = vsel %vm4605_vm1, %v2012_v22, %v3669_v16  ;;  %4984 = vcosq.f32 %v2309_v1  ;;  %v2444_v50 = vsub.s32 32, %v2443_v61  ;;  %v2437_v19 = vor.u32 8388608, %v2436_v54 }
 0x379   : > { %v4634_v6 = vsel %vm4627_vm6, %v6960_v15, %v4612_v3  ;;  %4986 = vsinq.f32 %v2309_v1  ;;  %v7448_v28 = vsub.s32 %v2177_v56, %v2180_v41  ;;  %vm2119_vm14 = vcmp.lt.s32.totalorder %v7080_v53, 0 }
 0x37a   : > { %4651 = vst.msk [vmem:[%s6611_s17 + $0x30] sm:$0xff] %vm8273_vm13, %v4634_v6  ;;  %v2447_v37 = vshrl.u32 %v8240_v30, %v2444_v50  ;;  %v2328_v39 = vand.u32 2139095040, %v7426_v59  ;;  %vm2320_vm12 = vcmp.eq.s32.totalorder %v7443_v55, 2  ;;  %vm3974_vm3 = vcmp.eq.s32.totalorder %v7405_v46, 2 }
 0x37b   : > { %v2183_v48 = vsub.s32 0, %v7448_v28  ;;  %v2203_v43 = vsub.s32 4, %v2179_v0  ;;  %v7458_v15 = vshrl.u32 %v2441_v10, 5  ;;  %v2450_v27 = vshrl.u32 %v8241_v52, %v2444_v50 }
 0x37c   : > { %v2453_v35 = vshrl.u32 %v8249_v2, %v2444_v50  ;;  %vm2317_vm2 = vcmp.eq.s32.totalorder %v7443_v55, 0  ;;  %vm3971_vm9 = vcmp.eq.s32.totalorder %v7405_v46, 0  ;;  %v2446_v13 = vshll.u32 %v5058_v29, %v2443_v61 }
 0x37d   : > { %v4760_v62 = vmin.u32 %v2183_v48, %v7448_v28  ;;  %v2455_v56 = vshll.u32 %v8249_v2, %v2443_v61  ;;  %v2456_v18 = vshrl.u32 %v5062_v5, %v2444_v50  ;;  %vm2316_vm0 = vcmp.lt.s32.totalorder %v7443_v55, 2 }
 0x37e   : > { %vm3970_vm8 = vcmp.lt.s32.totalorder %v7405_v46, 2  ;;  %v2173_v25 = vadd.s32 %v7369_v34, %v7380_v12  ;;  %v2449_v47 = vshll.u32 %v8240_v30, %v2443_v61  ;;  %v2452_v4 = vshll.u32 %v8241_v52, %v2443_v61 }
 0x37f   : > { %v7474_v21 = vshll.u32 %v2437_v19, 8  ;;  %vm2313_vm7 = vweird.f32 %v7052_v40  ;;  %v2185_v31 = vclz %v4760_v62  ;;  %v2448_v54 = vor.u32 %v2447_v37, %v2446_v13 }
 0x380   : > { %v2457_v44 = vor.u32 %v2456_v18, %v2455_v56  ;;  %v2329_v11 = vshrl.u32 %v2328_v39, 23  ;;  %v2451_v14 = vor.u32 %v2450_v27, %v2449_v47  ;;  %v2454_v10 = vor.u32 %v2453_v35, %v2452_v4 }
 0x381   : > { %v2458_v23 = vshll.u32 %v5062_v5, %v2443_v61  ;;  %v2459_v33 = vshrl.u32 %v8245_v9, %v2444_v50  ;;  %v4761_v17 = vadd.s32 4294967294, %v2185_v31  ;;  %v2204_v34 = vsel %vm2119_vm14, %v2203_v43, %v2179_v0 }
 0x382   : > { %v2445_v12 = vshrl.u32 %v5058_v29, %v2444_v50  ;;  %vm2461_vm4 = vcmp.lt.s32.totalorder %v7458_v15, 1  ;;  %v4985_v32 = vpop.eup %4984  ;;  %vm2462_vm15 = vcmp.lt.s32.totalorder %v7458_v15, 2  ;;  %vm2463_vm5 = vcmp.lt.s32.totalorder %v7458_v15, 3 }
 0x383   : > { %v2460_v36 = vor.u32 %v2459_v33, %v2458_v23  ;;  %vm2464_vm10 = vcmp.lt.s32.totalorder %v7458_v15, 4  ;;  %v4987_v22 = vpop.eup %4986  ;;  %v2321_v61 = vxor.u32 2147483648, %v4985_v32  ;;  %vm4762_vm11 = vcmp.lt.s32.totalorder %v4761_v17, 0 }
 0x384   : > { %v2465_v16 = vsel %vm2461_vm4, %v2445_v12, %v2448_v54  ;;  %v2470_v0 = vsel %vm2464_vm10, %v2457_v44, 920167782  ;;  %v2318_v1 = vxor.u32 2147483648, %v4987_v22  ;;  %v2188_v41 = vsel %vm4762_vm11, 0, %v4761_v17 }
 0x385   : > { %v2469_v3 = vsel %vm2461_vm4, %v2448_v54, %v2451_v14  ;;  %v2471_v50 = vsel %vm2463_vm5, %v2454_v10, %v2470_v0  ;;  %v2322_v6 = vsel %vm2320_vm12, %v2321_v61, %v4987_v22  ;;  %v3976_v19 = vsel %vm3974_vm3, %v2321_v61, %v4987_v22 }
 0x386   : > { %v2189_v48 = vsub.s32 32, %v2188_v41  ;;  %v2466_v37 = vsel %vm2464_vm10, %v2454_v10, 2102212464  ;;  %v2319_v39 = vsel %vm2317_vm2, %v4985_v32, %v2318_v1  ;;  %v3973_v43 = vsel %vm3971_vm9, %v4985_v32, %v2318_v1 }
 0x387   : > { %v2190_v27 = vshll.u32 %v7448_v28, %v2188_v41  ;;  %v2193_v35 = vsub.s32 4294967266, %v2188_v41  ;;  %v2323_v62 = vsel %vm2316_vm0, %v2319_v39, %v2322_v6  ;;  %v3977_v13 = vsel %vm3970_vm8, %v3973_v43, %v3976_v19 }
 0x388   : > { %v2191_v56 = vshrl.u32 %v2173_v25, %v2189_v48  ;;  %v2472_v18 = vsel %vm2462_vm15, %v2469_v3, %v2471_v50  ;;  %v2324_v47 = vsel %vm2313_vm7, nan, %v2323_v62  ;;  %v3978_v4 = vsel %vm2313_vm7, nan, %v3977_v13  ;;  %v1224_v50 = vpop.permute.xlu1 %1223 }
 0x389   : > { %v2194_v31 = vadd.s32 127, %v2193_v35  ;;  %v2473_v28 = vsel %vm2461_vm4, %v2451_v14, %v2454_v10  ;;  %v4615_v55 = vsel %vm4605_vm1, %v2324_v47, %v3978_v4  ;;  %v2467_v25 = vsel %vm2463_vm5, %v2451_v14, %v2466_v37 }
 0x38a   : > { %v2192_v46 = vor.u32 %v2191_v56, %v2190_v27  ;;  %v2474_v54 = vsel %vm2464_vm10, %v2460_v36, 1326507024  ;;  %v4637_v23 = vsel %vm4627_vm6, %v6985_v58, %v4615_v55  ;;  %v4767_v17 = vadd.s32 4294967169, %v2329_v11 }
 0x38b   : > { %v2195_v40 = vshll.u32 %v2194_v31, 23  ;;  %v2475_v33 = vsel %vm2463_vm5, %v2457_v44, %v2474_v54  ;;  %4654 = vst.msk [vmem:[%s6611_s17 + $0x48] sm:$0xff] %vm8273_vm13, %v4637_v23  ;;  %vm7532_vm12 = vcmp.le.f32.partialorder %v2117_v20, 0.7853982  ;;  %v2468_v20 = vsel %vm2462_vm15, %v2465_v16, %v2467_v25 }
 0x38c   : > { %v2476_v14 = vsel %vm2462_vm15, %v2473_v28, %v2475_v33  ;;  %v7539_v12 = vmul.u32.u64.low %v7474_v21, %v2472_v18  ;;  %v7540_v32 = vmul.u32.u64.high %v7474_v21, %v2472_v18, %v7539_v12  ;;  %v2206_v44 = vsel %vm7532_vm12, 0, %v2204_v34 }
 0x38d   : > { %v2196_v58 = vor.u32 4788187, %v2195_v40  ;;  %v7546_v11 = vmul.u32.u64.low %v7474_v21, %v2476_v14  ;;  %v7547_v36 = vmul.u32.u64.high %v7474_v21, %v2476_v14, %v7546_v11  ;;  %v2335_v22 = vadd.s32 1, %v4767_v17 }
 0x38e   : > { %v2199_v0 = vcvt.s32.f32 %v2192_v46  ;;  %v2325_v1 = vand.u32 2147483647, %v7426_v59  ;;  %v2210_v41 = vadd.s32 3, %v2206_v44  ;;  %v2487_v3 = vadd.s32 1, %v7540_v32  ;;  %v1222_v11 = vpop.permute.xlu0 %1221 }
 0x38f   : > { %v2197_v61 = vand.u32 2147483647, %v2196_v58  ;;  %vm2336_vm3 = vcmp.gt.s32.totalorder %v2335_v22, 0  ;;  %v2484_v34 = vmul.u32 %v7474_v21, %v2468_v20  ;;  %vm2486_vm2 = vc.u32 %v7547_v36, %v7539_v12 }
 0x390   : > { %v2337_v19 = vsel %vm2336_vm3, %v2335_v22, 0  ;;  %v2488_v15 = vsel %vm2486_vm2, %v2487_v3, %v7540_v32  ;;  %v2332_v39 = vand.u32 8388607, %v2325_v1  ;;  %vm8276_vm9 = vcmask 392192  }
 0x391   : > { %v2200_v6 = vmul.f32 %v2199_v0, %v2197_v61  ;;  %v2339_v16 = vand.u32 31, %v2337_v19  ;;  %v2489_v37 = vadd.s32 %v2488_v15, %v2484_v34  ;;  %v7561_v43 = vsel %vm8276_vm9, %v6251_v51, %v1224_v50  ;;  %vm8277_vm13 = vmmov %vm8276_vm9 }
 0x392   : > { %v7563_v27 = vand.u32 3, %v2210_v41  ;;  %v7565_v35 = vand.u32 3, %v2206_v44  ;;  %v7567_v21 = vshrl.u32 %v2337_v19, 5  ;;  %v2333_v32 = vor.u32 8388608, %v2332_v39 }
 0x393   : > { %v2201_v48 = vxor.u32 2147483648, %v2200_v6  ;;  %v2340_v62 = vsub.s32 32, %v2339_v16  ;;  %v2490_v56 = vadd.s32 536870912, %v2489_v37  ;;  %v2342_v18 = vshll.u32 %v5058_v29, %v2339_v16 }
 0x394   : > { %v2345_v47 = vshll.u32 %v8240_v30, %v2339_v16  ;;  %v2351_v28 = vshll.u32 %v8249_v2, %v2339_v16  ;;  %v2348_v54 = vshll.u32 %v8241_v52, %v2339_v16  ;;  %v2354_v23 = vshll.u32 %v5062_v5, %v2339_v16 }
 0x395   : > { %v2202_v13 = vsel %vm2119_vm14, %v2201_v48, %v2200_v6  ;;  %v2343_v4 = vshrl.u32 %v8240_v30, %v2340_v62  ;;  %v2346_v31 = vshrl.u32 %v8241_v52, %v2340_v62  ;;  %v7579_v55 = vshrl.u32 %v2490_v56, 30 }
 0x396   : > { %v2205_v51 = vsel %vm7532_vm12, %v7080_v53, %v2202_v13  ;;  %v2349_v46 = vshrl.u32 %v8249_v2, %v2340_v62  ;;  %v2352_v25 = vshrl.u32 %v5062_v5, %v2340_v62  ;;  %v2355_v40 = vshrl.u32 %v8245_v9, %v2340_v62 }
 0x397   : > { %4988 = vcosq.f32 %v2205_v51  ;;  %v2492_v33 = vshll.u32 %v7579_v55, 30  ;;  %v2344_v17 = vor.u32 %v2343_v4, %v2342_v18  ;;  %v2347_v10 = vor.u32 %v2346_v31, %v2345_v47 }
 0x398   : > { %4990 = vsinq.f32 %v2205_v51  ;;  %v2353_v14 = vor.u32 %v2352_v25, %v2351_v28  ;;  %v2350_v58 = vor.u32 %v2349_v46, %v2348_v54  ;;  %v2356_v44 = vor.u32 %v2355_v40, %v2354_v23 }
 0x399   : > { %vm3871_vm14 = vcmp.eq.s32.totalorder %v7565_v35, 2  ;;  %v7588_v20 = vsub.s32 %v2489_v37, %v2492_v33  ;;  %vm2360_vm0 = vcmp.lt.s32.totalorder %v7567_v21, 4  ;;  %vm2213_vm8 = vcmp.eq.s32.totalorder %v7563_v27, 0 }
 0x39a   : > { %vm2216_vm7 = vcmp.eq.s32.totalorder %v7563_v27, 2  ;;  %vm3868_vm4 = vcmp.eq.s32.totalorder %v7565_v35, 0  ;;  %vm2357_vm15 = vcmp.lt.s32.totalorder %v7567_v21, 1  ;;  %v2366_v22 = vsel %vm2360_vm0, %v2353_v14, 920167782 }
 0x39b   : > { %v7599_v61 = vmul.f32 %v7422_v24, %v7561_v43  ;;  %vm2212_vm5 = vcmp.lt.s32.totalorder %v7563_v27, 2  ;;  %vm3867_vm10 = vcmp.lt.s32.totalorder %v7565_v35, 2  ;;  %v2495_v0 = vsub.s32 0, %v7588_v20 }
 0x39c   : > { %vm2359_vm11 = vcmp.lt.s32.totalorder %v7567_v21, 3  ;;  %v2365_v41 = vsel %vm2357_vm15, %v2344_v17, %v2347_v10  ;;  %v7609_v3 = vsel %vm8277_vm13, %v6254_v42, %v1222_v11  ;;  %vm2209_vm12 = vweird.f32 %v7080_v53 }
 0x39d   : > { %vm2431_vm3 = vcmp.lt.s32.totalorder %v7325_v38, 0  ;;  %v2362_v50 = vsel %vm2360_vm0, %v2350_v58, 2102212464  ;;  %v2367_v6 = vsel %vm2359_vm11, %v2350_v58, %v2366_v22  ;;  %v2370_v34 = vsel %vm2360_vm0, %v2356_v44, 1326507024 }
 0x39e   : > { %v2373_v19 = vshll.u32 %v2333_v32, 8  ;;  %v4772_v15 = vmin.u32 %v2495_v0, %v7588_v20  ;;  %v2341_v16 = vshrl.u32 %v5058_v29, %v2340_v62  ;;  %vm2358_vm2 = vcmp.lt.s32.totalorder %v7567_v21, 2 }
 0x39f   : > { %v2369_v42 = vsel %vm2357_vm15, %v2347_v10, %v2350_v58  ;;  %v2368_v48 = vsel %vm2358_vm2, %v2365_v41, %v2367_v6  ;;  %v2371_v37 = vsel %vm2359_vm11, %v2353_v14, %v2370_v34  ;;  %v2637_v39 = vand.u32 2147483647, %v7599_v61 }
 0x3a0   : > { %v2640_v13 = vand.u32 2139095040, %v7599_v61  ;;  %v2497_v18 = vclz %v4772_v15  ;;  %v2515_v47 = vsub.s32 4, %v7579_v55  ;;  %v2361_v62 = vsel %vm2357_vm15, %v2341_v16, %v2344_v17  ;;  %vm8281_vm15 = vmmov %vm8277_vm13 }
 0x3a1   : > { %v4989_v56 = vpop.eup %4988  ;;  %v2363_v51 = vsel %vm2359_vm11, %v2347_v10, %v2362_v50  ;;  %v2372_v28 = vsel %vm2358_vm2, %v2369_v42, %v2371_v37  ;;  %v7637_v46 = vmul.u32.u64.low %v2373_v19, %v2368_v48  ;;  %v7638_v25 = vmul.u32.u64.high %v2373_v19, %v2368_v48, %v7637_v46 }
 0x3a2   : > { %v4991_v4 = vpop.eup %4990  ;;  %v2217_v31 = vxor.u32 2147483648, %v4989_v56  ;;  %v4773_v23 = vadd.s32 4294967294, %v2497_v18  ;;  %v7640_v40 = vmul.u32.u64.low %v2373_v19, %v2372_v28  ;;  %v7641_v33 = vmul.u32.u64.high %v2373_v19, %v2372_v28, %v7640_v40  ;;  %v1228_v28 = vpop.permute.xlu1 %1227 }
 0x3a3   : > { %v2214_v54 = vxor.u32 2147483648, %v4991_v4  ;;  %v2485_v10 = vadd.s32 %v7539_v12, %v7547_v36  ;;  %v2364_v32 = vsel %vm2358_vm2, %v2361_v62, %v2363_v51  ;;  %v2641_v11 = vshrl.u32 %v2640_v13, 23 }
 0x3a4   : > { %v2218_v14 = vsel %vm2216_vm7, %v2217_v31, %v4991_v4  ;;  %v3873_v17 = vsel %vm3871_vm14, %v2217_v31, %v4991_v4  ;;  %vm4774_vm9 = vcmp.lt.s32.totalorder %v4773_v23, 0  ;;  %v2383_v12 = vadd.s32 1, %v7638_v25 }
 0x3a5   : > { %v2215_v58 = vsel %vm2213_vm8, %v4989_v56, %v2214_v54  ;;  %v3870_v44 = vsel %vm3868_vm4, %v4989_v56, %v2214_v54  ;;  %v2500_v41 = vsel %vm4774_vm9, 0, %v4773_v23  ;;  %v2516_v6 = vsel %vm2431_vm3, %v2515_v47, %v7579_v55 }
 0x3a6   : > { %v2219_v22 = vsel %vm2212_vm5, %v2215_v58, %v2218_v14  ;;  %v3874_v0 = vsel %vm3867_vm10, %v3870_v44, %v3873_v17  ;;  %v2501_v50 = vsub.s32 32, %v2500_v41  ;;  %v2505_v35 = vsub.s32 4294967266, %v2500_v41 }
 0x3a7   : > { %v2220_v36 = vsel %vm2209_vm12, nan, %v2219_v22  ;;  %v3875_v21 = vsel %vm2209_vm12, nan, %v3874_v0  ;;  %v2380_v34 = vmul.u32 %v2373_v19, %v2364_v32  ;;  %vm2382_vm14 = vc.u32 %v7641_v33, %v7637_v46 }
 0x3a8   : > { %v4614_v27 = vsel %vm4605_vm1, %v2220_v36, %v3875_v21  ;;  %v2503_v16 = vshrl.u32 %v2485_v10, %v2501_v50  ;;  %v2384_v53 = vsel %vm2382_vm14, %v2383_v12, %v7638_v25  ;;  %v4779_v42 = vadd.s32 4294967169, %v2641_v11 }
 0x3a9   : > { %v4636_v15 = vsel %vm4627_vm6, %v7073_v26, %v4614_v27  ;;  %vm8278_vm0 = vcmask 515072   ;;  %vm7678_vm8 = vcmp.le.f32.partialorder %v2429_v45, 0.7853982  ;;  %v2502_v19 = vshll.u32 %v7588_v20, %v2500_v41 }
 0x3aa   : > { %4653 = vst.msk [vmem:[%s6611_s17 + $0x40] sm:$0xff] %vm8278_vm0, %v4636_v15  ;;  %v2506_v48 = vadd.s32 127, %v2505_v35  ;;  %v2385_v37 = vadd.s32 %v2384_v53, %v2380_v34  ;;  %v2518_v13 = vsel %vm7678_vm8, 0, %v2516_v6  ;;  %v2644_v26 = vand.u32 8388607, %v2637_v39 }
 0x3ab   : > { %v2647_v56 = vadd.s32 1, %v4779_v42  ;;  %v2504_v18 = vor.u32 %v2503_v16, %v2502_v19  ;;  %v7689_v45 = vmul.f32 %v7422_v24, %v7609_v3  ;;  %v2522_v4 = vadd.s32 3, %v2518_v13 }
 0x3ac   : > { %v2507_v47 = vshll.u32 %v2506_v48, 23  ;;  %v2386_v62 = vadd.s32 536870912, %v2385_v37  ;;  %v2645_v25 = vor.u32 8388608, %v2644_v26  ;;  %vm2327_vm4 = vcmp.lt.s32.totalorder %v7426_v59, 0 }
 0x3ad   : > { %vm2648_vm7 = vcmp.gt.s32.totalorder %v2647_v56, 0  ;;  %v2511_v40 = vcvt.s32.f32 %v2504_v18  ;;  %v2536_v17 = vand.u32 2139095040, %v7689_v45  ;;  %v7695_v32 = vsel %vm8281_vm15, %v6257_v63, %v1228_v28 }
 0x3ae   : > { %v2508_v51 = vor.u32 4788187, %v2507_v47  ;;  %v2387_v20 = vshrl.u32 %v2386_v62, 30  ;;  %v2649_v31 = vsel %vm2648_vm7, %v2647_v56, 0  ;;  %v7697_v44 = vand.u32 3, %v2522_v4 }
 0x3af   : > { %v2651_v54 = vand.u32 31, %v2649_v31  ;;  %v7699_v11 = vand.u32 3, %v2518_v13  ;;  %v2381_v0 = vadd.s32 %v7637_v46, %v7641_v33  ;;  %v7706_v36 = vshll.u32 %v2645_v25, 8 }
 0x3b0   : > { %v2509_v23 = vand.u32 2147483647, %v2508_v51  ;;  %v2388_v14 = vshll.u32 %v2387_v20, 30  ;;  %v2411_v63 = vsub.s32 4, %v2387_v20  ;;  %v2537_v6 = vshrl.u32 %v2536_v17, 23 }
 0x3b1   : > { %v2652_v10 = vsub.s32 32, %v2651_v54  ;;  %v2654_v27 = vshll.u32 %v5058_v29, %v2651_v54  ;;  %v2657_v35 = vshll.u32 %v8240_v30, %v2651_v54  ;;  %v2650_v16 = vshrl.u32 %v2649_v31, 5 }
 0x3b2   : > { %v2512_v58 = vmul.f32 %v2511_v40, %v2509_v23  ;;  %v7701_v22 = vsub.s32 %v2385_v37, %v2388_v14  ;;  %v2660_v53 = vshll.u32 %v8241_v52, %v2651_v54  ;;  %v2663_v37 = vshll.u32 %v8249_v2, %v2651_v54 }
 0x3b3   : > { %v2655_v41 = vshrl.u32 %v8240_v30, %v2652_v10  ;;  %v2658_v12 = vshrl.u32 %v8241_v52, %v2652_v10  ;;  %v2661_v34 = vshrl.u32 %v8249_v2, %v2652_v10  ;;  %v2664_v15 = vshrl.u32 %v5062_v5, %v2652_v10 }
 0x3b4   : > { %v2513_v21 = vxor.u32 2147483648, %v2512_v58  ;;  %v2391_v50 = vsub.s32 0, %v7701_v22  ;;  %v2533_v56 = vand.u32 2147483647, %v7689_v45  ;;  %v2412_v18 = vsel %vm2327_vm4, %v2411_v63, %v2387_v20 }
 0x3b5   : > { %v2656_v19 = vor.u32 %v2655_v41, %v2654_v27  ;;  %v2659_v48 = vor.u32 %v2658_v12, %v2657_v35  ;;  %v2662_v26 = vor.u32 %v2661_v34, %v2660_v53  ;;  %v2665_v47 = vor.u32 %v2664_v15, %v2663_v37 }
 0x3b6   : > { %v2514_v46 = vsel %vm2431_vm3, %v2513_v21, %v2512_v58  ;;  %v4768_v33 = vmin.u32 %v2391_v50, %v7701_v22  ;;  %v4775_v62 = vadd.s32 4294967169, %v2537_v6  ;;  %v2666_v4 = vshll.u32 %v5062_v5, %v2651_v54 }
 0x3b7   : > { %v2517_v42 = vsel %vm7678_vm8, %v7325_v38, %v2514_v46  ;;  %v2667_v55 = vshrl.u32 %v8245_v9, %v2652_v10  ;;  %vm2669_vm5 = vcmp.lt.s32.totalorder %v2650_v16, 1  ;;  %vm7728_vm10 = vcmp.le.f32.partialorder %v2325_v1, 0.7853982 }
 0x3b8   : > { %4992 = vcosq.f32 %v2517_v42  ;;  %v2393_v13 = vclz %v4768_v33  ;;  %v2653_v28 = vshrl.u32 %v5058_v29, %v2652_v10  ;;  %vm2671_vm11 = vcmp.lt.s32.totalorder %v2650_v16, 3 }
 0x3b9   : > { %4994 = vsinq.f32 %v2517_v42  ;;  %vm2672_vm13 = vcmp.lt.s32.totalorder %v2650_v16, 4  ;;  %v2677_v20 = vsel %vm2669_vm5, %v2656_v19, %v2659_v48  ;;  %vm4180_vm12 = vcmp.eq.s32.totalorder %v7699_v11, 2 }
 0x3ba   : > { %v4769_v51 = vadd.s32 4294967294, %v2393_v13  ;;  %v2668_v25 = vor.u32 %v2667_v55, %v2666_v4  ;;  %v2674_v54 = vsel %vm2672_vm13, %v2662_v26, 2102212464  ;;  %v2678_v23 = vsel %vm2672_vm13, %v2665_v47, 920167782 }
 0x3bb   : > { %vm2525_vm2 = vcmp.eq.s32.totalorder %v7697_v44, 0  ;;  %vm4177_vm9 = vcmp.eq.s32.totalorder %v7699_v11, 0  ;;  %v2673_v40 = vsel %vm2669_vm5, %v2653_v28, %v2656_v19  ;;  %v2675_v14 = vsel %vm2671_vm11, %v2659_v48, %v2674_v54 }
 0x3bc   : > { %vm4770_vm3 = vcmp.lt.s32.totalorder %v4769_v51, 0  ;;  %v2679_v17 = vsel %vm2671_vm11, %v2662_v26, %v2678_v23  ;;  %vm2524_vm14 = vcmp.lt.s32.totalorder %v7697_v44, 2  ;;  %vm4176_vm0 = vcmp.lt.s32.totalorder %v7699_v11, 2 }
 0x3bd   : > { %v2396_v1 = vsel %vm4770_vm3, 0, %v4769_v51  ;;  %vm2670_vm8 = vcmp.lt.s32.totalorder %v2650_v16, 2  ;;  %v2681_v41 = vsel %vm2669_vm5, %v2659_v48, %v2662_v26  ;;  %vm2521_vm7 = vweird.f32 %v7325_v38 }
 0x3be   : > { %v2397_v10 = vsub.s32 32, %v2396_v1  ;;  %v2401_v58 = vsub.s32 4294967266, %v2396_v1  ;;  %v2398_v12 = vshll.u32 %v7701_v22, %v2396_v1  ;;  %v2680_v21 = vsel %vm2670_vm8, %v2677_v20, %v2679_v17 }
 0x3bf   : > { %v2682_v50 = vsel %vm2672_vm13, %v2668_v25, 1326507024  ;;  %v2543_v63 = vadd.s32 1, %v4775_v62  ;;  %v2676_v35 = vsel %vm2670_vm8, %v2673_v40, %v2675_v14  ;;  %vm2528_vm5 = vcmp.eq.s32.totalorder %v7697_v44, 2 }
 0x3c0   : > { %v2399_v6 = vshrl.u32 %v2381_v0, %v2397_v10  ;;  %v2402_v27 = vadd.s32 127, %v2401_v58  ;;  %v2683_v34 = vsel %vm2671_vm11, %v2665_v47, %v2682_v50  ;;  %v2540_v16 = vand.u32 8388607, %v2533_v56 }
 0x3c1   : > { %v2684_v15 = vsel %vm2670_vm8, %v2681_v41, %v2683_v34  ;;  %v7750_v46 = vmul.u32.u64.low %v7706_v36, %v2680_v21  ;;  %v7751_v33 = vmul.u32.u64.high %v7706_v36, %v2680_v21, %v7750_v46  ;;  %vm2544_vm15 = vcmp.gt.s32.totalorder %v2543_v63, 0 }
 0x3c2   : > { %v4993_v53 = vpop.eup %4992  ;;  %v2400_v42 = vor.u32 %v2399_v6, %v2398_v12  ;;  %v2403_v19 = vshll.u32 %v2402_v27, 23  ;;  %v7755_v22 = vmul.u32.u64.low %v7706_v36, %v2684_v15  ;;  %v7756_v48 = vmul.u32.u64.high %v7706_v36, %v2684_v15, %v7755_v22 }
 0x3c3   : > { %v4995_v37 = vpop.eup %4994  ;;  %v2529_v0 = vxor.u32 2147483648, %v4993_v53  ;;  %v2545_v13 = vsel %vm2544_vm15, %v2543_v63, 0  ;;  %v2414_v62 = vsel %vm7728_vm10, 0, %v2412_v18  ;;  %v2692_v51 = vmul.u32 %v7706_v36, %v2676_v35 }
 0x3c4   : > { %v2526_v26 = vxor.u32 2147483648, %v4995_v37  ;;  %v2404_v47 = vor.u32 4788187, %v2403_v19  ;;  %v2695_v28 = vadd.s32 1, %v7751_v33  ;;  %v2547_v20 = vand.u32 31, %v2545_v13 }
 0x3c5   : > { %v2530_v4 = vsel %vm2528_vm5, %v2529_v0, %v4995_v37  ;;  %v4182_v55 = vsel %vm4180_vm12, %v2529_v0, %v4995_v37  ;;  %v2407_v1 = vcvt.s32.f32 %v2400_v42  ;;  %vm2694_vm11 = vc.u32 %v7756_v48, %v7750_v46 }
 0x3c6   : > { %v2527_v25 = vsel %vm2525_vm2, %v4993_v53, %v2526_v26  ;;  %v4179_v54 = vsel %vm4177_vm9, %v4993_v53, %v2526_v26  ;;  %v2405_v23 = vand.u32 2147483647, %v2404_v47  ;;  %v2548_v40 = vsub.s32 32, %v2547_v20 }
 0x3c7   : > { %v2531_v18 = vsel %vm2524_vm14, %v2527_v25, %v2530_v4  ;;  %v4183_v36 = vsel %vm4176_vm0, %v4179_v54, %v4182_v55  ;;  %v2696_v58 = vsel %vm2694_vm11, %v2695_v28, %v7751_v33  ;;  %v2418_v41 = vadd.s32 3, %v2414_v62 }
 0x3c8   : > { %v2532_v14 = vsel %vm2521_vm7, nan, %v2531_v18  ;;  %v4184_v17 = vsel %vm2521_vm7, nan, %v4183_v36  ;;  %v2408_v10 = vmul.f32 %v2407_v1, %v2405_v23  ;;  %v2697_v11 = vadd.s32 %v2696_v58, %v2692_v51 }
 0x3c9   : > { %v4617_v44 = vsel %vm4605_vm1, %v2532_v14, %v4184_v17  ;;  %v2541_v12 = vor.u32 8388608, %v2540_v16  ;;  %v7787_v63 = vand.u32 3, %v2414_v62  ;;  %v7789_v6 = vshrl.u32 %v2545_v13, 5 }
 0x3ca   : > { %v4639_v21 = vsel %vm4627_vm6, %v7313_v49, %v4617_v44  ;;  %v2409_v50 = vxor.u32 2147483648, %v2408_v10  ;;  %vm8284_vm13 = vcmask 515072   ;;  %v2698_v38 = vadd.s32 536870912, %v2697_v11 }
 0x3cb   : > { %4656 = vst.msk [vmem:[%s6611_s17 + $0x58] sm:$0xff] %vm8284_vm13, %v4639_v21  ;;  %v2550_v27 = vshll.u32 %v5058_v29, %v2547_v20  ;;  %v2551_v35 = vshrl.u32 %v8240_v30, %v2548_v40  ;;  %v2554_v34 = vshrl.u32 %v8241_v52, %v2548_v40  ;;  %v2557_v33 = vshrl.u32 %v8249_v2, %v2548_v40 }
 0x3cc   : > { %v2410_v15 = vsel %vm2327_vm4, %v2409_v50, %v2408_v10  ;;  %v2559_v49 = vshll.u32 %v8249_v2, %v2547_v20  ;;  %v2560_v53 = vshrl.u32 %v5062_v5, %v2548_v40  ;;  %v7804_v19 = vshrl.u32 %v2698_v38, 30 }
 0x3cd   : > { %v2413_v42 = vsel %vm7728_vm10, %v7426_v59, %v2410_v15  ;;  %v2553_v22 = vshll.u32 %v8240_v30, %v2547_v20  ;;  %v2556_v37 = vshll.u32 %v8241_v52, %v2547_v20  ;;  %v2562_v16 = vshll.u32 %v5062_v5, %v2547_v20 }
 0x3ce   : > { %4996 = vcosq.f32 %v2413_v42  ;;  %v2561_v0 = vor.u32 %v2560_v53, %v2559_v49  ;;  %v2563_v13 = vshrl.u32 %v8245_v9, %v2548_v40  ;;  %v2700_v26 = vshll.u32 %v7804_v19, 30 }
 0x3cf   : > { %4998 = vsinq.f32 %v2413_v42  ;;  %v2552_v47 = vor.u32 %v2551_v35, %v2550_v27  ;;  %v2555_v62 = vor.u32 %v2554_v34, %v2553_v22  ;;  %v2419_v51 = vand.u32 3, %v2418_v41 }
 0x3d0   : > { %v2558_v31 = vor.u32 %v2557_v33, %v2556_v37  ;;  %v2564_v4 = vor.u32 %v2563_v13, %v2562_v16  ;;  %v7811_v55 = vsub.s32 %v2697_v11, %v2700_v26  ;;  %vm2568_vm4 = vcmp.lt.s32.totalorder %v7789_v6, 4 }
 0x3d1   : > { %vm2565_vm10 = vcmp.lt.s32.totalorder %v7789_v6, 1  ;;  %v2574_v28 = vsel %vm2568_vm4, %v2561_v0, 920167782  ;;  %v7817_v20 = vshll.u32 %v2541_v12, 8  ;;  %v7821_v25 = vmul.f32 %v7422_v24, %v7695_v32 }
 0x3d2   : > { %vm4074_vm12 = vcmp.eq.s32.totalorder %v7787_v63, 0  ;;  %vm4077_vm3 = vcmp.eq.s32.totalorder %v7787_v63, 2  ;;  %v2703_v54 = vsub.s32 0, %v7811_v55  ;;  %vm2567_vm2 = vcmp.lt.s32.totalorder %v7789_v6, 3 }
 0x3d3   : > { %v2573_v23 = vsel %vm2565_vm10, %v2552_v47, %v2555_v62  ;;  %vm2420_vm9 = vcmp.lt.s32.totalorder %v2419_v51, 2  ;;  %vm2421_vm14 = vcmp.eq.s32.totalorder %v2419_v51, 0  ;;  %vm4073_vm0 = vcmp.lt.s32.totalorder %v7787_v63, 2 }
 0x3d4   : > { %vm2639_vm8 = vcmp.lt.s32.totalorder %v7599_v61, 0  ;;  %v2570_v1 = vsel %vm2568_vm4, %v2558_v31, 2102212464  ;;  %v2575_v18 = vsel %vm2567_vm2, %v2558_v31, %v2574_v28  ;;  %v2578_v36 = vsel %vm2568_vm4, %v2564_v4, 1326507024 }
 0x3d5   : > { %vm2417_vm7 = vweird.f32 %v7426_v59  ;;  %v4780_v14 = vmin.u32 %v2703_v54, %v7811_v55  ;;  %v2549_v17 = vshrl.u32 %v5058_v29, %v2548_v40  ;;  %vm2566_vm15 = vcmp.lt.s32.totalorder %v7789_v6, 2 }
 0x3d6   : > { %v2577_v10 = vsel %vm2565_vm10, %v2555_v62, %v2558_v31  ;;  %vm2424_vm5 = vcmp.eq.s32.totalorder %v2419_v51, 2  ;;  %v2576_v58 = vsel %vm2566_vm15, %v2573_v23, %v2575_v18  ;;  %v2579_v44 = vsel %vm2567_vm2, %v2561_v0, %v2578_v36 }
 0x3d7   : > { %v2848_v41 = vand.u32 2139095040, %v7821_v25  ;;  %v2705_v11 = vclz %v4780_v14  ;;  %v2723_v12 = vsub.s32 4, %v7804_v19  ;;  %v2569_v40 = vsel %vm2565_vm10, %v2549_v17, %v2552_v47 }
 0x3d8   : > { %v2571_v21 = vsel %vm2567_vm2, %v2555_v62, %v2570_v1  ;;  %v4997_v50 = vpop.eup %4996  ;;  %vm7855_vm11 = vcmp.le.f32.partialorder %v2637_v39, 0.7853982  ;;  %v2580_v27 = vsel %vm2566_vm15, %v2577_v10, %v2579_v44  ;;  %v2693_v37 = vadd.s32 %v7750_v46, %v7756_v48 }
 0x3d9   : > { %v7862_v35 = vmul.u32.u64.low %v7817_v20, %v2576_v58  ;;  %v7863_v34 = vmul.u32.u64.high %v7817_v20, %v2576_v58, %v7862_v35  ;;  %v2849_v15 = vshrl.u32 %v2848_v41, 23  ;;  %v4999_v33 = vpop.eup %4998  ;;  %v2425_v49 = vxor.u32 2147483648, %v4997_v50 }
 0x3da   : > { %v4781_v53 = vadd.s32 4294967294, %v2705_v11  ;;  %v7867_v42 = vmul.u32.u64.low %v7817_v20, %v2580_v27  ;;  %v7868_v22 = vmul.u32.u64.high %v7817_v20, %v2580_v27, %v7867_v42  ;;  %v2422_v39 = vxor.u32 2147483648, %v4999_v33 }
 0x3db   : > { %v2572_v0 = vsel %vm2566_vm15, %v2569_v40, %v2571_v21  ;;  %v2845_v16 = vand.u32 2147483647, %v7821_v25  ;;  %v2426_v13 = vsel %vm2424_vm5, %v2425_v49, %v4999_v33  ;;  %v4079_v26 = vsel %vm4077_vm3, %v2425_v49, %v4999_v33 }
 0x3dc   : > { %vm4782_vm13 = vcmp.lt.s32.totalorder %v4781_v53, 0  ;;  %v4787_v47 = vadd.s32 4294967169, %v2849_v15  ;;  %v2423_v62 = vsel %vm2421_vm14, %v4997_v50, %v2422_v39  ;;  %v4076_v31 = vsel %vm4074_vm12, %v4997_v50, %v2422_v39 }
 0x3dd   : > { %v2708_v4 = vsel %vm4782_vm13, 0, %v4781_v53  ;;  %v2591_v46 = vadd.s32 1, %v7863_v34  ;;  %v2427_v48 = vsel %vm2420_vm9, %v2423_v62, %v2426_v13  ;;  %v4080_v6 = vsel %vm4073_vm0, %v4076_v31, %v4079_v26 }
 0x3de   : > { %v2709_v28 = vsub.s32 32, %v2708_v4  ;;  %v2724_v54 = vsel %vm2639_vm8, %v2723_v12, %v7804_v19  ;;  %v2428_v23 = vsel %vm2417_vm7, nan, %v2427_v48  ;;  %v4081_v1 = vsel %vm2417_vm7, nan, %v4080_v6  ;;  %v1226_v12 = vpop.permute.xlu0 %1225 }
 0x3df   : > { %v2713_v18 = vsub.s32 4294967266, %v2708_v4  ;;  %v2588_v36 = vmul.u32 %v7817_v20, %v2572_v0  ;;  %v4616_v51 = vsel %vm4605_vm1, %v2428_v23, %v4081_v1  ;;  %v2710_v63 = vshll.u32 %v7811_v55, %v2708_v4 }
 0x3e0   : > { %v2711_v14 = vshrl.u32 %v2693_v37, %v2709_v28  ;;  %vm2590_vm4 = vc.u32 %v7868_v22, %v7862_v35  ;;  %v4638_v19 = vsel %vm4627_vm6, %v7409_v57, %v4616_v51  ;;  %v2855_v10 = vadd.s32 1, %v4787_v47 }
 0x3e1   : > { %v2714_v17 = vadd.s32 127, %v2713_v18  ;;  %v2592_v59 = vsel %vm2590_vm4, %v2591_v46, %v7863_v34  ;;  %vm8287_vm10 = vcmask 515072   ;;  %v2726_v20 = vsel %vm7855_vm11, 0, %v2724_v54 }
 0x3e2   : > { %4655 = vst.msk [vmem:[%s6611_s17 + $0x50] sm:$0xff] %vm8287_vm10, %v4638_v19  ;;  %v2593_v58 = vadd.s32 %v2592_v59, %v2588_v36  ;;  %v2712_v44 = vor.u32 %v2711_v14, %v2710_v63  ;;  %vm2856_vm12 = vcmp.gt.s32.totalorder %v2855_v10, 0  ;;  %v2730_v21 = vadd.s32 3, %v2726_v20 }
 0x3e3   : > { %v2715_v55 = vshll.u32 %v2714_v17, 23  ;;  %v2857_v11 = vsel %vm2856_vm12, %v2855_v10, 0  ;;  %v2852_v57 = vand.u32 8388607, %v2845_v16  ;;  %vm8288_vm3 = vcmask 392192  }
 0x3e4   : > { %v2594_v41 = vadd.s32 536870912, %v2593_v58  ;;  %v2859_v50 = vand.u32 31, %v2857_v11  ;;  %v2719_v15 = vcvt.s32.f32 %v2712_v44  ;;  %v7912_v49 = vsel %vm8288_vm3, %v6260_v7, %v1226_v12 }
 0x3e5   : > { %v2716_v40 = vor.u32 4788187, %v2715_v55  ;;  %v7915_v39 = vand.u32 3, %v2730_v21  ;;  %v7917_v37 = vand.u32 3, %v2726_v20  ;;  %v2853_v0 = vor.u32 8388608, %v2852_v57 }
 0x3e6   : > { %v7908_v27 = vshrl.u32 %v2594_v41, 30  ;;  %v2860_v33 = vsub.s32 32, %v2859_v50  ;;  %v7925_v62 = vmul.f32 %v7422_v24, %v7912_v49  ;;  %v2858_v31 = vshrl.u32 %v2857_v11, 5 }
 0x3e7   : > { %v2717_v34 = vand.u32 2147483647, %v2716_v40  ;;  %v2862_v6 = vshll.u32 %v5058_v29, %v2859_v50  ;;  %v2865_v28 = vshll.u32 %v8240_v30, %v2859_v50  ;;  %v2868_v54 = vshll.u32 %v8241_v52, %v2859_v50 }
 0x3e8   : > { %v2596_v53 = vshll.u32 %v7908_v27, 30  ;;  %v2863_v26 = vshrl.u32 %v8240_v30, %v2860_v33  ;;  %v2866_v47 = vshrl.u32 %v8241_v52, %v2860_v33  ;;  %v2869_v4 = vshrl.u32 %v8249_v2, %v2860_v33 }
 0x3e9   : > { %v2720_v42 = vmul.f32 %v2719_v15, %v2717_v34  ;;  %v2872_v46 = vshrl.u32 %v5062_v5, %v2860_v33  ;;  %v2871_v24 = vshll.u32 %v8249_v2, %v2859_v50  ;;  %v2874_v1 = vshll.u32 %v5062_v5, %v2859_v50 }
 0x3ea   : > { %v7919_v13 = vsub.s32 %v2593_v58, %v2596_v53  ;;  %v2875_v18 = vshrl.u32 %v8245_v9, %v2860_v33  ;;  %v2864_v63 = vor.u32 %v2863_v26, %v2862_v6  ;;  %v2867_v14 = vor.u32 %v2866_v47, %v2865_v28 }
 0x3eb   : > { %v2721_v7 = vxor.u32 2147483648, %v2720_v42  ;;  %v2870_v19 = vor.u32 %v2869_v4, %v2868_v54  ;;  %v2873_v17 = vor.u32 %v2872_v46, %v2871_v24  ;;  %vm2535_vm2 = vcmp.lt.s32.totalorder %v7689_v45, 0 }
 0x3ec   : > { %v2599_v48 = vsub.s32 0, %v7919_v13  ;;  %v2876_v59 = vor.u32 %v2875_v18, %v2874_v1  ;;  %v2861_v20 = vshrl.u32 %v5058_v29, %v2860_v33  ;;  %v7944_v58 = vshll.u32 %v2853_v0, 8 }
 0x3ed   : > { %v2722_v23 = vsel %vm2639_vm8, %v2721_v7, %v2720_v42  ;;  %vm2877_vm9 = vcmp.lt.s32.totalorder %v2858_v31, 1  ;;  %vm2878_vm14 = vcmp.lt.s32.totalorder %v2858_v31, 2  ;;  %vm2879_vm0 = vcmp.lt.s32.totalorder %v2858_v31, 3 }
 0x3ee   : > { %v2725_v36 = vsel %vm7855_vm11, %v7599_v61, %v2722_v23  ;;  %v4776_v51 = vmin.u32 %v2599_v48, %v7919_v13  ;;  %v2744_v38 = vand.u32 2139095040, %v7925_v62  ;;  %vm2880_vm8 = vcmp.lt.s32.totalorder %v2858_v31, 4 }
 0x3ef   : > { %5000 = vcosq.f32 %v2725_v36  ;;  %v2881_v55 = vsel %vm2877_vm9, %v2861_v20, %v2864_v63  ;;  %v2885_v41 = vsel %vm2877_vm9, %v2864_v63, %v2867_v14  ;;  %vm4386_vm7 = vcmp.eq.s32.totalorder %v7917_v37, 2 }
 0x3f0   : > { %5002 = vsinq.f32 %v2725_v36  ;;  %v2601_v10 = vclz %v4776_v51  ;;  %v2882_v11 = vsel %vm2880_vm8, %v2870_v19, 2102212464  ;;  %v2886_v12 = vsel %vm2880_vm8, %v2873_v17, 920167782 }
 0x3f1   : > { %v2889_v40 = vsel %vm2877_vm9, %v2867_v14, %v2870_v19  ;;  %v2890_v21 = vsel %vm2880_vm8, %v2876_v59, 1326507024  ;;  %vm4383_vm15 = vcmp.eq.s32.totalorder %v7917_v37, 0  ;;  %v2883_v57 = vsel %vm2879_vm0, %v2867_v14, %v2882_v11 }
 0x3f2   : > { %v4777_v44 = vadd.s32 4294967294, %v2601_v10  ;;  %v2887_v50 = vsel %vm2879_vm0, %v2870_v19, %v2886_v12  ;;  %v2891_v34 = vsel %vm2879_vm0, %v2873_v17, %v2890_v21  ;;  %vm2732_vm11 = vcmp.lt.s32.totalorder %v7915_v39, 2 }
 0x3f3   : > { %vm4382_vm13 = vcmp.lt.s32.totalorder %v7917_v37, 2  ;;  %v2619_v33 = vsub.s32 4, %v7908_v27  ;;  %v2888_v53 = vsel %vm2878_vm14, %v2885_v41, %v2887_v50  ;;  %v2892_v42 = vsel %vm2878_vm14, %v2889_v40, %v2891_v34 }
 0x3f4   : > { %vm4778_vm5 = vcmp.lt.s32.totalorder %v4777_v44, 0  ;;  %vm2729_vm4 = vweird.f32 %v7599_v61  ;;  %vm7957_vm10 = vcmp.le.f32.partialorder %v2533_v56, 0.7853982  ;;  %v2589_v26 = vadd.s32 %v7862_v35, %v7868_v22 }
 0x3f5   : > { %v2604_v15 = vsel %vm4778_vm5, 0, %v4777_v44  ;;  %v2884_v4 = vsel %vm2878_vm14, %v2881_v55, %v2883_v57  ;;  %v7965_v46 = vmul.u32.u64.low %v7944_v58, %v2892_v42  ;;  %v7966_v48 = vmul.u32.u64.high %v7944_v58, %v2892_v42, %v7965_v46 }
 0x3f6   : > { %v2605_v47 = vsub.s32 32, %v2604_v15  ;;  %v2609_v7 = vsub.s32 4294967266, %v2604_v15  ;;  %v7969_v6 = vmul.u32.u64.low %v7944_v58, %v2888_v53  ;;  %v7970_v28 = vmul.u32.u64.high %v7944_v58, %v2888_v53, %v7969_v6 }
 0x3f7   : > { %v2606_v56 = vshll.u32 %v7919_v13, %v2604_v15  ;;  %v2745_v24 = vshrl.u32 %v2744_v38, 23  ;;  %vm2733_vm12 = vcmp.eq.s32.totalorder %v7915_v39, 0  ;;  %vm2736_vm3 = vcmp.eq.s32.totalorder %v7915_v39, 2 }
 0x3f8   : > { %v2607_v54 = vshrl.u32 %v2589_v26, %v2605_v47  ;;  %v2610_v23 = vadd.s32 127, %v2609_v7  ;;  %v2620_v35 = vsel %vm2535_vm2, %v2619_v33, %v7908_v27  ;;  %v2741_v22 = vand.u32 2147483647, %v7925_v62 }
 0x3f9   : > { %v5001_v1 = vpop.eup %5000  ;;  %v4783_v63 = vadd.s32 4294967169, %v2745_v24  ;;  %v2900_v14 = vmul.u32 %v7944_v58, %v2884_v4  ;;  %vm2902_vm9 = vc.u32 %v7966_v48, %v7969_v6  ;;  %v2903_v19 = vadd.s32 1, %v7970_v28 }
 0x3fa   : > { %v5003_v31 = vpop.eup %5002  ;;  %v2737_v18 = vxor.u32 2147483648, %v5001_v1  ;;  %v2608_v36 = vor.u32 %v2607_v54, %v2606_v56  ;;  %v2611_v51 = vshll.u32 %v2610_v23, 23  ;;  %v2622_v57 = vsel %vm7957_vm10, 0, %v2620_v35 }
 0x3fb   : > { %v2734_v13 = vxor.u32 2147483648, %v5003_v31  ;;  %v2904_v44 = vsel %vm2902_vm9, %v2903_v19, %v7970_v28  ;;  %v2751_v58 = vadd.s32 1, %v4783_v63  ;;  %vm8291_vm0 = vcmask 515072  }
 0x3fc   : > { %v2738_v17 = vsel %vm2736_vm3, %v2737_v18, %v5003_v31  ;;  %v4388_v59 = vsel %vm4386_vm7, %v2737_v18, %v5003_v31  ;;  %v2612_v27 = vor.u32 4788187, %v2611_v51  ;;  %v2615_v10 = vcvt.s32.f32 %v2608_v36 }
 0x3fd   : > { %v2735_v20 = vsel %vm2733_vm12, %v5001_v1, %v2734_v13  ;;  %v4385_v38 = vsel %vm4383_vm15, %v5001_v1, %v2734_v13  ;;  %v2905_v12 = vadd.s32 %v2904_v44, %v2900_v14  ;;  %vm2752_vm14 = vcmp.gt.s32.totalorder %v2751_v58, 0 }
 0x3fe   : > { %v2739_v55 = vsel %vm2732_vm11, %v2735_v20, %v2738_v17  ;;  %v4389_v41 = vsel %vm4382_vm13, %v4385_v38, %v4388_v59  ;;  %v2613_v11 = vand.u32 2147483647, %v2612_v27  ;;  %v2753_v15 = vsel %vm2752_vm14, %v2751_v58, 0 }
 0x3ff   : > { %v2740_v40 = vsel %vm2729_vm4, nan, %v2739_v55  ;;  %v4390_v21 = vsel %vm2729_vm4, nan, %v4389_v41  ;;  %v2906_v34 = vadd.s32 536870912, %v2905_v12  ;;  %v2755_v33 = vand.u32 31, %v2753_v15 }
 0x400   : > { %v4619_v50 = vsel %vm4605_vm1, %v2740_v40, %v4390_v21  ;;  %v2616_v39 = vmul.f32 %v2615_v10, %v2613_v11  ;;  %v2626_v42 = vadd.s32 3, %v2622_v57  ;;  %v2748_v4 = vand.u32 8388607, %v2741_v22 }
 0x401   : > { %v4641_v37 = vsel %vm4627_vm6, %v7561_v43, %v4619_v50  ;;  %v8008_v61 = vshrl.u32 %v2906_v34, 30  ;;  %v2756_v26 = vsub.s32 32, %v2755_v33  ;;  %v8018_v46 = vand.u32 3, %v2622_v57 }
 0x402   : > { %4658 = vst.msk [vmem:[%s6611_s17 + $0x68] sm:$0xff] %vm8291_vm0, %v4641_v37  ;;  %v2617_v53 = vxor.u32 2147483648, %v2616_v39  ;;  %v2758_v23 = vshll.u32 %v5058_v29, %v2755_v33  ;;  %v2627_v1 = vand.u32 3, %v2626_v42  ;;  %v8026_v35 = vshrl.u32 %v2753_v15, 5 }
 0x403   : > { %v2908_v7 = vshll.u32 %v8008_v61, 30  ;;  %v2759_v28 = vshrl.u32 %v8240_v30, %v2756_v26  ;;  %v2762_v56 = vshrl.u32 %v8241_v52, %v2756_v26  ;;  %v2765_v24 = vshrl.u32 %v8249_v2, %v2756_v26 }
 0x404   : > { %v2618_v47 = vsel %vm2535_vm2, %v2617_v53, %v2616_v39  ;;  %v2761_v0 = vshll.u32 %v8240_v30, %v2755_v33  ;;  %v2764_v36 = vshll.u32 %v8241_v52, %v2755_v33  ;;  %v2767_v51 = vshll.u32 %v8249_v2, %v2755_v33 }
 0x405   : > { %v2621_v43 = vsel %vm7957_vm10, %v7689_v45, %v2618_v47  ;;  %v8022_v54 = vsub.s32 %v2905_v12, %v2908_v7  ;;  %v2760_v18 = vor.u32 %v2759_v28, %v2758_v23  ;;  %v2768_v13 = vshrl.u32 %v5062_v5, %v2756_v26 }
 0x406   : > { %5004 = vcosq.f32 %v2621_v43  ;;  %v2763_v63 = vor.u32 %v2762_v56, %v2761_v0  ;;  %v2770_v14 = vshll.u32 %v5062_v5, %v2755_v33  ;;  %v2771_v19 = vshrl.u32 %v8245_v9, %v2756_v26 }
 0x407   : > { %5006 = vsinq.f32 %v2621_v43  ;;  %v2911_v31 = vsub.s32 0, %v8022_v54  ;;  %vm4283_vm2 = vcmp.eq.s32.totalorder %v8018_v46, 2  ;;  %v2766_v59 = vor.u32 %v2765_v24, %v2764_v36 }
 0x408   : > { %vm2629_vm8 = vcmp.eq.s32.totalorder %v2627_v1, 0  ;;  %vm4280_vm7 = vcmp.eq.s32.totalorder %v8018_v46, 0  ;;  %v2749_v30 = vor.u32 8388608, %v2748_v4  ;;  %v2769_v27 = vor.u32 %v2768_v13, %v2767_v51 }
 0x409   : > { %v4788_v17 = vmin.u32 %v2911_v31, %v8022_v54  ;;  %v2772_v52 = vor.u32 %v2771_v19, %v2770_v14  ;;  %vm2628_vm15 = vcmp.lt.s32.totalorder %v2627_v1, 2  ;;  %vm2632_vm5 = vcmp.eq.s32.totalorder %v2627_v1, 2 }
 0x40a   : > { %vm4279_vm11 = vcmp.lt.s32.totalorder %v8018_v46, 2  ;;  %v2901_v5 = vadd.s32 %v7969_v6, %v7966_v48  ;;  %vm2773_vm13 = vcmp.lt.s32.totalorder %v8026_v35, 1  ;;  %vm2625_vm4 = vweird.f32 %v7689_v45 }
 0x40b   : > { %v2913_v2 = vclz %v4788_v17  ;;  %v2757_v9 = vshrl.u32 %v5058_v29, %v2756_v26  ;;  %vm2775_vm10 = vcmp.lt.s32.totalorder %v8026_v35, 3  ;;  %vm2776_vm12 = vcmp.lt.s32.totalorder %v8026_v35, 4 }
 0x40c   : > { %v2781_v10 = vsel %vm2773_vm13, %v2760_v18, %v2763_v63  ;;  %v2778_v38 = vsel %vm2776_vm12, %v2766_v59, 2102212464  ;;  %v2782_v44 = vsel %vm2776_vm12, %v2769_v27, 920167782  ;;  %v2785_v48 = vsel %vm2773_vm13, %v2763_v63, %v2766_v59 }
 0x40d   : > { %v4789_v20 = vadd.s32 4294967294, %v2913_v2  ;;  %vm2774_vm3 = vcmp.lt.s32.totalorder %v8026_v35, 2  ;;  %v2783_v6 = vsel %vm2775_vm10, %v2766_v59, %v2782_v44  ;;  %v2786_v58 = vsel %vm2776_vm12, %v2772_v52, 1326507024 }
 0x40e   : > { %v2789_v55 = vshll.u32 %v2749_v30, 8  ;;  %v2777_v29 = vsel %vm2773_vm13, %v2757_v9, %v2760_v18  ;;  %v2779_v11 = vsel %vm2775_vm10, %v2763_v63, %v2778_v38  ;;  %v2787_v12 = vsel %vm2775_vm10, %v2769_v27, %v2786_v58 }
 0x40f   : > { %vm4790_vm9 = vcmp.lt.s32.totalorder %v4789_v20, 0  ;;  %v2784_v50 = vsel %vm2774_vm3, %v2781_v10, %v2783_v6  ;;  %v2788_v39 = vsel %vm2774_vm3, %v2785_v48, %v2787_v12  ;;  %v2780_v1 = vsel %vm2774_vm3, %v2777_v29, %v2779_v11  ;;  %vm8292_vm3 = vmmov %vm8291_vm0 }
 0x410   : > { %v5005_v41 = vpop.eup %5004  ;;  %v2916_v57 = vsel %vm4790_vm9, 0, %v4789_v20  ;;  %v8061_v26 = vmul.u32.u64.low %v2789_v55, %v2788_v39  ;;  %v8062_v47 = vmul.u32.u64.high %v2789_v55, %v2788_v39, %v8061_v26  ;;  %v2796_v19 = vmul.u32 %v2789_v55, %v2780_v1 }
 0x411   : > { %v5007_v40 = vpop.eup %5006  ;;  %v2633_v21 = vxor.u32 2147483648, %v5005_v41  ;;  %v2917_v15 = vsub.s32 32, %v2916_v57  ;;  %v2918_v37 = vshll.u32 %v8022_v54, %v2916_v57  ;;  %v2921_v33 = vsub.s32 4294967266, %v2916_v57 }
 0x412   : > { %v2630_v34 = vxor.u32 2147483648, %v5007_v40  ;;  %v8070_v23 = vmul.u32.u64.low %v2789_v55, %v2784_v50  ;;  %v8071_v24 = vmul.u32.u64.high %v2789_v55, %v2784_v50, %v8070_v23  ;;  %v2931_v35 = vsub.s32 4, %v8008_v61 }
 0x413   : > { %v2634_v53 = vsel %vm2632_vm5, %v2633_v21, %v5007_v40  ;;  %v4285_v42 = vsel %vm4283_vm2, %v2633_v21, %v5007_v40  ;;  %v2919_v43 = vshrl.u32 %v2901_v5, %v2917_v15  ;;  %v2922_v28 = vadd.s32 127, %v2921_v33 }
 0x414   : > { %v2631_v7 = vsel %vm2629_vm8, %v5005_v41, %v2630_v34  ;;  %v4282_v4 = vsel %vm4280_vm7, %v5005_v41, %v2630_v34  ;;  %vm2798_vm14 = vc.u32 %v8062_v47, %v8070_v23  ;;  %v2799_v45 = vadd.s32 1, %v8071_v24 }
 0x415   : > { %v2635_v56 = vsel %vm2628_vm15, %v2631_v7, %v2634_v53  ;;  %v4286_v54 = vsel %vm4279_vm11, %v4282_v4, %v4285_v42  ;;  %v2920_v18 = vor.u32 %v2919_v43, %v2918_v37  ;;  %v2923_v36 = vshll.u32 %v2922_v28, 23 }
 0x416   : > { %v2636_v0 = vsel %vm2625_vm4, nan, %v2635_v56  ;;  %v4287_v31 = vsel %vm2625_vm4, nan, %v4286_v54  ;;  %v2800_v17 = vsel %vm2798_vm14, %v2799_v45, %v8071_v24  ;;  %vm2847_vm2 = vcmp.lt.s32.totalorder %v7821_v25, 0 }
 0x417   : > { %v4618_v51 = vsel %vm4605_vm1, %v2636_v0, %v4287_v31  ;;  %v2924_v63 = vor.u32 4788187, %v2923_v36  ;;  %v2927_v14 = vcvt.s32.f32 %v2920_v18  ;;  %v2801_v30 = vadd.s32 %v2800_v17, %v2796_v19 }
 0x418   : > { %v4640_v46 = vsel %vm4627_vm6, %v7609_v3, %v4618_v51  ;;  %vm2846_vm8 = vcmp.le.f32.partialorder %v2845_v16, 0.7853982  ;;  %v2932_v5 = vsel %vm2847_vm2, %v2931_v35, %v8008_v61  ;;  %v2797_v34 = vadd.s32 %v8070_v23, %v8062_v47 }
 0x419   : > { %4657 = vst.msk [vmem:[%s6611_s17 + $0x60] sm:$0xff] %vm8291_vm0, %v4640_v46  ;;  %v2925_v13 = vand.u32 2147483647, %v2924_v63  ;;  %v2802_v52 = vadd.s32 536870912, %v2801_v30  ;;  %v2934_v20 = vsel %vm2846_vm8, 0, %v2932_v5  ;;  %vm2937_vm12 = vweird.f32 %v7821_v25 }
 0x41a   : > { %v2938_v44 = vadd.s32 3, %v2934_v20  ;;  %v4587_v58 = vand.u32 3, %v2934_v20  ;;  %vm2743_vm9 = vcmp.lt.s32.totalorder %v7925_v62, 0  ;;  %vm2742_vm14 = vcmp.le.f32.partialorder %v2741_v22, 0.7853982 }
 0x41b   : > { %v2928_v59 = vmul.f32 %v2927_v14, %v2925_v13  ;;  %v2803_v2 = vshrl.u32 %v2802_v52, 30 }
 0x41c   : > { %v2939_v55 = vand.u32 3, %v2938_v44  ;;  %vm4588_vm7 = vcmp.lt.s32.totalorder %v4587_v58, 2  ;;  %vm4589_vm15 = vcmp.eq.s32.totalorder %v4587_v58, 0  ;;  %vm4592_vm5 = vcmp.eq.s32.totalorder %v4587_v58, 2 }
 0x41d   : > { %v2929_v27 = vxor.u32 2147483648, %v2928_v59  ;;  %v2804_v10 = vshll.u32 %v2803_v2, 30  ;;  %v2827_v31 = vsub.s32 4, %v2803_v2 }
 0x41e   : > { %vm2940_vm11 = vcmp.lt.s32.totalorder %v2939_v55, 2  ;;  %vm2944_vm13 = vcmp.eq.s32.totalorder %v2939_v55, 2  ;;  %vm2941_vm10 = vcmp.eq.s32.totalorder %v2939_v55, 0 }
 0x41f   : > { %v2930_v3 = vsel %vm2847_vm2, %v2929_v27, %v2928_v59  ;;  %v2805_v38 = vsub.s32 %v2801_v30, %v2804_v10  ;;  %v2828_v51 = vsel %vm2743_vm9, %v2827_v31, %v2803_v2 }
 0x420   : > { %v2933_v9 = vsel %vm2846_vm8, %v7821_v25, %v2930_v3 }
 0x421   : > { %5008 = vcosq.f32 %v2933_v9  ;;  %v2807_v48 = vsub.s32 0, %v2805_v38 }
 0x422   : > { %5010 = vsinq.f32 %v2933_v9 }
 0x423   : > { %v4784_v6 = vmin.u32 %v2807_v48, %v2805_v38 }
 0x425   : > { %v2809_v41 = vclz %v4784_v6 }
 0x427   : > { %v4785_v11 = vadd.s32 4294967294, %v2809_v41 }
 0x429   : > { %vm4786_vm4 = vcmp.lt.s32.totalorder %v4785_v11, 0 }
 0x42a   : > { %v2812_v57 = vsel %vm4786_vm4, 0, %v4785_v11 }
 0x42b   : > { %v5009_v29 = vpop.eup %5008  ;;  %v2813_v15 = vsub.s32 32, %v2812_v57  ;;  %v2817_v53 = vsub.s32 4294967266, %v2812_v57  ;;  %v2814_v43 = vshll.u32 %v2805_v38, %v2812_v57 }
 0x42c   : > { %v5011_v16 = vpop.eup %5010  ;;  %v2945_v12 = vxor.u32 2147483648, %v5009_v29 }
 0x42d   : > { %v2942_v61 = vxor.u32 2147483648, %v5011_v16  ;;  %v2815_v7 = vshrl.u32 %v2797_v34, %v2813_v15  ;;  %v2818_v28 = vadd.s32 127, %v2817_v53 }
 0x42e   : > { %v2946_v40 = vsel %vm2944_vm13, %v2945_v12, %v5011_v16  ;;  %v4594_v21 = vsel %vm4592_vm5, %v2945_v12, %v5011_v16  ;;  %vm8293_vm13 = vmmov %vm8292_vm3 }
 0x42f   : > { %v2943_v50 = vsel %vm2941_vm10, %v5009_v29, %v2942_v61  ;;  %v4591_v39 = vsel %vm4589_vm15, %v5009_v29, %v2942_v61  ;;  %v2816_v47 = vor.u32 %v2815_v7, %v2814_v43  ;;  %v2819_v25 = vshll.u32 %v2818_v28, 23 }
 0x430   : > { %v2947_v37 = vsel %vm2940_vm11, %v2943_v50, %v2946_v40  ;;  %v4595_v33 = vsel %vm4588_vm7, %v4591_v39, %v4594_v21  ;;  %vm2833_vm11 = vweird.f32 %v7925_v62 }
 0x431   : > { %v2948_v42 = vsel %vm2937_vm12, nan, %v2947_v37  ;;  %v4596_v26 = vsel %vm2937_vm12, nan, %v4595_v33  ;;  %v2820_v54 = vor.u32 4788187, %v2819_v25  ;;  %v2823_v24 = vcvt.s32.f32 %v2816_v47 }
 0x432   : > { %v4621_v4 = vsel %vm4605_vm1, %v2948_v42, %v4596_v26 }
 0x433   : > { %v4643_v56 = vsel %vm4627_vm6, %v7695_v32, %v4621_v4  ;;  %v2821_v23 = vand.u32 2147483647, %v2820_v54  ;;  %v2830_v32 = vsel %vm2742_vm14, 0, %v2828_v51 }
 0x434   : > { %4660 = vst.msk [vmem:[%s6611_s17 + $0x78] sm:$0xff] %vm8292_vm3, %v4643_v56  ;;  %v2834_v46 = vadd.s32 3, %v2830_v32  ;;  %v4484_v45 = vand.u32 3, %v2830_v32 }
 0x435   : > { %v2824_v0 = vmul.f32 %v2823_v24, %v2821_v23 }
 0x436   : > { %v2835_v63 = vand.u32 3, %v2834_v46  ;;  %vm4489_vm2 = vcmp.eq.s32.totalorder %v4484_v45, 2  ;;  %vm4486_vm7 = vcmp.eq.s32.totalorder %v4484_v45, 0  ;;  %vm4485_vm5 = vcmp.lt.s32.totalorder %v4484_v45, 2 }
 0x437   : > { %v2825_v18 = vxor.u32 2147483648, %v2824_v0 }
 0x438   : > { %vm2840_vm0 = vcmp.eq.s32.totalorder %v2835_v63, 2  ;;  %vm2837_vm8 = vcmp.eq.s32.totalorder %v2835_v63, 0  ;;  %vm2836_vm15 = vcmp.lt.s32.totalorder %v2835_v63, 2 }
 0x439   : > { %v2826_v36 = vsel %vm2743_vm9, %v2825_v18, %v2824_v0 }
 0x43a   : > { %v2829_v1 = vsel %vm2742_vm14, %v7925_v62, %v2826_v36 }
 0x43b   : > { %5012 = vcosq.f32 %v2829_v1 }
 0x43c   : > { %5014 = vsinq.f32 %v2829_v1 }
 0x445   : > { %v5013_v13 = vpop.eup %5012 }
 0x446   : > { %v5015_v14 = vpop.eup %5014  ;;  %v2841_v19 = vxor.u32 2147483648, %v5013_v13 }
 0x447   : > { %v2838_v17 = vxor.u32 2147483648, %v5015_v14 }
 0x448   : > { %v2842_v59 = vsel %vm2840_vm0, %v2841_v19, %v5015_v14  ;;  %v4491_v22 = vsel %vm4489_vm2, %v2841_v19, %v5015_v14 }
 0x449   : > { %v2839_v35 = vsel %vm2837_vm8, %v5013_v13, %v2838_v17  ;;  %v4488_v30 = vsel %vm4486_vm7, %v5013_v13, %v2838_v17 }
 0x44a   : > { %v2843_v27 = vsel %vm2836_vm15, %v2839_v35, %v2842_v59  ;;  %v4492_v52 = vsel %vm4485_vm5, %v4488_v30, %v4491_v22 }
 0x44b   : > { %v2844_v3 = vsel %vm2833_vm11, nan, %v2843_v27  ;;  %v4493_v5 = vsel %vm2833_vm11, nan, %v4492_v52 }
 0x44c   : > { %v4620_v2 = vsel %vm4605_vm1, %v2844_v3, %v4493_v5 }
 0x44d   : > { %v4642_v9 = vsel %vm4627_vm6, %v7912_v49, %v4620_v2 }
 0x44e   : > { %4659 = vst.msk [vmem:[%s6611_s17 + $0x70] sm:$0xff] %vm8293_vm13, %v4642_v9 }
 0x44f PF: > { %s13_s12 = sadd.s32 1, %s5040_s12  }
 0x450   : > { %p10_p4 = scmp.ge.s32.totalorder %s13_s12, 4  }
 0x452   :  { %12 = sbr.rel (!%p10_p4) target bundleno = 1 (0x1), region = 62 }

</bundles_post_ra>
